<compile_context>
chip_gen: v7x
topology: tpu7x:2x2x1
jax: 0.10.0
libtpu: 0.0.40
codegen_flags: <defaults>
</compile_context>

<pallas_src>
import functools
import math

import jax
import jax.numpy as jnp
import numpy as np
from jax.experimental import pallas as pl
from jax.experimental.pallas import tpu as pltpu


# ----------------------------------------------------------------------------
# Tiling helpers
# ----------------------------------------------------------------------------
def _round_up(n, m):
    return ((n + m - 1) // m) * m


def _pick_tile(dim, pref, align):
    """Largest tile <= pref that is a multiple of `align` and divides `dim`;
    falls back to the full dim (single block) for small / unaligned dims."""
    if dim <= pref:
        return dim
    if dim % align != 0:
        return dim
    t = pref - (pref % align)
    t = max(t, align)
    while dim % t != 0:
        t -= align
    return max(t, align)


_VMEM_LIMIT = 32 * 1024 * 1024  # safe on v5e/v6e (128 MiB) and v7x (64 MiB)


# ----------------------------------------------------------------------------
# Tiled linear (bf16 MXU, f32 accumulation)
# ----------------------------------------------------------------------------
def _linear_kernel(x_ref, w_ref, b_ref, o_ref, acc_ref, *, activation):
    @pl.when(pl.program_id(2) == 0)
    def _():
        acc_ref[...] = jnp.zeros_like(acc_ref)

    acc_ref[...] += jnp.dot(x_ref[...].astype(jnp.bfloat16),
                            w_ref[...].astype(jnp.bfloat16),
                            preferred_element_type=jnp.float32)

    @pl.when(pl.program_id(2) == pl.num_programs(2) - 1)
    def _():
        out = acc_ref[...] + b_ref[...].astype(jnp.float32)
        if activation == "relu":
            out = jnp.maximum(out, 0.0)
        o_ref[...] = out.astype(o_ref.dtype)


def linear(x, w, b, activation=None, out_dtype=jnp.bfloat16):
    """y = act(x @ w + b), tiled over (M, N, K) with a VMEM f32 accumulator."""
    lead = x.shape[:-1]
    K = x.shape[-1]
    N = w.shape[1]
    M = int(np.prod(lead)) if lead else 1
    x2 = x.reshape(M, K)

    tm = _pick_tile(M, 256, 8)
    tn = _pick_tile(N, 512, 128)
    tk = _pick_tile(K, 512, 128)
    grid = (M // tm, N // tn, K // tk)

    # deeper weight buffering only pays off when the K stream is long
    if grid[2] >= 3:
        w_spec = pl.BlockSpec((tk, tn), lambda i, j, k: (k, j),
                              pipeline_mode=pl.Buffered(3))
    else:
        w_spec = pl.BlockSpec((tk, tn), lambda i, j, k: (k, j))

    out = pl.pallas_call(
        functools.partial(_linear_kernel, activation=activation),
        grid=grid,
        out_shape=jax.ShapeDtypeStruct((M, N), out_dtype),
        in_specs=[
            pl.BlockSpec((tm, tk), lambda i, j, k: (i, k)),
            w_spec,
            pl.BlockSpec((1, tn), lambda i, j, k: (0, j)),
        ],
        out_specs=pl.BlockSpec((tm, tn), lambda i, j, k: (i, j)),
        scratch_shapes=[pltpu.VMEM((tm, tn), jnp.float32)],
        compiler_params=pltpu.CompilerParams(
            dimension_semantics=("parallel", "parallel", "arbitrary"),
            vmem_limit_bytes=_VMEM_LIMIT),
    )(x2, w, b.reshape(1, N))
    return out.reshape(*lead, N)


# ----------------------------------------------------------------------------
# LayerNorm fusions
# ----------------------------------------------------------------------------
def _ln_math(y, g, b, eps):
    mean = jnp.mean(y, axis=-1, keepdims=True)
    var = jnp.mean(jnp.square(y - mean), axis=-1, keepdims=True)
    return (y - mean) * jax.lax.rsqrt(var + eps) * g + b


def _add_ln_kernel(x_ref, r_ref, g_ref, b_ref, o_ref, *, eps):
    y = x_ref[...].astype(jnp.float32) + r_ref[...].astype(jnp.float32)
    o_ref[...] = _ln_math(y, g_ref[...].astype(jnp.float32),
                          b_ref[...].astype(jnp.float32), eps).astype(o_ref.dtype)


def add_layer_norm(x, res, gamma, beta, eps=1e-5):
    """LayerNorm(x + res), fused residual add + LN."""
    lead = x.shape[:-1]
    D = x.shape[-1]
    M = int(np.prod(lead)) if lead else 1
    tm = _pick_tile(M, 256, 8)
    out = pl.pallas_call(
        functools.partial(_add_ln_kernel, eps=eps),
        grid=(M // tm,),
        out_shape=jax.ShapeDtypeStruct((M, D), jnp.bfloat16),
        in_specs=[
            pl.BlockSpec((tm, D), lambda i: (i, 0)),
            pl.BlockSpec((tm, D), lambda i: (i, 0)),
            pl.BlockSpec((1, D), lambda i: (0, 0)),
            pl.BlockSpec((1, D), lambda i: (0, 0)),
        ],
        out_specs=pl.BlockSpec((tm, D), lambda i: (i, 0)),
        compiler_params=pltpu.CompilerParams(
            dimension_semantics=("parallel",), vmem_limit_bytes=_VMEM_LIMIT),
    )(x.reshape(M, D), res.reshape(M, D),
      gamma.reshape(1, D), beta.reshape(1, D))
    return out.reshape(*lead, D)


def _linear_add_ln_kernel(x_ref, w_ref, b_ref, r_ref, g_ref, bb_ref, o_ref,
                          *, eps):
    # y = LayerNorm(residual + x @ w + b), bf16 matmul operands, f32 math
    y = jnp.dot(x_ref[...].astype(jnp.bfloat16),
                w_ref[...].astype(jnp.bfloat16),
                preferred_element_type=jnp.float32)
    y = y + b_ref[...].astype(jnp.float32) + r_ref[...].astype(jnp.float32)
    o_ref[...] = _ln_math(y, g_ref[...].astype(jnp.float32),
                          bb_ref[...].astype(jnp.float32), eps).astype(o_ref.dtype)


def linear_add_ln(x, w, b, res, gamma, beta, eps=1e-5):
    """LayerNorm(res + x @ w + b): attention output projection fused with the
    residual add and post-LN. Falls back to tiled linear + add_ln when the
    resident (K,D) weight would blow the VMEM budget (v7x-safe)."""
    lead = x.shape[:-1]
    K = x.shape[-1]
    D = w.shape[1]
    M = int(np.prod(lead)) if lead else 1
    tm = _pick_tile(M, 256, 8)

    w_bytes = K * D * w.dtype.itemsize
    est = 2 * w_bytes + tm * (K + 3 * D) * 4
    if est > (16 << 20):
        return add_layer_norm(res, linear(x, w, b), gamma, beta, eps)

    out = pl.pallas_call(
        functools.partial(_linear_add_ln_kernel, eps=eps),
        grid=(M // tm,),
        out_shape=jax.ShapeDtypeStruct((M, D), jnp.bfloat16),
        in_specs=[
            pl.BlockSpec((tm, K), lambda i: (i, 0)),
            pl.BlockSpec((K, D), lambda i: (0, 0)),
            pl.BlockSpec((1, D), lambda i: (0, 0)),
            pl.BlockSpec((tm, D), lambda i: (i, 0)),
            pl.BlockSpec((1, D), lambda i: (0, 0)),
            pl.BlockSpec((1, D), lambda i: (0, 0)),
        ],
        out_specs=pl.BlockSpec((tm, D), lambda i: (i, 0)),
        compiler_params=pltpu.CompilerParams(
            dimension_semantics=("parallel",), vmem_limit_bytes=_VMEM_LIMIT),
    )(x.reshape(M, K), w, b.reshape(1, D), res.reshape(M, D),
      gamma.reshape(1, D), beta.reshape(1, D))
    return out.reshape(*lead, D)


def _ffn_add_ln_kernel(x_ref, w1_ref, b1_ref, w2_ref, b2_ref, g_ref, bb_ref,
                       o_ref, *, eps):
    # y = LayerNorm(x + relu(x @ w1 + b1) @ w2 + b2)
    x_bf = x_ref[...].astype(jnp.bfloat16)
    h = jnp.dot(x_bf, w1_ref[...].astype(jnp.bfloat16),
                preferred_element_type=jnp.float32)
    h = jnp.maximum(h + b1_ref[...].astype(jnp.float32), 0.0)
    y = jnp.dot(h.astype(jnp.bfloat16), w2_ref[...].astype(jnp.bfloat16),
                preferred_element_type=jnp.float32)
    y = y + b2_ref[...].astype(jnp.float32) + x_ref[...].astype(jnp.float32)
    o_ref[...] = _ln_math(y, g_ref[...].astype(jnp.float32),
                          bb_ref[...].astype(jnp.float32), eps).astype(o_ref.dtype)


def feed_forward_ln(x, w1, b1, w2, b2, gamma, beta, eps=1e-5):
    """Whole FFN sublayer (w1+bias+ReLU+w2+bias) fused with residual + LN."""
    lead = x.shape[:-1]
    D = x.shape[-1]
    F = w1.shape[1]
    M = int(np.prod(lead)) if lead else 1

    # keep the live (tm, F) f32 hidden tile around ~1 MiB
    tm_pref = max(8, min(256, ((1 << 20) // max(4 * F, 1)) // 8 * 8))
    tm = _pick_tile(M, tm_pref, 8)

    w_bytes = (D * F * w1.dtype.itemsize) + (F * D * w2.dtype.itemsize)
    est = 2 * w_bytes + tm * F * 4 + 6 * tm * D * 4  # dbl-buffered weights + live tiles
    if est <= (20 << 20):
        out = pl.pallas_call(
            functools.partial(_ffn_add_ln_kernel, eps=eps),
            grid=(M // tm,),
            out_shape=jax.ShapeDtypeStruct((M, D), jnp.bfloat16),
            in_specs=[
                pl.BlockSpec((tm, D), lambda i: (i, 0)),
                pl.BlockSpec((D, F), lambda i: (0, 0)),
                pl.BlockSpec((1, F), lambda i: (0, 0)),
                pl.BlockSpec((F, D), lambda i: (0, 0)),
                pl.BlockSpec((1, D), lambda i: (0, 0)),
                pl.BlockSpec((1, D), lambda i: (0, 0)),
                pl.BlockSpec((1, D), lambda i: (0, 0)),
            ],
            out_specs=pl.BlockSpec((tm, D), lambda i: (i, 0)),
            compiler_params=pltpu.CompilerParams(
                dimension_semantics=("parallel",), vmem_limit_bytes=_VMEM_LIMIT),
        )(x.reshape(M, D), w1, b1.reshape(1, F), w2, b2.reshape(1, D),
          gamma.reshape(1, D), beta.reshape(1, D))
        return out.reshape(*lead, D)

    # large-d_ff fallback: K-tiled linears + fused residual/LN
    h = linear(x, w1, b1, activation="relu")
    f = linear(h, w2, b2)
    return add_layer_norm(x, f, gamma, beta, eps)


# ----------------------------------------------------------------------------
# Multi-head attention (fused QKV input, in-kernel head slicing)
# ----------------------------------------------------------------------------
def _attn_heads(q, k, v, bias, o_ref, num_heads, scale):
    """q,k,v: (S*, D) bf16 VMEM values; bias: (1|Sq, Sk) f32; writes each
    head's output straight into o_ref[:, lo:hi] (no concat, minimal liveness)."""
    D = o_ref.shape[-1]
    dk = D // num_heads
    for h in range(num_heads):
        lo = h * dk
        qh = (q[:, lo:lo + dk] * scale).astype(jnp.bfloat16)   # scale folded into q
        kh = k[:, lo:lo + dk].astype(jnp.bfloat16)
        vh = v[:, lo:lo + dk].astype(jnp.bfloat16)
        s = jax.lax.dot_general(qh, kh, (((1,), (1,)), ((), ())),
                                preferred_element_type=jnp.float32)
        s = s + bias
        s = s - jnp.max(s, axis=-1, keepdims=True)
        p = jnp.exp(s)
        r = pl.reciprocal(jnp.sum(p, axis=-1, keepdims=True), approx=True)
        oh = jnp.dot(p.astype(jnp.bfloat16), vh,
                     preferred_element_type=jnp.float32)
        o_ref[:, lo:lo + dk] = (oh * r).astype(o_ref.dtype)
    # TODO(synk): for long sequences (v7x 64 MiB VMEM), tile Sk with an
    # online-softmax (flash) accumulator instead of the full (Sq, Sk) scores.


def _self_attn_kernel(qkv_ref, bias_ref, o_ref, *, num_heads, scale):
    D = o_ref.shape[-1]
    q = qkv_ref[:, 0:D]
    k = qkv_ref[:, D:2 * D]
    v = qkv_ref[:, 2 * D:3 * D]
    _attn_heads(q, k, v, bias_ref[...].astype(jnp.float32), o_ref,
                num_heads, scale)


def _cross_attn_kernel(q_ref, kv_ref, bias_ref, o_ref, *, num_heads, scale):
    D = o_ref.shape[-1]
    q = q_ref[...]
    k = kv_ref[:, 0:D]
    v = kv_ref[:, D:2 * D]
    _attn_heads(q, k, v, bias_ref[...].astype(jnp.float32), o_ref,
                num_heads, scale)


def attention_self(qkv, bias, num_heads):
    """qkv: (B, S, 3D) fused projection; bias: (B, 1|S, S) bf16 -> (B, S, D)."""
    B, S, threeD = qkv.shape
    D = threeD // 3
    Bq = bias.shape[1]
    scale = 1.0 / math.sqrt(D // num_heads)
    return pl.pallas_call(
        functools.partial(_self_attn_kernel, num_heads=num_heads, scale=scale),
        grid=(B,),
        out_shape=jax.ShapeDtypeStruct((B, S, D), jnp.bfloat16),
        in_specs=[
            pl.BlockSpec((None, S, threeD), lambda b: (b, 0, 0)),
            pl.BlockSpec((None, Bq, S), lambda b: (b, 0, 0)),
        ],
        out_specs=pl.BlockSpec((None, S, D), lambda b: (b, 0, 0)),
        compiler_params=pltpu.CompilerParams(
            dimension_semantics=("parallel",), vmem_limit_bytes=_VMEM_LIMIT),
    )(qkv, bias)


def attention_cross(q, kv, bias, num_heads):
    """q: (B, Sq, D); kv: (B, Sk, 2D) fused projection; bias: (B, 1|Sq, Sk)."""
    B, Sq, D = q.shape
    Sk = kv.shape[1]
    Bq = bias.shape[1]
    scale = 1.0 / math.sqrt(D // num_heads)
    return pl.pallas_call(
        functools.partial(_cross_attn_kernel, num_heads=num_heads, scale=scale),
        grid=(B,),
        out_shape=jax.ShapeDtypeStruct((B, Sq, D), jnp.bfloat16),
        in_specs=[
            pl.BlockSpec((None, Sq, D), lambda b: (b, 0, 0)),
            pl.BlockSpec((None, Sk, 2 * D), lambda b: (b, 0, 0)),
            pl.BlockSpec((None, Bq, Sk), lambda b: (b, 0, 0)),
        ],
        out_specs=pl.BlockSpec((None, Sq, D), lambda b: (b, 0, 0)),
        compiler_params=pltpu.CompilerParams(
            dimension_semantics=("parallel",), vmem_limit_bytes=_VMEM_LIMIT),
    )(q, kv, bias)


# ----------------------------------------------------------------------------
# Model glue
# ----------------------------------------------------------------------------
def mask_to_bias(mask, Sq, Sk):
    """{0,1} mask (B,1,1,Sk) or (B,1,Sq,Sk) -> compact additive bf16 bias:
    (B,1,Sk) for key-padding masks (broadcast over queries in-kernel), else
    (B,Sq,Sk). Computed once, shared across layers and heads."""
    m = mask.astype(jnp.float32)
    B = m.shape[0]
    neg = (m - 1.0) * 1e9
    if m.shape[-2] == 1:
        return neg.reshape(B, 1, Sk).astype(jnp.bfloat16)
    neg = jnp.broadcast_to(neg.reshape(B, m.shape[-2], Sk), (B, Sq, Sk))
    return neg.astype(jnp.bfloat16)


def ll_model_forward(params, encoder_input, decoder_input, encoder_mask,
                     decoder_mask, num_heads, vocab_size):
    d_model = params["embed"].shape[1]
    emb_scale = math.sqrt(d_model)
    B, Ss = encoder_input.shape
    _, St = decoder_input.shape

    enc_self_bias = mask_to_bias(encoder_mask, Ss, Ss)
    cross_bias = mask_to_bias(encoder_mask, St, Ss)
    dec_self_bias = mask_to_bias(decoder_mask, St, St)

    # ---------------- encoder ----------------
    x = jnp.take(params["embed"], encoder_input, axis=0) * emb_scale
    x = (x + params["pe"][:Ss]).astype(jnp.bfloat16)
    # dropout omitted: eval-mode (identity) forward
    for blk in params["enc_blocks"]:
        sa = blk["self_attn"]
        qkv = linear(x, sa["w_qkv"], sa["b_qkv"])            # fused QKV, no split
        a = attention_self(qkv, enc_self_bias, num_heads)
        x = linear_add_ln(a, sa["wo"], sa["bo"], x, blk["ln1_g"], blk["ln1_b"])
        x = feed_forward_ln(x, blk["w1"], blk["b1"], blk["w2"], blk["b2"],
                            blk["ln2_g"], blk["ln2_b"])
    memory = x

    # ---------------- decoder ----------------
    y = jnp.take(params["embed"], decoder_input, axis=0) * emb_scale
    y = (y + params["pe"][:St]).astype(jnp.bfloat16)
    for blk in params["dec_blocks"]:
        sa = blk["self_attn"]
        qkv = linear(y, sa["w_qkv"], sa["b_qkv"])            # fused QKV, no split
        a = attention_self(qkv, dec_self_bias, num_heads)
        y = linear_add_ln(a, sa["wo"], sa["bo"], y, blk["ln1_g"], blk["ln1_b"])

        ca = blk["cross_attn"]
        qc = linear(y, ca["wq"], ca["bq"])
        kvc = linear(memory, ca["w_kv"], ca["b_kv"])         # fused KV, no split
        c = attention_cross(qc, kvc, cross_bias, num_heads)
        y = linear_add_ln(c, ca["wo"], ca["bo"], y, blk["ln2_g"], blk["ln2_b"])

        y = feed_forward_ln(y, blk["w1"], blk["b1"], blk["w2"], blk["b2"],
                            blk["ln3_g"], blk["ln3_b"])

    # final projection to (padded) vocabulary logits, f32; slice off padding
    logits = linear(y, params["out_w"], params["out_b"], out_dtype=jnp.float32)
    return logits[..., :vocab_size]


# ----------------------------------------------------------------------------
# Deterministic parameter initialization (xavier_uniform for dim>1, zeros/ones
# for biases and layer-norm params). Matmul weights stored in bf16; the vocab
# projection is zero-padded to a multiple of 128 lanes.
# ----------------------------------------------------------------------------
def xavier_uniform(key, shape, dtype=jnp.bfloat16):
    fan_in, fan_out = shape[0], shape[1]
    limit = math.sqrt(6.0 / (fan_in + fan_out))
    return jax.random.uniform(key, shape, jnp.float32, -limit, limit).astype(dtype)


def positional_encoding(max_len, d_model):
    pos = np.arange(max_len)[:, None].astype(np.float64)
    i = np.arange(0, d_model, 2)[None, :].astype(np.float64)
    angle = pos / np.power(10000.0, i / d_model)
    pe = np.zeros((max_len, d_model), np.float32)
    pe[:, 0::2] = np.sin(angle)
    pe[:, 1::2] = np.cos(angle)
    return jnp.asarray(pe)


def init_self_attn(key, d_model):
    kq, kk, kv, ko = jax.random.split(key, 4)
    w_qkv = jnp.concatenate([xavier_uniform(kq, (d_model, d_model)),
                             xavier_uniform(kk, (d_model, d_model)),
                             xavier_uniform(kv, (d_model, d_model))], axis=1)
    return {"w_qkv": w_qkv,
            "b_qkv": jnp.zeros((3 * d_model,), jnp.float32),
            "wo": xavier_uniform(ko, (d_model, d_model)),
            "bo": jnp.zeros((d_model,), jnp.float32)}


def init_cross_attn(key, d_model):
    kq, kk, kv, ko = jax.random.split(key, 4)
    w_kv = jnp.concatenate([xavier_uniform(kk, (d_model, d_model)),
                            xavier_uniform(kv, (d_model, d_model))], axis=1)
    return {"wq": xavier_uniform(kq, (d_model, d_model)),
            "bq": jnp.zeros((d_model,), jnp.float32),
            "w_kv": w_kv,
            "b_kv": jnp.zeros((2 * d_model,), jnp.float32),
            "wo": xavier_uniform(ko, (d_model, d_model)),
            "bo": jnp.zeros((d_model,), jnp.float32)}


def _ln(d):
    return jnp.ones((d,), jnp.float32), jnp.zeros((d,), jnp.float32)


def init_encoder_block(key, d_model, d_ff):
    k1, k2, k3 = jax.random.split(key, 3)
    g1, b1 = _ln(d_model)
    g2, b2 = _ln(d_model)
    return {
        "self_attn": init_self_attn(k1, d_model),
        "ln1_g": g1, "ln1_b": b1,
        "w1": xavier_uniform(k2, (d_model, d_ff)),
        "b1": jnp.zeros((d_ff,), jnp.float32),
        "w2": xavier_uniform(k3, (d_ff, d_model)),
        "b2": jnp.zeros((d_model,), jnp.float32),
        "ln2_g": g2, "ln2_b": b2,
    }


def init_decoder_block(key, d_model, d_ff):
    k1, k2, k3, k4 = jax.random.split(key, 4)
    g1, b1 = _ln(d_model)
    g2, b2 = _ln(d_model)
    g3, b3 = _ln(d_model)
    return {
        "self_attn": init_self_attn(k1, d_model),
        "cross_attn": init_cross_attn(k2, d_model),
        "ln1_g": g1, "ln1_b": b1,
        "ln2_g": g2, "ln2_b": b2,
        "w1": xavier_uniform(k3, (d_model, d_ff)),
        "b1": jnp.zeros((d_ff,), jnp.float32),
        "w2": xavier_uniform(k4, (d_ff, d_model)),
        "b2": jnp.zeros((d_model,), jnp.float32),
        "ln3_g": g3, "ln3_b": b3,
    }


def init_ll_model(key, source_vocab_size, max_len, d_ff, d_model, num_blocks):
    keys = jax.random.split(key, 2 * num_blocks + 2)
    vocab_pad = _round_up(source_vocab_size, 128)
    out_w = xavier_uniform(keys[-1], (d_model, source_vocab_size), jnp.float32)
    out_w = jnp.pad(out_w, ((0, 0), (0, vocab_pad - source_vocab_size)))
    return {
        "embed": xavier_uniform(keys[0], (source_vocab_size, d_model),
                                jnp.float32),
        "pe": positional_encoding(max_len, d_model),
        "enc_blocks": [init_encoder_block(keys[1 + i], d_model, d_ff)
                       for i in range(num_blocks)],
        "dec_blocks": [init_decoder_block(keys[1 + num_blocks + i], d_model, d_ff)
                       for i in range(num_blocks)],
        "out_w": out_w.astype(jnp.bfloat16),
        "out_b": jnp.zeros((vocab_pad,), jnp.float32),
    }


# ----------------------------------------------------------------------------
if __name__ == "__main__":
    # small shapes consistent with the module
    source_vocab_size = 50
    max_len = 16
    d_ff = 64
    d_model = 32
    num_heads = 4
    num_blocks = 2
    B, S_src, S_tgt = 2, 8, 8

    root = jax.random.PRNGKey(0)
    k_par, k_enc, k_dec = jax.random.split(root, 3)

    params = init_ll_model(k_par, source_vocab_size, max_len, d_ff, d_model,
                           num_blocks)

    encoder_input = jax.random.randint(k_enc, (B, S_src), 0, source_vocab_size,
                                       dtype=jnp.int32)
    decoder_input = jax.random.randint(k_dec, (B, S_tgt), 0, source_vocab_size,
                                       dtype=jnp.int32)
    encoder_mask = jnp.ones((B, 1, 1, S_src), jnp.float32)          # pad mask (all valid)
    causal = jnp.tril(jnp.ones((S_tgt, S_tgt), jnp.float32))[None, None]
    decoder_mask = jnp.broadcast_to(causal, (B, 1, S_tgt, S_tgt))   # causal mask

    fwd = jax.jit(functools.partial(ll_model_forward, num_heads=num_heads,
                                    vocab_size=source_vocab_size))
    logits = fwd(params, encoder_input, decoder_input, encoder_mask, decoder_mask)
    jax.block_until_ready(logits)

    assert logits.shape == (B, S_tgt, source_vocab_size)
    assert logits.dtype == jnp.float32
    assert bool(jnp.all(jnp.isfinite(logits)))
    print("KERNEL_OK")
</pallas_src>

<mosaic_0001>
module attributes {stable_mosaic.version = 11 : i64} {
  func.func @_linear_kernel(%arg0: i32, %arg1: i32, %arg2: i32, %arg3: memref<16x32xbf16, #tpu.memory_space<vmem>>, %arg4: memref<32x96xbf16, #tpu.memory_space<vmem>>, %arg5: memref<1x96xf32, #tpu.memory_space<vmem>>, %arg6: memref<16x96xbf16, #tpu.memory_space<vmem>>, %arg7: memref<16x96xf32, #tpu.memory_space<vmem>>) attributes {dimension_semantics = [#tpu.dimension_semantics<parallel>, #tpu.dimension_semantics<parallel>, #tpu.dimension_semantics<arbitrary>], iteration_bounds = array<i64: 1, 1, 1>, scalar_prefetch = 0 : i64, scratch_operands = 1 : i64, tpu.core_type = #tpu.core_type<tc>, window_params = [{transform_indices = @transform_0, window_bounds = array<i64: 16, 32>}, {transform_indices = @transform_1, window_bounds = array<i64: 32, 96>}, {transform_indices = @transform_2, window_bounds = array<i64: 1, 96>}, {transform_indices = @transform_3, window_bounds = array<i64: 16, 96>}]} {
    %c0_i32 = arith.constant 0 : i32
    %0 = arith.cmpi eq, %arg2, %c0_i32 : i32
    %1 = arith.extui %0 : i1 to i32
    %c0_i32_0 = arith.constant 0 : i32
    %2 = arith.cmpi ne, %1, %c0_i32_0 : i32
    scf.if %2 {
      %cst_10 = arith.constant 0.000000e+00 : f32
      %12 = vector.broadcast %cst_10 : f32 to vector<16x96xf32>
      %c0_11 = arith.constant 0 : index
      %c0_12 = arith.constant 0 : index
      %13 = vector.load %arg7[%c0_11, %c0_12] : memref<16x96xf32, #tpu.memory_space<vmem>>, vector<16x96xf32>
      tpu.vector_store %arg7[%c0_11, %c0_12], %12 {strides = array<i32>} : memref<16x96xf32, #tpu.memory_space<vmem>>, vector<16x96xf32>,
    } else {
    }
    %c0 = arith.constant 0 : index
    %c0_1 = arith.constant 0 : index
    %3 = vector.load %arg7[%c0, %c0_1] : memref<16x96xf32, #tpu.memory_space<vmem>>, vector<16x96xf32>
    %c0_2 = arith.constant 0 : index
    %c0_3 = arith.constant 0 : index
    %4 = vector.load %arg3[%c0_2, %c0_3] : memref<16x32xbf16, #tpu.memory_space<vmem>>, vector<16x32xbf16>
    %c0_4 = arith.constant 0 : index
    %c0_5 = arith.constant 0 : index
    %5 = vector.load %arg4[%c0_4, %c0_5] : memref<32x96xbf16, #tpu.memory_space<vmem>>, vector<32x96xbf16>
    %cst = arith.constant dense<0.000000e+00> : vector<16x96xf32>
    %6 = tpu.matmul %4, %5, %cst {dimension_numbers = #tpu.dot_dimension_numbers<[1], [0], [0], [1], [0, 0, 1, 1], [], []>} : vector<16x32xbf16>, vector<32x96xbf16>, vector<16x96xf32> -> vector<16x96xf32>
    %7 = arith.addf %3, %6 : vector<16x96xf32>
    %c0_6 = arith.constant 0 : index
    %c0_7 = arith.constant 0 : index
    %8 = vector.load %arg7[%c0_6, %c0_7] : memref<16x96xf32, #tpu.memory_space<vmem>>, vector<16x96xf32>
    tpu.vector_store %arg7[%c0_6, %c0_7], %7 {strides = array<i32>} : memref<16x96xf32, #tpu.memory_space<vmem>>, vector<16x96xf32>,
    %c0_i32_8 = arith.constant 0 : i32
    %9 = arith.cmpi eq, %arg2, %c0_i32_8 : i32
    %10 = arith.extui %9 : i1 to i32
    %c0_i32_9 = arith.constant 0 : i32
    %11 = arith.cmpi ne, %10, %c0_i32_9 : i32
    scf.if %11 {
      %c0_10 = arith.constant 0 : index
      %c0_11 = arith.constant 0 : index
      %12 = vector.load %arg7[%c0_10, %c0_11] : memref<16x96xf32, #tpu.memory_space<vmem>>, vector<16x96xf32>
      %c0_12 = arith.constant 0 : index
      %c0_13 = arith.constant 0 : index
      %13 = vector.load %arg5[%c0_12, %c0_13] : memref<1x96xf32, #tpu.memory_space<vmem>>, vector<1x96xf32>
      %14 = vector.broadcast %13 : vector<1x96xf32> to vector<16x96xf32>
      %15 = arith.addf %12, %14 : vector<16x96xf32>
      %16 = arith.truncf %15 : vector<16x96xf32> to vector<16x96xbf16>
      %c0_14 = arith.constant 0 : index
      %c0_15 = arith.constant 0 : index
      %17 = vector.load %arg6[%c0_14, %c0_15] : memref<16x96xbf16, #tpu.memory_space<vmem>>, vector<16x96xbf16>
      tpu.vector_store %arg6[%c0_14, %c0_15], %16 {strides = array<i32>} : memref<16x96xbf16, #tpu.memory_space<vmem>>, vector<16x96xbf16>,
    } else {
    }
    return
  }
  func.func @transform_0(%arg0: i32, %arg1: i32, %arg2: i32) -> (i32, i32) {
    %c0_i32 = arith.constant 0 : i32
    return %arg0, %arg2 : i32, i32
  }
  func.func @transform_1(%arg0: i32, %arg1: i32, %arg2: i32) -> (i32, i32) {
    %c0_i32 = arith.constant 0 : i32
    return %arg2, %arg1 : i32, i32
  }
  func.func @transform_2(%arg0: i32, %arg1: i32, %arg2: i32) -> (i32, i32) {
    %c0_i32 = arith.constant 0 : i32
    %c0_i32_0 = arith.constant 0 : i32
    return %c0_i32, %arg1 : i32, i32
  }
  func.func @transform_3(%arg0: i32, %arg1: i32, %arg2: i32) -> (i32, i32) {
    %c0_i32 = arith.constant 0 : i32
    return %arg0, %arg1 : i32, i32
  }
}

module attributes {stable_mosaic.version = 11 : i64} {
  func.func @_linear_add_ln_kernel(%arg0: i32, %arg1: memref<16x32xbf16, #tpu.memory_space<vmem>>, %arg2: memref<32x32xbf16, #tpu.memory_space<vmem>>, %arg3: memref<1x32xf32, #tpu.memory_space<vmem>>, %arg4: memref<16x32xbf16, #tpu.memory_space<vmem>>, %arg5: memref<1x32xf32, #tpu.memory_space<vmem>>, %arg6: memref<1x32xf32, #tpu.memory_space<vmem>>, %arg7: memref<16x32xbf16, #tpu.memory_space<vmem>>) attributes {dimension_semantics = [#tpu.dimension_semantics<parallel>], iteration_bounds = array<i64: 1>, scalar_prefetch = 0 : i64, scratch_operands = 0 : i64, tpu.core_type = #tpu.core_type<tc>, window_params = [{transform_indices = @transform_0, window_bounds = array<i64: 16, 32>}, {pipeline_mode = #tpu.pipeline_mode<synchronous>, transform_indices = @transform_1, window_bounds = array<i64: 32, 32>}, {pipeline_mode = #tpu.pipeline_mode<synchronous>, transform_indices = @transform_2, window_bounds = array<i64: 1, 32>}, {transform_indices = @transform_3, window_bounds = array<i64: 16, 32>}, {pipeline_mode = #tpu.pipeline_mode<synchronous>, transform_indices = @transform_4, window_bounds = array<i64: 1, 32>}, {pipeline_mode = #tpu.pipeline_mode<synchronous>, transform_indices = @transform_5, window_bounds = array<i64: 1, 32>}, {transform_indices = @transform_6, window_bounds = array<i64: 16, 32>}]} {
    %c0 = arith.constant 0 : index
    %c0_0 = arith.constant 0 : index
    %0 = vector.load %arg1[%c0, %c0_0] : memref<16x32xbf16, #tpu.memory_space<vmem>>, vector<16x32xbf16>
    %c0_1 = arith.constant 0 : index
    %c0_2 = arith.constant 0 : index
    %1 = vector.load %arg2[%c0_1, %c0_2] : memref<32x32xbf16, #tpu.memory_space<vmem>>, vector<32x32xbf16>
    %cst = arith.constant dense<0.000000e+00> : vector<16x32xf32>
    %2 = tpu.matmul %0, %1, %cst {dimension_numbers = #tpu.dot_dimension_numbers<[1], [0], [0], [1], [0, 0, 1, 1], [], []>} : vector<16x32xbf16>, vector<32x32xbf16>, vector<16x32xf32> -> vector<16x32xf32>
    %c0_3 = arith.constant 0 : index
    %c0_4 = arith.constant 0 : index
    %3 = vector.load %arg3[%c0_3, %c0_4] : memref<1x32xf32, #tpu.memory_space<vmem>>, vector<1x32xf32>
    %4 = vector.broadcast %3 : vector<1x32xf32> to vector<16x32xf32>
    %5 = arith.addf %2, %4 : vector<16x32xf32>
    %c0_5 = arith.constant 0 : index
    %c0_6 = arith.constant 0 : index
    %6 = vector.load %arg4[%c0_5, %c0_6] : memref<16x32xbf16, #tpu.memory_space<vmem>>, vector<16x32xbf16>
    %7 = arith.extf %6 : vector<16x32xbf16> to vector<16x32xf32>
    %8 = arith.addf %5, %7 : vector<16x32xf32>
    %c0_7 = arith.constant 0 : index
    %c0_8 = arith.constant 0 : index
    %9 = vector.load %arg5[%c0_7, %c0_8] : memref<1x32xf32, #tpu.memory_space<vmem>>, vector<1x32xf32>
    %c0_9 = arith.constant 0 : index
    %c0_10 = arith.constant 0 : index
    %10 = vector.load %arg6[%c0_9, %c0_10] : memref<1x32xf32, #tpu.memory_space<vmem>>, vector<1x32xf32>
    %cst_11 = arith.constant dense<0.000000e+00> : vector<16xf32>
    %11 = vector.multi_reduction <add>, %8, %cst_11 [1] : vector<16x32xf32> to vector<16xf32>
    %12 = vector.shape_cast %11 : vector<16xf32> to vector<16x1xf32>
    %cst_12 = arith.constant 3.200000e+01 : f32
    %13 = vector.broadcast %cst_12 : f32 to vector<16x1xf32>
    %14 = arith.divf %12, %13 : vector<16x1xf32>
    %15 = vector.broadcast %14 : vector<16x1xf32> to vector<16x32xf32>
    %16 = arith.subf %8, %15 : vector<16x32xf32>
    %17 = arith.mulf %16, %16 : vector<16x32xf32>
    %cst_13 = arith.constant dense<0.000000e+00> : vector<16xf32>
    %18 = vector.multi_reduction <add>, %17, %cst_13 [1] : vector<16x32xf32> to vector<16xf32>
    %19 = vector.shape_cast %18 : vector<16xf32> to vector<16x1xf32>
    %cst_14 = arith.constant 3.200000e+01 : f32
    %20 = vector.broadcast %cst_14 : f32 to vector<16x1xf32>
    %21 = arith.divf %19, %20 : vector<16x1xf32>
    %22 = vector.broadcast %14 : vector<16x1xf32> to vector<16x32xf32>
    %23 = arith.subf %8, %22 : vector<16x32xf32>
    %cst_15 = arith.constant 9.99999974E-6 : f32
    %24 = vector.broadcast %cst_15 : f32 to vector<16x1xf32>
    %25 = arith.addf %21, %24 : vector<16x1xf32>
    %26 = math.rsqrt %25 : vector<16x1xf32>
    %27 = vector.broadcast %26 : vector<16x1xf32> to vector<16x32xf32>
    %28 = arith.mulf %23, %27 : vector<16x32xf32>
    %29 = vector.broadcast %9 : vector<1x32xf32> to vector<16x32xf32>
    %30 = arith.mulf %28, %29 : vector<16x32xf32>
    %31 = vector.broadcast %10 : vector<1x32xf32> to vector<16x32xf32>
    %32 = arith.addf %30, %31 : vector<16x32xf32>
    %33 = arith.truncf %32 : vector<16x32xf32> to vector<16x32xbf16>
    %c0_16 = arith.constant 0 : index
    %c0_17 = arith.constant 0 : index
    %34 = vector.load %arg7[%c0_16, %c0_17] : memref<16x32xbf16, #tpu.memory_space<vmem>>, vector<16x32xbf16>
    tpu.vector_store %arg7[%c0_16, %c0_17], %33 {strides = array<i32>} : memref<16x32xbf16, #tpu.memory_space<vmem>>, vector<16x32xbf16>,
    return
  }
  func.func @transform_0(%arg0: i32) -> (i32, i32) {
    %c0_i32 = arith.constant 0 : i32
    %c0_i32_0 = arith.constant 0 : i32
    return %arg0, %c0_i32 : i32, i32
  }
  func.func @transform_1(%arg0: i32) -> (i32, i32) {
    %c0_i32 = arith.constant 0 : i32
    %c0_i32_0 = arith.constant 0 : i32
    %c0_i32_1 = arith.constant 0 : i32
    return %c0_i32, %c0_i32_0 : i32, i32
  }
  func.func @transform_2(%arg0: i32) -> (i32, i32) {
    %c0_i32 = arith.constant 0 : i32
    %c0_i32_0 = arith.constant 0 : i32
    %c0_i32_1 = arith.constant 0 : i32
    return %c0_i32, %c0_i32_0 : i32, i32
  }
  func.func @transform_3(%arg0: i32) -> (i32, i32) {
    %c0_i32 = arith.constant 0 : i32
    %c0_i32_0 = arith.constant 0 : i32
    return %arg0, %c0_i32 : i32, i32
  }
  func.func @transform_4(%arg0: i32) -> (i32, i32) {
    %c0_i32 = arith.constant 0 : i32
    %c0_i32_0 = arith.constant 0 : i32
    %c0_i32_1 = arith.constant 0 : i32
    return %c0_i32, %c0_i32_0 : i32, i32
  }
  func.func @transform_5(%arg0: i32) -> (i32, i32) {
    %c0_i32 = arith.constant 0 : i32
    %c0_i32_0 = arith.constant 0 : i32
    %c0_i32_1 = arith.constant 0 : i32
    return %c0_i32, %c0_i32_0 : i32, i32
  }
  func.func @transform_6(%arg0: i32) -> (i32, i32) {
    %c0_i32 = arith.constant 0 : i32
    %c0_i32_0 = arith.constant 0 : i32
    return %arg0, %c0_i32 : i32, i32
  }
}

module attributes {stable_mosaic.version = 11 : i64} {
  func.func @_self_attn_kernel(%arg0: i32, %arg1: memref<1x8x96xbf16, #tpu.memory_space<vmem>>, %arg2: memref<1x1x8xbf16, #tpu.memory_space<vmem>>, %arg3: memref<1x8x32xbf16, #tpu.memory_space<vmem>>) attributes {dimension_semantics = [#tpu.dimension_semantics<parallel>], iteration_bounds = array<i64: 2>, scalar_prefetch = 0 : i64, scratch_operands = 0 : i64, tpu.core_type = #tpu.core_type<tc>, window_params = [{transform_indices = @transform_0, window_bounds = array<i64: 1, 8, 96>}, {transform_indices = @transform_1, window_bounds = array<i64: 1, 1, 8>}, {transform_indices = @transform_2, window_bounds = array<i64: 1, 8, 32>}]} {
    %c0 = arith.constant 0 : index
    %c0_0 = arith.constant 0 : index
    %c0_1 = arith.constant 0 : index
    %0 = vector.load %arg1[%c0, %c0_0, %c0_1] : memref<1x8x96xbf16, #tpu.memory_space<vmem>>, vector<1x8x32xbf16>
    %1 = vector.shape_cast %0 : vector<1x8x32xbf16> to vector<8x32xbf16>
    %c0_2 = arith.constant 0 : index
    %c0_3 = arith.constant 0 : index
    %c32 = arith.constant 32 : index
    %2 = vector.load %arg1[%c0_2, %c0_3, %c32] : memref<1x8x96xbf16, #tpu.memory_space<vmem>>, vector<1x8x32xbf16>
    %3 = vector.shape_cast %2 : vector<1x8x32xbf16> to vector<8x32xbf16>
    %c0_4 = arith.constant 0 : index
    %c0_5 = arith.constant 0 : index
    %c64 = arith.constant 64 : index
    %4 = vector.load %arg1[%c0_4, %c0_5, %c64] : memref<1x8x96xbf16, #tpu.memory_space<vmem>>, vector<1x8x32xbf16>
    %5 = vector.shape_cast %4 : vector<1x8x32xbf16> to vector<8x32xbf16>
    %c0_6 = arith.constant 0 : index
    %c0_7 = arith.constant 0 : index
    %c0_8 = arith.constant 0 : index
    %6 = vector.load %arg2[%c0_6, %c0_7, %c0_8] : memref<1x1x8xbf16, #tpu.memory_space<vmem>>, vector<1x1x8xbf16>
    %7 = vector.shape_cast %6 : vector<1x1x8xbf16> to vector<1x8xbf16>
    %8 = arith.extf %7 : vector<1x8xbf16> to vector<1x8xf32>
    %9 = vector.extract_strided_slice %1 {offsets = [0, 0], sizes = [8, 8], strides = [1, 1]} : vector<8x32xbf16> to vector<8x8xbf16>
    %cst = arith.constant 3.535160e-01 : bf16
    %10 = vector.broadcast %cst : bf16 to vector<8x8xbf16>
    %11 = arith.mulf %9, %10 : vector<8x8xbf16>
    %12 = vector.extract_strided_slice %3 {offsets = [0, 0], sizes = [8, 8], strides = [1, 1]} : vector<8x32xbf16> to vector<8x8xbf16>
    %13 = vector.extract_strided_slice %5 {offsets = [0, 0], sizes = [8, 8], strides = [1, 1]} : vector<8x32xbf16> to vector<8x8xbf16>
    %cst_9 = arith.constant dense<0.000000e+00> : vector<8x8xf32>
    %14 = tpu.matmul %11, %12, %cst_9 {dimension_numbers = #tpu.dot_dimension_numbers<[1], [1], [0], [0], [0, 0, 1, 0], [], []>} : vector<8x8xbf16>, vector<8x8xbf16>, vector<8x8xf32> -> vector<8x8xf32>
    %15 = vector.broadcast %8 : vector<1x8xf32> to vector<8x8xf32>
    %16 = arith.addf %14, %15 : vector<8x8xf32>
    %cst_10 = arith.constant dense<0xFF800000> : vector<8xf32>
    %17 = vector.multi_reduction <maximumf>, %16, %cst_10 [1] : vector<8x8xf32> to vector<8xf32>
    %18 = vector.shape_cast %17 : vector<8xf32> to vector<8x1xf32>
    %19 = vector.broadcast %18 : vector<8x1xf32> to vector<8x8xf32>
    %20 = arith.subf %16, %19 : vector<8x8xf32>
    %21 = math.exp %20 : vector<8x8xf32>
    %cst_11 = arith.constant dense<0.000000e+00> : vector<8xf32>
    %22 = vector.multi_reduction <add>, %21, %cst_11 [1] : vector<8x8xf32> to vector<8xf32>
    %23 = vector.shape_cast %22 : vector<8xf32> to vector<8x1xf32>
    %24 = tpu.reciprocal %23 {approx = true} : vector<8x1xf32> -> vector<8x1xf32>
    %25 = arith.truncf %21 : vector<8x8xf32> to vector<8x8xbf16>
    %cst_12 = arith.constant dense<0.000000e+00> : vector<8x8xf32>
    %26 = tpu.matmul %25, %13, %cst_12 {dimension_numbers = #tpu.dot_dimension_numbers<[1], [0], [0], [1], [0, 0, 1, 1], [], []>} : vector<8x8xbf16>, vector<8x8xbf16>, vector<8x8xf32> -> vector<8x8xf32>
    %27 = vector.broadcast %24 : vector<8x1xf32> to vector<8x8xf32>
    %28 = arith.mulf %26, %27 : vector<8x8xf32>
    %29 = arith.truncf %28 : vector<8x8xf32> to vector<8x8xbf16>
    %c0_13 = arith.constant 0 : index
    %c0_14 = arith.constant 0 : index
    %c0_15 = arith.constant 0 : index
    %30 = vector.load %arg3[%c0_13, %c0_14, %c0_15] : memref<1x8x32xbf16, #tpu.memory_space<vmem>>, vector<1x8x8xbf16>
    %31 = vector.shape_cast %30 : vector<1x8x8xbf16> to vector<8x8xbf16>
    %32 = vector.shape_cast %29 : vector<8x8xbf16> to vector<1x8x8xbf16>
    tpu.vector_store %arg3[%c0_13, %c0_14, %c0_15], %32 {strides = array<i32>} : memref<1x8x32xbf16, #tpu.memory_space<vmem>>, vector<1x8x8xbf16>,
    %33 = vector.extract_strided_slice %1 {offsets = [0, 8], sizes = [8, 8], strides = [1, 1]} : vector<8x32xbf16> to vector<8x8xbf16>
    %cst_16 = arith.constant 3.535160e-01 : bf16
    %34 = vector.broadcast %cst_16 : bf16 to vector<8x8xbf16>
    %35 = arith.mulf %33, %34 : vector<8x8xbf16>
    %36 = vector.extract_strided_slice %3 {offsets = [0, 8], sizes = [8, 8], strides = [1, 1]} : vector<8x32xbf16> to vector<8x8xbf16>
    %37 = vector.extract_strided_slice %5 {offsets = [0, 8], sizes = [8, 8], strides = [1, 1]} : vector<8x32xbf16> to vector<8x8xbf16>
    %cst_17 = arith.constant dense<0.000000e+00> : vector<8x8xf32>
    %38 = tpu.matmul %35, %36, %cst_17 {dimension_numbers = #tpu.dot_dimension_numbers<[1], [1], [0], [0], [0, 0, 1, 0], [], []>} : vector<8x8xbf16>, vector<8x8xbf16>, vector<8x8xf32> -> vector<8x8xf32>
    %39 = vector.broadcast %8 : vector<1x8xf32> to vector<8x8xf32>
    %40 = arith.addf %38, %39 : vector<8x8xf32>
    %cst_18 = arith.constant dense<0xFF800000> : vector<8xf32>
    %41 = vector.multi_reduction <maximumf>, %40, %cst_18 [1] : vector<8x8xf32> to vector<8xf32>
    %42 = vector.shape_cast %41 : vector<8xf32> to vector<8x1xf32>
    %43 = vector.broadcast %42 : vector<8x1xf32> to vector<8x8xf32>
    %44 = arith.subf %40, %43 : vector<8x8xf32>
    %45 = math.exp %44 : vector<8x8xf32>
    %cst_19 = arith.constant dense<0.000000e+00> : vector<8xf32>
    %46 = vector.multi_reduction <add>, %45, %cst_19 [1] : vector<8x8xf32> to vector<8xf32>
    %47 = vector.shape_cast %46 : vector<8xf32> to vector<8x1xf32>
    %48 = tpu.reciprocal %47 {approx = true} : vector<8x1xf32> -> vector<8x1xf32>
    %49 = arith.truncf %45 : vector<8x8xf32> to vector<8x8xbf16>
    %cst_20 = arith.constant dense<0.000000e+00> : vector<8x8xf32>
    %50 = tpu.matmul %49, %37, %cst_20 {dimension_numbers = #tpu.dot_dimension_numbers<[1], [0], [0], [1], [0, 0, 1, 1], [], []>} : vector<8x8xbf16>, vector<8x8xbf16>, vector<8x8xf32> -> vector<8x8xf32>
    %51 = vector.broadcast %48 : vector<8x1xf32> to vector<8x8xf32>
    %52 = arith.mulf %50, %51 : vector<8x8xf32>
    %53 = arith.truncf %52 : vector<8x8xf32> to vector<8x8xbf16>
    %c0_21 = arith.constant 0 : index
    %c0_22 = arith.constant 0 : index
    %c8 = arith.constant 8 : index
    %54 = vector.load %arg3[%c0_21, %c0_22, %c8] : memref<1x8x32xbf16, #tpu.memory_space<vmem>>, vector<1x8x8xbf16>
    %55 = vector.shape_cast %54 : vector<1x8x8xbf16> to vector<8x8xbf16>
    %56 = vector.shape_cast %53 : vector<8x8xbf16> to vector<1x8x8xbf16>
    tpu.vector_store %arg3[%c0_21, %c0_22, %c8], %56 {strides = array<i32>} : memref<1x8x32xbf16, #tpu.memory_space<vmem>>, vector<1x8x8xbf16>,
    %57 = vector.extract_strided_slice %1 {offsets = [0, 16], sizes = [8, 8], strides = [1, 1]} : vector<8x32xbf16> to vector<8x8xbf16>
    %cst_23 = arith.constant 3.535160e-01 : bf16
    %58 = vector.broadcast %cst_23 : bf16 to vector<8x8xbf16>
    %59 = arith.mulf %57, %58 : vector<8x8xbf16>
    %60 = vector.extract_strided_slice %3 {offsets = [0, 16], sizes = [8, 8], strides = [1, 1]} : vector<8x32xbf16> to vector<8x8xbf16>
    %61 = vector.extract_strided_slice %5 {offsets = [0, 16], sizes = [8, 8], strides = [1, 1]} : vector<8x32xbf16> to vector<8x8xbf16>
    %cst_24 = arith.constant dense<0.000000e+00> : vector<8x8xf32>
    %62 = tpu.matmul %59, %60, %cst_24 {dimension_numbers = #tpu.dot_dimension_numbers<[1], [1], [0], [0], [0, 0, 1, 0], [], []>} : vector<8x8xbf16>, vector<8x8xbf16>, vector<8x8xf32> -> vector<8x8xf32>
    %63 = vector.broadcast %8 : vector<1x8xf32> to vector<8x8xf32>
    %64 = arith.addf %62, %63 : vector<8x8xf32>
    %cst_25 = arith.constant dense<0xFF800000> : vector<8xf32>
    %65 = vector.multi_reduction <maximumf>, %64, %cst_25 [1] : vector<8x8xf32> to vector<8xf32>
    %66 = vector.shape_cast %65 : vector<8xf32> to vector<8x1xf32>
    %67 = vector.broadcast %66 : vector<8x1xf32> to vector<8x8xf32>
    %68 = arith.subf %64, %67 : vector<8x8xf32>
    %69 = math.exp %68 : vector<8x8xf32>
    %cst_26 = arith.constant dense<0.000000e+00> : vector<8xf32>
    %70 = vector.multi_reduction <add>, %69, %cst_26 [1] : vector<8x8xf32> to vector<8xf32>
    %71 = vector.shape_cast %70 : vector<8xf32> to vector<8x1xf32>
    %72 = tpu.reciprocal %71 {approx = true} : vector<8x1xf32> -> vector<8x1xf32>
    %73 = arith.truncf %69 : vector<8x8xf32> to vector<8x8xbf16>
    %cst_27 = arith.constant dense<0.000000e+00> : vector<8x8xf32>
    %74 = tpu.matmul %73, %61, %cst_27 {dimension_numbers = #tpu.dot_dimension_numbers<[1], [0], [0], [1], [0, 0, 1, 1], [], []>} : vector<8x8xbf16>, vector<8x8xbf16>, vector<8x8xf32> -> vector<8x8xf32>
    %75 = vector.broadcast %72 : vector<8x1xf32> to vector<8x8xf32>
    %76 = arith.mulf %74, %75 : vector<8x8xf32>
    %77 = arith.truncf %76 : vector<8x8xf32> to vector<8x8xbf16>
    %c0_28 = arith.constant 0 : index
    %c0_29 = arith.constant 0 : index
    %c16 = arith.constant 16 : index
    %78 = vector.load %arg3[%c0_28, %c0_29, %c16] : memref<1x8x32xbf16, #tpu.memory_space<vmem>>, vector<1x8x8xbf16>
    %79 = vector.shape_cast %78 : vector<1x8x8xbf16> to vector<8x8xbf16>
    %80 = vector.shape_cast %77 : vector<8x8xbf16> to vector<1x8x8xbf16>
    tpu.vector_store %arg3[%c0_28, %c0_29, %c16], %80 {strides = array<i32>} : memref<1x8x32xbf16, #tpu.memory_space<vmem>>, vector<1x8x8xbf16>,
    %81 = vector.extract_strided_slice %1 {offsets = [0, 24], sizes = [8, 8], strides = [1, 1]} : vector<8x32xbf16> to vector<8x8xbf16>
    %cst_30 = arith.constant 3.535160e-01 : bf16
    %82 = vector.broadcast %cst_30 : bf16 to vector<8x8xbf16>
    %83 = arith.mulf %81, %82 : vector<8x8xbf16>
    %84 = vector.extract_strided_slice %3 {offsets = [0, 24], sizes = [8, 8], strides = [1, 1]} : vector<8x32xbf16> to vector<8x8xbf16>
    %85 = vector.extract_strided_slice %5 {offsets = [0, 24], sizes = [8, 8], strides = [1, 1]} : vector<8x32xbf16> to vector<8x8xbf16>
    %cst_31 = arith.constant dense<0.000000e+00> : vector<8x8xf32>
    %86 = tpu.matmul %83, %84, %cst_31 {dimension_numbers = #tpu.dot_dimension_numbers<[1], [1], [0], [0], [0, 0, 1, 0], [], []>} : vector<8x8xbf16>, vector<8x8xbf16>, vector<8x8xf32> -> vector<8x8xf32>
    %87 = vector.broadcast %8 : vector<1x8xf32> to vector<8x8xf32>
    %88 = arith.addf %86, %87 : vector<8x8xf32>
    %cst_32 = arith.constant dense<0xFF800000> : vector<8xf32>
    %89 = vector.multi_reduction <maximumf>, %88, %cst_32 [1] : vector<8x8xf32> to vector<8xf32>
    %90 = vector.shape_cast %89 : vector<8xf32> to vector<8x1xf32>
    %91 = vector.broadcast %90 : vector<8x1xf32> to vector<8x8xf32>
    %92 = arith.subf %88, %91 : vector<8x8xf32>
    %93 = math.exp %92 : vector<8x8xf32>
    %cst_33 = arith.constant dense<0.000000e+00> : vector<8xf32>
    %94 = vector.multi_reduction <add>, %93, %cst_33 [1] : vector<8x8xf32> to vector<8xf32>
    %95 = vector.shape_cast %94 : vector<8xf32> to vector<8x1xf32>
    %96 = tpu.reciprocal %95 {approx = true} : vector<8x1xf32> -> vector<8x1xf32>
    %97 = arith.truncf %93 : vector<8x8xf32> to vector<8x8xbf16>
    %cst_34 = arith.constant dense<0.000000e+00> : vector<8x8xf32>
    %98 = tpu.matmul %97, %85, %cst_34 {dimension_numbers = #tpu.dot_dimension_numbers<[1], [0], [0], [1], [0, 0, 1, 1], [], []>} : vector<8x8xbf16>, vector<8x8xbf16>, vector<8x8xf32> -> vector<8x8xf32>
    %99 = vector.broadcast %96 : vector<8x1xf32> to vector<8x8xf32>
    %100 = arith.mulf %98, %99 : vector<8x8xf32>
    %101 = arith.truncf %100 : vector<8x8xf32> to vector<8x8xbf16>
    %c0_35 = arith.constant 0 : index
    %c0_36 = arith.constant 0 : index
    %c24 = arith.constant 24 : index
    %102 = vector.load %arg3[%c0_35, %c0_36, %c24] : memref<1x8x32xbf16, #tpu.memory_space<vmem>>, vector<1x8x8xbf16>
    %103 = vector.shape_cast %102 : vector<1x8x8xbf16> to vector<8x8xbf16>
    %104 = vector.shape_cast %101 : vector<8x8xbf16> to vector<1x8x8xbf16>
    tpu.vector_store %arg3[%c0_35, %c0_36, %c24], %104 {strides = array<i32>} : memref<1x8x32xbf16, #tpu.memory_space<vmem>>, vector<1x8x8xbf16>,
    return
  }
  func.func @transform_0(%arg0: i32) -> (i32, i32, i32) {
    %c0_i32 = arith.constant 0 : i32
    %c0_i32_0 = arith.constant 0 : i32
    %c0_i32_1 = arith.constant 0 : i32
    return %arg0, %c0_i32, %c0_i32_0 : i32, i32, i32
  }
  func.func @transform_1(%arg0: i32) -> (i32, i32, i32) {
    %c0_i32 = arith.constant 0 : i32
    %c0_i32_0 = arith.constant 0 : i32
    %c0_i32_1 = arith.constant 0 : i32
    return %arg0, %c0_i32, %c0_i32_0 : i32, i32, i32
  }
  func.func @transform_2(%arg0: i32) -> (i32, i32, i32) {
    %c0_i32 = arith.constant 0 : i32
    %c0_i32_0 = arith.constant 0 : i32
    %c0_i32_1 = arith.constant 0 : i32
    return %arg0, %c0_i32, %c0_i32_0 : i32, i32, i32
  }
}

module attributes {stable_mosaic.version = 11 : i64} {
  func.func @_ffn_add_ln_kernel(%arg0: i32, %arg1: memref<16x32xbf16, #tpu.memory_space<vmem>>, %arg2: memref<32x64xbf16, #tpu.memory_space<vmem>>, %arg3: memref<1x64xf32, #tpu.memory_space<vmem>>, %arg4: memref<64x32xbf16, #tpu.memory_space<vmem>>, %arg5: memref<1x32xf32, #tpu.memory_space<vmem>>, %arg6: memref<1x32xf32, #tpu.memory_space<vmem>>, %arg7: memref<1x32xf32, #tpu.memory_space<vmem>>, %arg8: memref<16x32xbf16, #tpu.memory_space<vmem>>) attributes {dimension_semantics = [#tpu.dimension_semantics<parallel>], iteration_bounds = array<i64: 1>, scalar_prefetch = 0 : i64, scratch_operands = 0 : i64, tpu.core_type = #tpu.core_type<tc>, window_params = [{transform_indices = @transform_0, window_bounds = array<i64: 16, 32>}, {pipeline_mode = #tpu.pipeline_mode<synchronous>, transform_indices = @transform_1, window_bounds = array<i64: 32, 64>}, {pipeline_mode = #tpu.pipeline_mode<synchronous>, transform_indices = @transform_2, window_bounds = array<i64: 1, 64>}, {pipeline_mode = #tpu.pipeline_mode<synchronous>, transform_indices = @transform_3, window_bounds = array<i64: 64, 32>}, {pipeline_mode = #tpu.pipeline_mode<synchronous>, transform_indices = @transform_4, window_bounds = array<i64: 1, 32>}, {pipeline_mode = #tpu.pipeline_mode<synchronous>, transform_indices = @transform_5, window_bounds = array<i64: 1, 32>}, {pipeline_mode = #tpu.pipeline_mode<synchronous>, transform_indices = @transform_6, window_bounds = array<i64: 1, 32>}, {transform_indices = @transform_7, window_bounds = array<i64: 16, 32>}]} {
    %c0 = arith.constant 0 : index
    %c0_0 = arith.constant 0 : index
    %0 = vector.load %arg1[%c0, %c0_0] : memref<16x32xbf16, #tpu.memory_space<vmem>>, vector<16x32xbf16>
    %c0_1 = arith.constant 0 : index
    %c0_2 = arith.constant 0 : index
    %1 = vector.load %arg2[%c0_1, %c0_2] : memref<32x64xbf16, #tpu.memory_space<vmem>>, vector<32x64xbf16>
    %cst = arith.constant dense<0.000000e+00> : vector<16x64xf32>
    %2 = tpu.matmul %0, %1, %cst {dimension_numbers = #tpu.dot_dimension_numbers<[1], [0], [0], [1], [0, 0, 1, 1], [], []>} : vector<16x32xbf16>, vector<32x64xbf16>, vector<16x64xf32> -> vector<16x64xf32>
    %c0_3 = arith.constant 0 : index
    %c0_4 = arith.constant 0 : index
    %3 = vector.load %arg3[%c0_3, %c0_4] : memref<1x64xf32, #tpu.memory_space<vmem>>, vector<1x64xf32>
    %4 = vector.broadcast %3 : vector<1x64xf32> to vector<16x64xf32>
    %5 = arith.addf %2, %4 : vector<16x64xf32>
    %cst_5 = arith.constant 0.000000e+00 : f32
    %6 = vector.broadcast %cst_5 : f32 to vector<16x64xf32>
    %7 = arith.maximumf %5, %6 : vector<16x64xf32>
    %8 = arith.truncf %7 : vector<16x64xf32> to vector<16x64xbf16>
    %c0_6 = arith.constant 0 : index
    %c0_7 = arith.constant 0 : index
    %9 = vector.load %arg4[%c0_6, %c0_7] : memref<64x32xbf16, #tpu.memory_space<vmem>>, vector<64x32xbf16>
    %cst_8 = arith.constant dense<0.000000e+00> : vector<16x32xf32>
    %10 = tpu.matmul %8, %9, %cst_8 {dimension_numbers = #tpu.dot_dimension_numbers<[1], [0], [0], [1], [0, 0, 1, 1], [], []>} : vector<16x64xbf16>, vector<64x32xbf16>, vector<16x32xf32> -> vector<16x32xf32>
    %c0_9 = arith.constant 0 : index
    %c0_10 = arith.constant 0 : index
    %11 = vector.load %arg5[%c0_9, %c0_10] : memref<1x32xf32, #tpu.memory_space<vmem>>, vector<1x32xf32>
    %12 = vector.broadcast %11 : vector<1x32xf32> to vector<16x32xf32>
    %13 = arith.addf %10, %12 : vector<16x32xf32>
    %c0_11 = arith.constant 0 : index
    %c0_12 = arith.constant 0 : index
    %14 = vector.load %arg1[%c0_11, %c0_12] : memref<16x32xbf16, #tpu.memory_space<vmem>>, vector<16x32xbf16>
    %15 = arith.extf %14 : vector<16x32xbf16> to vector<16x32xf32>
    %16 = arith.addf %13, %15 : vector<16x32xf32>
    %c0_13 = arith.constant 0 : index
    %c0_14 = arith.constant 0 : index
    %17 = vector.load %arg6[%c0_13, %c0_14] : memref<1x32xf32, #tpu.memory_space<vmem>>, vector<1x32xf32>
    %c0_15 = arith.constant 0 : index
    %c0_16 = arith.constant 0 : index
    %18 = vector.load %arg7[%c0_15, %c0_16] : memref<1x32xf32, #tpu.memory_space<vmem>>, vector<1x32xf32>
    %cst_17 = arith.constant dense<0.000000e+00> : vector<16xf32>
    %19 = vector.multi_reduction <add>, %16, %cst_17 [1] : vector<16x32xf32> to vector<16xf32>
    %20 = vector.shape_cast %19 : vector<16xf32> to vector<16x1xf32>
    %cst_18 = arith.constant 3.200000e+01 : f32
    %21 = vector.broadcast %cst_18 : f32 to vector<16x1xf32>
    %22 = arith.divf %20, %21 : vector<16x1xf32>
    %23 = vector.broadcast %22 : vector<16x1xf32> to vector<16x32xf32>
    %24 = arith.subf %16, %23 : vector<16x32xf32>
    %25 = arith.mulf %24, %24 : vector<16x32xf32>
    %cst_19 = arith.constant dense<0.000000e+00> : vector<16xf32>
    %26 = vector.multi_reduction <add>, %25, %cst_19 [1] : vector<16x32xf32> to vector<16xf32>
    %27 = vector.shape_cast %26 : vector<16xf32> to vector<16x1xf32>
    %cst_20 = arith.constant 3.200000e+01 : f32
    %28 = vector.broadcast %cst_20 : f32 to vector<16x1xf32>
    %29 = arith.divf %27, %28 : vector<16x1xf32>
    %30 = vector.broadcast %22 : vector<16x1xf32> to vector<16x32xf32>
    %31 = arith.subf %16, %30 : vector<16x32xf32>
    %cst_21 = arith.constant 9.99999974E-6 : f32
    %32 = vector.broadcast %cst_21 : f32 to vector<16x1xf32>
    %33 = arith.addf %29, %32 : vector<16x1xf32>
    %34 = math.rsqrt %33 : vector<16x1xf32>
    %35 = vector.broadcast %34 : vector<16x1xf32> to vector<16x32xf32>
    %36 = arith.mulf %31, %35 : vector<16x32xf32>
    %37 = vector.broadcast %17 : vector<1x32xf32> to vector<16x32xf32>
    %38 = arith.mulf %36, %37 : vector<16x32xf32>
    %39 = vector.broadcast %18 : vector<1x32xf32> to vector<16x32xf32>
    %40 = arith.addf %38, %39 : vector<16x32xf32>
    %41 = arith.truncf %40 : vector<16x32xf32> to vector<16x32xbf16>
    %c0_22 = arith.constant 0 : index
    %c0_23 = arith.constant 0 : index
    %42 = vector.load %arg8[%c0_22, %c0_23] : memref<16x32xbf16, #tpu.memory_space<vmem>>, vector<16x32xbf16>
    tpu.vector_store %arg8[%c0_22, %c0_23], %41 {strides = array<i32>} : memref<16x32xbf16, #tpu.memory_space<vmem>>, vector<16x32xbf16>,
    return
  }
  func.func @transform_0(%arg0: i32) -> (i32, i32) {
    %c0_i32 = arith.constant 0 : i32
    %c0_i32_0 = arith.constant 0 : i32
    return %arg0, %c0_i32 : i32, i32
  }
  func.func @transform_1(%arg0: i32) -> (i32, i32) {
    %c0_i32 = arith.constant 0 : i32
    %c0_i32_0 = arith.constant 0 : i32
    %c0_i32_1 = arith.constant 0 : i32
    return %c0_i32, %c0_i32_0 : i32, i32
  }
  func.func @transform_2(%arg0: i32) -> (i32, i32) {
    %c0_i32 = arith.constant 0 : i32
    %c0_i32_0 = arith.constant 0 : i32
    %c0_i32_1 = arith.constant 0 : i32
    return %c0_i32, %c0_i32_0 : i32, i32
  }
  func.func @transform_3(%arg0: i32) -> (i32, i32) {
    %c0_i32 = arith.constant 0 : i32
    %c0_i32_0 = arith.constant 0 : i32
    %c0_i32_1 = arith.constant 0 : i32
    return %c0_i32, %c0_i32_0 : i32, i32
  }
  func.func @transform_4(%arg0: i32) -> (i32, i32) {
    %c0_i32 = arith.constant 0 : i32
    %c0_i32_0 = arith.constant 0 : i32
    %c0_i32_1 = arith.constant 0 : i32
    return %c0_i32, %c0_i32_0 : i32, i32
  }
  func.func @transform_5(%arg0: i32) -> (i32, i32) {
    %c0_i32 = arith.constant 0 : i32
    %c0_i32_0 = arith.constant 0 : i32
    %c0_i32_1 = arith.constant 0 : i32
    return %c0_i32, %c0_i32_0 : i32, i32
  }
  func.func @transform_6(%arg0: i32) -> (i32, i32) {
    %c0_i32 = arith.constant 0 : i32
    %c0_i32_0 = arith.constant 0 : i32
    %c0_i32_1 = arith.constant 0 : i32
    return %c0_i32, %c0_i32_0 : i32, i32
  }
  func.func @transform_7(%arg0: i32) -> (i32, i32) {
    %c0_i32 = arith.constant 0 : i32
    %c0_i32_0 = arith.constant 0 : i32
    return %arg0, %c0_i32 : i32, i32
  }
}

module attributes {stable_mosaic.version = 11 : i64} {
  func.func @_linear_kernel(%arg0: i32, %arg1: i32, %arg2: i32, %arg3: memref<16x32xbf16, #tpu.memory_space<vmem>>, %arg4: memref<32x64xbf16, #tpu.memory_space<vmem>>, %arg5: memref<1x64xf32, #tpu.memory_space<vmem>>, %arg6: memref<16x64xbf16, #tpu.memory_space<vmem>>, %arg7: memref<16x64xf32, #tpu.memory_space<vmem>>) attributes {dimension_semantics = [#tpu.dimension_semantics<parallel>, #tpu.dimension_semantics<parallel>, #tpu.dimension_semantics<arbitrary>], iteration_bounds = array<i64: 1, 1, 1>, scalar_prefetch = 0 : i64, scratch_operands = 1 : i64, tpu.core_type = #tpu.core_type<tc>, window_params = [{transform_indices = @transform_0, window_bounds = array<i64: 16, 32>}, {transform_indices = @transform_1, window_bounds = array<i64: 32, 64>}, {transform_indices = @transform_2, window_bounds = array<i64: 1, 64>}, {transform_indices = @transform_3, window_bounds = array<i64: 16, 64>}]} {
    %c0_i32 = arith.constant 0 : i32
    %0 = arith.cmpi eq, %arg2, %c0_i32 : i32
    %1 = arith.extui %0 : i1 to i32
    %c0_i32_0 = arith.constant 0 : i32
    %2 = arith.cmpi ne, %1, %c0_i32_0 : i32
    scf.if %2 {
      %cst_10 = arith.constant 0.000000e+00 : f32
      %12 = vector.broadcast %cst_10 : f32 to vector<16x64xf32>
      %c0_11 = arith.constant 0 : index
      %c0_12 = arith.constant 0 : index
      %13 = vector.load %arg7[%c0_11, %c0_12] : memref<16x64xf32, #tpu.memory_space<vmem>>, vector<16x64xf32>
      tpu.vector_store %arg7[%c0_11, %c0_12], %12 {strides = array<i32>} : memref<16x64xf32, #tpu.memory_space<vmem>>, vector<16x64xf32>,
    } else {
    }
    %c0 = arith.constant 0 : index
    %c0_1 = arith.constant 0 : index
    %3 = vector.load %arg7[%c0, %c0_1] : memref<16x64xf32, #tpu.memory_space<vmem>>, vector<16x64xf32>
    %c0_2 = arith.constant 0 : index
    %c0_3 = arith.constant 0 : index
    %4 = vector.load %arg3[%c0_2, %c0_3] : memref<16x32xbf16, #tpu.memory_space<vmem>>, vector<16x32xbf16>
    %c0_4 = arith.constant 0 : index
    %c0_5 = arith.constant 0 : index
    %5 = vector.load %arg4[%c0_4, %c0_5] : memref<32x64xbf16, #tpu.memory_space<vmem>>, vector<32x64xbf16>
    %cst = arith.constant dense<0.000000e+00> : vector<16x64xf32>
    %6 = tpu.matmul %4, %5, %cst {dimension_numbers = #tpu.dot_dimension_numbers<[1], [0], [0], [1], [0, 0, 1, 1], [], []>} : vector<16x32xbf16>, vector<32x64xbf16>, vector<16x64xf32> -> vector<16x64xf32>
    %7 = arith.addf %3, %6 : vector<16x64xf32>
    %c0_6 = arith.constant 0 : index
    %c0_7 = arith.constant 0 : index
    %8 = vector.load %arg7[%c0_6, %c0_7] : memref<16x64xf32, #tpu.memory_space<vmem>>, vector<16x64xf32>
    tpu.vector_store %arg7[%c0_6, %c0_7], %7 {strides = array<i32>} : memref<16x64xf32, #tpu.memory_space<vmem>>, vector<16x64xf32>,
    %c0_i32_8 = arith.constant 0 : i32
    %9 = arith.cmpi eq, %arg2, %c0_i32_8 : i32
    %10 = arith.extui %9 : i1 to i32
    %c0_i32_9 = arith.constant 0 : i32
    %11 = arith.cmpi ne, %10, %c0_i32_9 : i32
    scf.if %11 {
      %c0_10 = arith.constant 0 : index
      %c0_11 = arith.constant 0 : index
      %12 = vector.load %arg7[%c0_10, %c0_11] : memref<16x64xf32, #tpu.memory_space<vmem>>, vector<16x64xf32>
      %c0_12 = arith.constant 0 : index
      %c0_13 = arith.constant 0 : index
      %13 = vector.load %arg5[%c0_12, %c0_13] : memref<1x64xf32, #tpu.memory_space<vmem>>, vector<1x64xf32>
      %14 = vector.broadcast %13 : vector<1x64xf32> to vector<16x64xf32>
      %15 = arith.addf %12, %14 : vector<16x64xf32>
      %16 = arith.truncf %15 : vector<16x64xf32> to vector<16x64xbf16>
      %c0_14 = arith.constant 0 : index
      %c0_15 = arith.constant 0 : index
      %17 = vector.load %arg6[%c0_14, %c0_15] : memref<16x64xbf16, #tpu.memory_space<vmem>>, vector<16x64xbf16>
      tpu.vector_store %arg6[%c0_14, %c0_15], %16 {strides = array<i32>} : memref<16x64xbf16, #tpu.memory_space<vmem>>, vector<16x64xbf16>,
    } else {
    }
    return
  }
  func.func @transform_0(%arg0: i32, %arg1: i32, %arg2: i32) -> (i32, i32) {
    %c0_i32 = arith.constant 0 : i32
    return %arg0, %arg2 : i32, i32
  }
  func.func @transform_1(%arg0: i32, %arg1: i32, %arg2: i32) -> (i32, i32) {
    %c0_i32 = arith.constant 0 : i32
    return %arg2, %arg1 : i32, i32
  }
  func.func @transform_2(%arg0: i32, %arg1: i32, %arg2: i32) -> (i32, i32) {
    %c0_i32 = arith.constant 0 : i32
    %c0_i32_0 = arith.constant 0 : i32
    return %c0_i32, %arg1 : i32, i32
  }
  func.func @transform_3(%arg0: i32, %arg1: i32, %arg2: i32) -> (i32, i32) {
    %c0_i32 = arith.constant 0 : i32
    return %arg0, %arg1 : i32, i32
  }
}

module attributes {stable_mosaic.version = 11 : i64} {
  func.func @_self_attn_kernel(%arg0: i32, %arg1: memref<1x8x96xbf16, #tpu.memory_space<vmem>>, %arg2: memref<1x8x8xbf16, #tpu.memory_space<vmem>>, %arg3: memref<1x8x32xbf16, #tpu.memory_space<vmem>>) attributes {dimension_semantics = [#tpu.dimension_semantics<parallel>], iteration_bounds = array<i64: 2>, scalar_prefetch = 0 : i64, scratch_operands = 0 : i64, tpu.core_type = #tpu.core_type<tc>, window_params = [{transform_indices = @transform_0, window_bounds = array<i64: 1, 8, 96>}, {transform_indices = @transform_1, window_bounds = array<i64: 1, 8, 8>}, {transform_indices = @transform_2, window_bounds = array<i64: 1, 8, 32>}]} {
    %c0 = arith.constant 0 : index
    %c0_0 = arith.constant 0 : index
    %c0_1 = arith.constant 0 : index
    %0 = vector.load %arg1[%c0, %c0_0, %c0_1] : memref<1x8x96xbf16, #tpu.memory_space<vmem>>, vector<1x8x32xbf16>
    %1 = vector.shape_cast %0 : vector<1x8x32xbf16> to vector<8x32xbf16>
    %c0_2 = arith.constant 0 : index
    %c0_3 = arith.constant 0 : index
    %c32 = arith.constant 32 : index
    %2 = vector.load %arg1[%c0_2, %c0_3, %c32] : memref<1x8x96xbf16, #tpu.memory_space<vmem>>, vector<1x8x32xbf16>
    %3 = vector.shape_cast %2 : vector<1x8x32xbf16> to vector<8x32xbf16>
    %c0_4 = arith.constant 0 : index
    %c0_5 = arith.constant 0 : index
    %c64 = arith.constant 64 : index
    %4 = vector.load %arg1[%c0_4, %c0_5, %c64] : memref<1x8x96xbf16, #tpu.memory_space<vmem>>, vector<1x8x32xbf16>
    %5 = vector.shape_cast %4 : vector<1x8x32xbf16> to vector<8x32xbf16>
    %c0_6 = arith.constant 0 : index
    %c0_7 = arith.constant 0 : index
    %c0_8 = arith.constant 0 : index
    %6 = vector.load %arg2[%c0_6, %c0_7, %c0_8] : memref<1x8x8xbf16, #tpu.memory_space<vmem>>, vector<1x8x8xbf16>
    %7 = vector.shape_cast %6 : vector<1x8x8xbf16> to vector<8x8xbf16>
    %8 = arith.extf %7 : vector<8x8xbf16> to vector<8x8xf32>
    %9 = vector.extract_strided_slice %1 {offsets = [0, 0], sizes = [8, 8], strides = [1, 1]} : vector<8x32xbf16> to vector<8x8xbf16>
    %cst = arith.constant 3.535160e-01 : bf16
    %10 = vector.broadcast %cst : bf16 to vector<8x8xbf16>
    %11 = arith.mulf %9, %10 : vector<8x8xbf16>
    %12 = vector.extract_strided_slice %3 {offsets = [0, 0], sizes = [8, 8], strides = [1, 1]} : vector<8x32xbf16> to vector<8x8xbf16>
    %13 = vector.extract_strided_slice %5 {offsets = [0, 0], sizes = [8, 8], strides = [1, 1]} : vector<8x32xbf16> to vector<8x8xbf16>
    %cst_9 = arith.constant dense<0.000000e+00> : vector<8x8xf32>
    %14 = tpu.matmul %11, %12, %cst_9 {dimension_numbers = #tpu.dot_dimension_numbers<[1], [1], [0], [0], [0, 0, 1, 0], [], []>} : vector<8x8xbf16>, vector<8x8xbf16>, vector<8x8xf32> -> vector<8x8xf32>
    %15 = arith.addf %14, %8 : vector<8x8xf32>
    %cst_10 = arith.constant dense<0xFF800000> : vector<8xf32>
    %16 = vector.multi_reduction <maximumf>, %15, %cst_10 [1] : vector<8x8xf32> to vector<8xf32>
    %17 = vector.shape_cast %16 : vector<8xf32> to vector<8x1xf32>
    %18 = vector.broadcast %17 : vector<8x1xf32> to vector<8x8xf32>
    %19 = arith.subf %15, %18 : vector<8x8xf32>
    %20 = math.exp %19 : vector<8x8xf32>
    %cst_11 = arith.constant dense<0.000000e+00> : vector<8xf32>
    %21 = vector.multi_reduction <add>, %20, %cst_11 [1] : vector<8x8xf32> to vector<8xf32>
    %22 = vector.shape_cast %21 : vector<8xf32> to vector<8x1xf32>
    %23 = tpu.reciprocal %22 {approx = true} : vector<8x1xf32> -> vector<8x1xf32>
    %24 = arith.truncf %20 : vector<8x8xf32> to vector<8x8xbf16>
    %cst_12 = arith.constant dense<0.000000e+00> : vector<8x8xf32>
    %25 = tpu.matmul %24, %13, %cst_12 {dimension_numbers = #tpu.dot_dimension_numbers<[1], [0], [0], [1], [0, 0, 1, 1], [], []>} : vector<8x8xbf16>, vector<8x8xbf16>, vector<8x8xf32> -> vector<8x8xf32>
    %26 = vector.broadcast %23 : vector<8x1xf32> to vector<8x8xf32>
    %27 = arith.mulf %25, %26 : vector<8x8xf32>
    %28 = arith.truncf %27 : vector<8x8xf32> to vector<8x8xbf16>
    %c0_13 = arith.constant 0 : index
    %c0_14 = arith.constant 0 : index
    %c0_15 = arith.constant 0 : index
    %29 = vector.load %arg3[%c0_13, %c0_14, %c0_15] : memref<1x8x32xbf16, #tpu.memory_space<vmem>>, vector<1x8x8xbf16>
    %30 = vector.shape_cast %29 : vector<1x8x8xbf16> to vector<8x8xbf16>
    %31 = vector.shape_cast %28 : vector<8x8xbf16> to vector<1x8x8xbf16>
    tpu.vector_store %arg3[%c0_13, %c0_14, %c0_15], %31 {strides = array<i32>} : memref<1x8x32xbf16, #tpu.memory_space<vmem>>, vector<1x8x8xbf16>,
    %32 = vector.extract_strided_slice %1 {offsets = [0, 8], sizes = [8, 8], strides = [1, 1]} : vector<8x32xbf16> to vector<8x8xbf16>
    %cst_16 = arith.constant 3.535160e-01 : bf16
    %33 = vector.broadcast %cst_16 : bf16 to vector<8x8xbf16>
    %34 = arith.mulf %32, %33 : vector<8x8xbf16>
    %35 = vector.extract_strided_slice %3 {offsets = [0, 8], sizes = [8, 8], strides = [1, 1]} : vector<8x32xbf16> to vector<8x8xbf16>
    %36 = vector.extract_strided_slice %5 {offsets = [0, 8], sizes = [8, 8], strides = [1, 1]} : vector<8x32xbf16> to vector<8x8xbf16>
    %cst_17 = arith.constant dense<0.000000e+00> : vector<8x8xf32>
    %37 = tpu.matmul %34, %35, %cst_17 {dimension_numbers = #tpu.dot_dimension_numbers<[1], [1], [0], [0], [0, 0, 1, 0], [], []>} : vector<8x8xbf16>, vector<8x8xbf16>, vector<8x8xf32> -> vector<8x8xf32>
    %38 = arith.addf %37, %8 : vector<8x8xf32>
    %cst_18 = arith.constant dense<0xFF800000> : vector<8xf32>
    %39 = vector.multi_reduction <maximumf>, %38, %cst_18 [1] : vector<8x8xf32> to vector<8xf32>
    %40 = vector.shape_cast %39 : vector<8xf32> to vector<8x1xf32>
    %41 = vector.broadcast %40 : vector<8x1xf32> to vector<8x8xf32>
    %42 = arith.subf %38, %41 : vector<8x8xf32>
    %43 = math.exp %42 : vector<8x8xf32>
    %cst_19 = arith.constant dense<0.000000e+00> : vector<8xf32>
    %44 = vector.multi_reduction <add>, %43, %cst_19 [1] : vector<8x8xf32> to vector<8xf32>
    %45 = vector.shape_cast %44 : vector<8xf32> to vector<8x1xf32>
    %46 = tpu.reciprocal %45 {approx = true} : vector<8x1xf32> -> vector<8x1xf32>
    %47 = arith.truncf %43 : vector<8x8xf32> to vector<8x8xbf16>
    %cst_20 = arith.constant dense<0.000000e+00> : vector<8x8xf32>
    %48 = tpu.matmul %47, %36, %cst_20 {dimension_numbers = #tpu.dot_dimension_numbers<[1], [0], [0], [1], [0, 0, 1, 1], [], []>} : vector<8x8xbf16>, vector<8x8xbf16>, vector<8x8xf32> -> vector<8x8xf32>
    %49 = vector.broadcast %46 : vector<8x1xf32> to vector<8x8xf32>
    %50 = arith.mulf %48, %49 : vector<8x8xf32>
    %51 = arith.truncf %50 : vector<8x8xf32> to vector<8x8xbf16>
    %c0_21 = arith.constant 0 : index
    %c0_22 = arith.constant 0 : index
    %c8 = arith.constant 8 : index
    %52 = vector.load %arg3[%c0_21, %c0_22, %c8] : memref<1x8x32xbf16, #tpu.memory_space<vmem>>, vector<1x8x8xbf16>
    %53 = vector.shape_cast %52 : vector<1x8x8xbf16> to vector<8x8xbf16>
    %54 = vector.shape_cast %51 : vector<8x8xbf16> to vector<1x8x8xbf16>
    tpu.vector_store %arg3[%c0_21, %c0_22, %c8], %54 {strides = array<i32>} : memref<1x8x32xbf16, #tpu.memory_space<vmem>>, vector<1x8x8xbf16>,
    %55 = vector.extract_strided_slice %1 {offsets = [0, 16], sizes = [8, 8], strides = [1, 1]} : vector<8x32xbf16> to vector<8x8xbf16>
    %cst_23 = arith.constant 3.535160e-01 : bf16
    %56 = vector.broadcast %cst_23 : bf16 to vector<8x8xbf16>
    %57 = arith.mulf %55, %56 : vector<8x8xbf16>
    %58 = vector.extract_strided_slice %3 {offsets = [0, 16], sizes = [8, 8], strides = [1, 1]} : vector<8x32xbf16> to vector<8x8xbf16>
    %59 = vector.extract_strided_slice %5 {offsets = [0, 16], sizes = [8, 8], strides = [1, 1]} : vector<8x32xbf16> to vector<8x8xbf16>
    %cst_24 = arith.constant dense<0.000000e+00> : vector<8x8xf32>
    %60 = tpu.matmul %57, %58, %cst_24 {dimension_numbers = #tpu.dot_dimension_numbers<[1], [1], [0], [0], [0, 0, 1, 0], [], []>} : vector<8x8xbf16>, vector<8x8xbf16>, vector<8x8xf32> -> vector<8x8xf32>
    %61 = arith.addf %60, %8 : vector<8x8xf32>
    %cst_25 = arith.constant dense<0xFF800000> : vector<8xf32>
    %62 = vector.multi_reduction <maximumf>, %61, %cst_25 [1] : vector<8x8xf32> to vector<8xf32>
    %63 = vector.shape_cast %62 : vector<8xf32> to vector<8x1xf32>
    %64 = vector.broadcast %63 : vector<8x1xf32> to vector<8x8xf32>
    %65 = arith.subf %61, %64 : vector<8x8xf32>
    %66 = math.exp %65 : vector<8x8xf32>
    %cst_26 = arith.constant dense<0.000000e+00> : vector<8xf32>
    %67 = vector.multi_reduction <add>, %66, %cst_26 [1] : vector<8x8xf32> to vector<8xf32>
    %68 = vector.shape_cast %67 : vector<8xf32> to vector<8x1xf32>
    %69 = tpu.reciprocal %68 {approx = true} : vector<8x1xf32> -> vector<8x1xf32>
    %70 = arith.truncf %66 : vector<8x8xf32> to vector<8x8xbf16>
    %cst_27 = arith.constant dense<0.000000e+00> : vector<8x8xf32>
    %71 = tpu.matmul %70, %59, %cst_27 {dimension_numbers = #tpu.dot_dimension_numbers<[1], [0], [0], [1], [0, 0, 1, 1], [], []>} : vector<8x8xbf16>, vector<8x8xbf16>, vector<8x8xf32> -> vector<8x8xf32>
    %72 = vector.broadcast %69 : vector<8x1xf32> to vector<8x8xf32>
    %73 = arith.mulf %71, %72 : vector<8x8xf32>
    %74 = arith.truncf %73 : vector<8x8xf32> to vector<8x8xbf16>
    %c0_28 = arith.constant 0 : index
    %c0_29 = arith.constant 0 : index
    %c16 = arith.constant 16 : index
    %75 = vector.load %arg3[%c0_28, %c0_29, %c16] : memref<1x8x32xbf16, #tpu.memory_space<vmem>>, vector<1x8x8xbf16>
    %76 = vector.shape_cast %75 : vector<1x8x8xbf16> to vector<8x8xbf16>
    %77 = vector.shape_cast %74 : vector<8x8xbf16> to vector<1x8x8xbf16>
    tpu.vector_store %arg3[%c0_28, %c0_29, %c16], %77 {strides = array<i32>} : memref<1x8x32xbf16, #tpu.memory_space<vmem>>, vector<1x8x8xbf16>,
    %78 = vector.extract_strided_slice %1 {offsets = [0, 24], sizes = [8, 8], strides = [1, 1]} : vector<8x32xbf16> to vector<8x8xbf16>
    %cst_30 = arith.constant 3.535160e-01 : bf16
    %79 = vector.broadcast %cst_30 : bf16 to vector<8x8xbf16>
    %80 = arith.mulf %78, %79 : vector<8x8xbf16>
    %81 = vector.extract_strided_slice %3 {offsets = [0, 24], sizes = [8, 8], strides = [1, 1]} : vector<8x32xbf16> to vector<8x8xbf16>
    %82 = vector.extract_strided_slice %5 {offsets = [0, 24], sizes = [8, 8], strides = [1, 1]} : vector<8x32xbf16> to vector<8x8xbf16>
    %cst_31 = arith.constant dense<0.000000e+00> : vector<8x8xf32>
    %83 = tpu.matmul %80, %81, %cst_31 {dimension_numbers = #tpu.dot_dimension_numbers<[1], [1], [0], [0], [0, 0, 1, 0], [], []>} : vector<8x8xbf16>, vector<8x8xbf16>, vector<8x8xf32> -> vector<8x8xf32>
    %84 = arith.addf %83, %8 : vector<8x8xf32>
    %cst_32 = arith.constant dense<0xFF800000> : vector<8xf32>
    %85 = vector.multi_reduction <maximumf>, %84, %cst_32 [1] : vector<8x8xf32> to vector<8xf32>
    %86 = vector.shape_cast %85 : vector<8xf32> to vector<8x1xf32>
    %87 = vector.broadcast %86 : vector<8x1xf32> to vector<8x8xf32>
    %88 = arith.subf %84, %87 : vector<8x8xf32>
    %89 = math.exp %88 : vector<8x8xf32>
    %cst_33 = arith.constant dense<0.000000e+00> : vector<8xf32>
    %90 = vector.multi_reduction <add>, %89, %cst_33 [1] : vector<8x8xf32> to vector<8xf32>
    %91 = vector.shape_cast %90 : vector<8xf32> to vector<8x1xf32>
    %92 = tpu.reciprocal %91 {approx = true} : vector<8x1xf32> -> vector<8x1xf32>
    %93 = arith.truncf %89 : vector<8x8xf32> to vector<8x8xbf16>
    %cst_34 = arith.constant dense<0.000000e+00> : vector<8x8xf32>
    %94 = tpu.matmul %93, %82, %cst_34 {dimension_numbers = #tpu.dot_dimension_numbers<[1], [0], [0], [1], [0, 0, 1, 1], [], []>} : vector<8x8xbf16>, vector<8x8xbf16>, vector<8x8xf32> -> vector<8x8xf32>
    %95 = vector.broadcast %92 : vector<8x1xf32> to vector<8x8xf32>
    %96 = arith.mulf %94, %95 : vector<8x8xf32>
    %97 = arith.truncf %96 : vector<8x8xf32> to vector<8x8xbf16>
    %c0_35 = arith.constant 0 : index
    %c0_36 = arith.constant 0 : index
    %c24 = arith.constant 24 : index
    %98 = vector.load %arg3[%c0_35, %c0_36, %c24] : memref<1x8x32xbf16, #tpu.memory_space<vmem>>, vector<1x8x8xbf16>
    %99 = vector.shape_cast %98 : vector<1x8x8xbf16> to vector<8x8xbf16>
    %100 = vector.shape_cast %97 : vector<8x8xbf16> to vector<1x8x8xbf16>
    tpu.vector_store %arg3[%c0_35, %c0_36, %c24], %100 {strides = array<i32>} : memref<1x8x32xbf16, #tpu.memory_space<vmem>>, vector<1x8x8xbf16>,
    return
  }
  func.func @transform_0(%arg0: i32) -> (i32, i32, i32) {
    %c0_i32 = arith.constant 0 : i32
    %c0_i32_0 = arith.constant 0 : i32
    %c0_i32_1 = arith.constant 0 : i32
    return %arg0, %c0_i32, %c0_i32_0 : i32, i32, i32
  }
  func.func @transform_1(%arg0: i32) -> (i32, i32, i32) {
    %c0_i32 = arith.constant 0 : i32
    %c0_i32_0 = arith.constant 0 : i32
    %c0_i32_1 = arith.constant 0 : i32
    return %arg0, %c0_i32, %c0_i32_0 : i32, i32, i32
  }
  func.func @transform_2(%arg0: i32) -> (i32, i32, i32) {
    %c0_i32 = arith.constant 0 : i32
    %c0_i32_0 = arith.constant 0 : i32
    %c0_i32_1 = arith.constant 0 : i32
    return %arg0, %c0_i32, %c0_i32_0 : i32, i32, i32
  }
}

module attributes {stable_mosaic.version = 11 : i64} {
  func.func @_linear_kernel(%arg0: i32, %arg1: i32, %arg2: i32, %arg3: memref<16x32xbf16, #tpu.memory_space<vmem>>, %arg4: memref<32x32xbf16, #tpu.memory_space<vmem>>, %arg5: memref<1x32xf32, #tpu.memory_space<vmem>>, %arg6: memref<16x32xbf16, #tpu.memory_space<vmem>>, %arg7: memref<16x32xf32, #tpu.memory_space<vmem>>) attributes {dimension_semantics = [#tpu.dimension_semantics<parallel>, #tpu.dimension_semantics<parallel>, #tpu.dimension_semantics<arbitrary>], iteration_bounds = array<i64: 1, 1, 1>, scalar_prefetch = 0 : i64, scratch_operands = 1 : i64, tpu.core_type = #tpu.core_type<tc>, window_params = [{transform_indices = @transform_0, window_bounds = array<i64: 16, 32>}, {transform_indices = @transform_1, window_bounds = array<i64: 32, 32>}, {transform_indices = @transform_2, window_bounds = array<i64: 1, 32>}, {transform_indices = @transform_3, window_bounds = array<i64: 16, 32>}]} {
    %c0_i32 = arith.constant 0 : i32
    %0 = arith.cmpi eq, %arg2, %c0_i32 : i32
    %1 = arith.extui %0 : i1 to i32
    %c0_i32_0 = arith.constant 0 : i32
    %2 = arith.cmpi ne, %1, %c0_i32_0 : i32
    scf.if %2 {
      %cst_10 = arith.constant 0.000000e+00 : f32
      %12 = vector.broadcast %cst_10 : f32 to vector<16x32xf32>
      %c0_11 = arith.constant 0 : index
      %c0_12 = arith.constant 0 : index
      %13 = vector.load %arg7[%c0_11, %c0_12] : memref<16x32xf32, #tpu.memory_space<vmem>>, vector<16x32xf32>
      tpu.vector_store %arg7[%c0_11, %c0_12], %12 {strides = array<i32>} : memref<16x32xf32, #tpu.memory_space<vmem>>, vector<16x32xf32>,
    } else {
    }
    %c0 = arith.constant 0 : index
    %c0_1 = arith.constant 0 : index
    %3 = vector.load %arg7[%c0, %c0_1] : memref<16x32xf32, #tpu.memory_space<vmem>>, vector<16x32xf32>
    %c0_2 = arith.constant 0 : index
    %c0_3 = arith.constant 0 : index
    %4 = vector.load %arg3[%c0_2, %c0_3] : memref<16x32xbf16, #tpu.memory_space<vmem>>, vector<16x32xbf16>
    %c0_4 = arith.constant 0 : index
    %c0_5 = arith.constant 0 : index
    %5 = vector.load %arg4[%c0_4, %c0_5] : memref<32x32xbf16, #tpu.memory_space<vmem>>, vector<32x32xbf16>
    %cst = arith.constant dense<0.000000e+00> : vector<16x32xf32>
    %6 = tpu.matmul %4, %5, %cst {dimension_numbers = #tpu.dot_dimension_numbers<[1], [0], [0], [1], [0, 0, 1, 1], [], []>} : vector<16x32xbf16>, vector<32x32xbf16>, vector<16x32xf32> -> vector<16x32xf32>
    %7 = arith.addf %3, %6 : vector<16x32xf32>
    %c0_6 = arith.constant 0 : index
    %c0_7 = arith.constant 0 : index
    %8 = vector.load %arg7[%c0_6, %c0_7] : memref<16x32xf32, #tpu.memory_space<vmem>>, vector<16x32xf32>
    tpu.vector_store %arg7[%c0_6, %c0_7], %7 {strides = array<i32>} : memref<16x32xf32, #tpu.memory_space<vmem>>, vector<16x32xf32>,
    %c0_i32_8 = arith.constant 0 : i32
    %9 = arith.cmpi eq, %arg2, %c0_i32_8 : i32
    %10 = arith.extui %9 : i1 to i32
    %c0_i32_9 = arith.constant 0 : i32
    %11 = arith.cmpi ne, %10, %c0_i32_9 : i32
    scf.if %11 {
      %c0_10 = arith.constant 0 : index
      %c0_11 = arith.constant 0 : index
      %12 = vector.load %arg7[%c0_10, %c0_11] : memref<16x32xf32, #tpu.memory_space<vmem>>, vector<16x32xf32>
      %c0_12 = arith.constant 0 : index
      %c0_13 = arith.constant 0 : index
      %13 = vector.load %arg5[%c0_12, %c0_13] : memref<1x32xf32, #tpu.memory_space<vmem>>, vector<1x32xf32>
      %14 = vector.broadcast %13 : vector<1x32xf32> to vector<16x32xf32>
      %15 = arith.addf %12, %14 : vector<16x32xf32>
      %16 = arith.truncf %15 : vector<16x32xf32> to vector<16x32xbf16>
      %c0_14 = arith.constant 0 : index
      %c0_15 = arith.constant 0 : index
      %17 = vector.load %arg6[%c0_14, %c0_15] : memref<16x32xbf16, #tpu.memory_space<vmem>>, vector<16x32xbf16>
      tpu.vector_store %arg6[%c0_14, %c0_15], %16 {strides = array<i32>} : memref<16x32xbf16, #tpu.memory_space<vmem>>, vector<16x32xbf16>,
    } else {
    }
    return
  }
  func.func @transform_0(%arg0: i32, %arg1: i32, %arg2: i32) -> (i32, i32) {
    %c0_i32 = arith.constant 0 : i32
    return %arg0, %arg2 : i32, i32
  }
  func.func @transform_1(%arg0: i32, %arg1: i32, %arg2: i32) -> (i32, i32) {
    %c0_i32 = arith.constant 0 : i32
    return %arg2, %arg1 : i32, i32
  }
  func.func @transform_2(%arg0: i32, %arg1: i32, %arg2: i32) -> (i32, i32) {
    %c0_i32 = arith.constant 0 : i32
    %c0_i32_0 = arith.constant 0 : i32
    return %c0_i32, %arg1 : i32, i32
  }
  func.func @transform_3(%arg0: i32, %arg1: i32, %arg2: i32) -> (i32, i32) {
    %c0_i32 = arith.constant 0 : i32
    return %arg0, %arg1 : i32, i32
  }
}

module attributes {stable_mosaic.version = 11 : i64} {
  func.func @_cross_attn_kernel(%arg0: i32, %arg1: memref<1x8x32xbf16, #tpu.memory_space<vmem>>, %arg2: memref<1x8x64xbf16, #tpu.memory_space<vmem>>, %arg3: memref<1x1x8xbf16, #tpu.memory_space<vmem>>, %arg4: memref<1x8x32xbf16, #tpu.memory_space<vmem>>) attributes {dimension_semantics = [#tpu.dimension_semantics<parallel>], iteration_bounds = array<i64: 2>, scalar_prefetch = 0 : i64, scratch_operands = 0 : i64, tpu.core_type = #tpu.core_type<tc>, window_params = [{transform_indices = @transform_0, window_bounds = array<i64: 1, 8, 32>}, {transform_indices = @transform_1, window_bounds = array<i64: 1, 8, 64>}, {transform_indices = @transform_2, window_bounds = array<i64: 1, 1, 8>}, {transform_indices = @transform_3, window_bounds = array<i64: 1, 8, 32>}]} {
    %c0 = arith.constant 0 : index
    %c0_0 = arith.constant 0 : index
    %c0_1 = arith.constant 0 : index
    %0 = vector.load %arg1[%c0, %c0_0, %c0_1] : memref<1x8x32xbf16, #tpu.memory_space<vmem>>, vector<1x8x32xbf16>
    %1 = vector.shape_cast %0 : vector<1x8x32xbf16> to vector<8x32xbf16>
    %c0_2 = arith.constant 0 : index
    %c0_3 = arith.constant 0 : index
    %c0_4 = arith.constant 0 : index
    %2 = vector.load %arg2[%c0_2, %c0_3, %c0_4] : memref<1x8x64xbf16, #tpu.memory_space<vmem>>, vector<1x8x32xbf16>
    %3 = vector.shape_cast %2 : vector<1x8x32xbf16> to vector<8x32xbf16>
    %c0_5 = arith.constant 0 : index
    %c0_6 = arith.constant 0 : index
    %c32 = arith.constant 32 : index
    %4 = vector.load %arg2[%c0_5, %c0_6, %c32] : memref<1x8x64xbf16, #tpu.memory_space<vmem>>, vector<1x8x32xbf16>
    %5 = vector.shape_cast %4 : vector<1x8x32xbf16> to vector<8x32xbf16>
    %c0_7 = arith.constant 0 : index
    %c0_8 = arith.constant 0 : index
    %c0_9 = arith.constant 0 : index
    %6 = vector.load %arg3[%c0_7, %c0_8, %c0_9] : memref<1x1x8xbf16, #tpu.memory_space<vmem>>, vector<1x1x8xbf16>
    %7 = vector.shape_cast %6 : vector<1x1x8xbf16> to vector<1x8xbf16>
    %8 = arith.extf %7 : vector<1x8xbf16> to vector<1x8xf32>
    %9 = vector.extract_strided_slice %1 {offsets = [0, 0], sizes = [8, 8], strides = [1, 1]} : vector<8x32xbf16> to vector<8x8xbf16>
    %cst = arith.constant 3.535160e-01 : bf16
    %10 = vector.broadcast %cst : bf16 to vector<8x8xbf16>
    %11 = arith.mulf %9, %10 : vector<8x8xbf16>
    %12 = vector.extract_strided_slice %3 {offsets = [0, 0], sizes = [8, 8], strides = [1, 1]} : vector<8x32xbf16> to vector<8x8xbf16>
    %13 = vector.extract_strided_slice %5 {offsets = [0, 0], sizes = [8, 8], strides = [1, 1]} : vector<8x32xbf16> to vector<8x8xbf16>
    %cst_10 = arith.constant dense<0.000000e+00> : vector<8x8xf32>
    %14 = tpu.matmul %11, %12, %cst_10 {dimension_numbers = #tpu.dot_dimension_numbers<[1], [1], [0], [0], [0, 0, 1, 0], [], []>} : vector<8x8xbf16>, vector<8x8xbf16>, vector<8x8xf32> -> vector<8x8xf32>
    %15 = vector.broadcast %8 : vector<1x8xf32> to vector<8x8xf32>
    %16 = arith.addf %14, %15 : vector<8x8xf32>
    %cst_11 = arith.constant dense<0xFF800000> : vector<8xf32>
    %17 = vector.multi_reduction <maximumf>, %16, %cst_11 [1] : vector<8x8xf32> to vector<8xf32>
    %18 = vector.shape_cast %17 : vector<8xf32> to vector<8x1xf32>
    %19 = vector.broadcast %18 : vector<8x1xf32> to vector<8x8xf32>
    %20 = arith.subf %16, %19 : vector<8x8xf32>
    %21 = math.exp %20 : vector<8x8xf32>
    %cst_12 = arith.constant dense<0.000000e+00> : vector<8xf32>
    %22 = vector.multi_reduction <add>, %21, %cst_12 [1] : vector<8x8xf32> to vector<8xf32>
    %23 = vector.shape_cast %22 : vector<8xf32> to vector<8x1xf32>
    %24 = tpu.reciprocal %23 {approx = true} : vector<8x1xf32> -> vector<8x1xf32>
    %25 = arith.truncf %21 : vector<8x8xf32> to vector<8x8xbf16>
    %cst_13 = arith.constant dense<0.000000e+00> : vector<8x8xf32>
    %26 = tpu.matmul %25, %13, %cst_13 {dimension_numbers = #tpu.dot_dimension_numbers<[1], [0], [0], [1], [0, 0, 1, 1], [], []>} : vector<8x8xbf16>, vector<8x8xbf16>, vector<8x8xf32> -> vector<8x8xf32>
    %27 = vector.broadcast %24 : vector<8x1xf32> to vector<8x8xf32>
    %28 = arith.mulf %26, %27 : vector<8x8xf32>
    %29 = arith.truncf %28 : vector<8x8xf32> to vector<8x8xbf16>
    %c0_14 = arith.constant 0 : index
    %c0_15 = arith.constant 0 : index
    %c0_16 = arith.constant 0 : index
    %30 = vector.load %arg4[%c0_14, %c0_15, %c0_16] : memref<1x8x32xbf16, #tpu.memory_space<vmem>>, vector<1x8x8xbf16>
    %31 = vector.shape_cast %30 : vector<1x8x8xbf16> to vector<8x8xbf16>
    %32 = vector.shape_cast %29 : vector<8x8xbf16> to vector<1x8x8xbf16>
    tpu.vector_store %arg4[%c0_14, %c0_15, %c0_16], %32 {strides = array<i32>} : memref<1x8x32xbf16, #tpu.memory_space<vmem>>, vector<1x8x8xbf16>,
    %33 = vector.extract_strided_slice %1 {offsets = [0, 8], sizes = [8, 8], strides = [1, 1]} : vector<8x32xbf16> to vector<8x8xbf16>
    %cst_17 = arith.constant 3.535160e-01 : bf16
    %34 = vector.broadcast %cst_17 : bf16 to vector<8x8xbf16>
    %35 = arith.mulf %33, %34 : vector<8x8xbf16>
    %36 = vector.extract_strided_slice %3 {offsets = [0, 8], sizes = [8, 8], strides = [1, 1]} : vector<8x32xbf16> to vector<8x8xbf16>
    %37 = vector.extract_strided_slice %5 {offsets = [0, 8], sizes = [8, 8], strides = [1, 1]} : vector<8x32xbf16> to vector<8x8xbf16>
    %cst_18 = arith.constant dense<0.000000e+00> : vector<8x8xf32>
    %38 = tpu.matmul %35, %36, %cst_18 {dimension_numbers = #tpu.dot_dimension_numbers<[1], [1], [0], [0], [0, 0, 1, 0], [], []>} : vector<8x8xbf16>, vector<8x8xbf16>, vector<8x8xf32> -> vector<8x8xf32>
    %39 = vector.broadcast %8 : vector<1x8xf32> to vector<8x8xf32>
    %40 = arith.addf %38, %39 : vector<8x8xf32>
    %cst_19 = arith.constant dense<0xFF800000> : vector<8xf32>
    %41 = vector.multi_reduction <maximumf>, %40, %cst_19 [1] : vector<8x8xf32> to vector<8xf32>
    %42 = vector.shape_cast %41 : vector<8xf32> to vector<8x1xf32>
    %43 = vector.broadcast %42 : vector<8x1xf32> to vector<8x8xf32>
    %44 = arith.subf %40, %43 : vector<8x8xf32>
    %45 = math.exp %44 : vector<8x8xf32>
    %cst_20 = arith.constant dense<0.000000e+00> : vector<8xf32>
    %46 = vector.multi_reduction <add>, %45, %cst_20 [1] : vector<8x8xf32> to vector<8xf32>
    %47 = vector.shape_cast %46 : vector<8xf32> to vector<8x1xf32>
    %48 = tpu.reciprocal %47 {approx = true} : vector<8x1xf32> -> vector<8x1xf32>
    %49 = arith.truncf %45 : vector<8x8xf32> to vector<8x8xbf16>
    %cst_21 = arith.constant dense<0.000000e+00> : vector<8x8xf32>
    %50 = tpu.matmul %49, %37, %cst_21 {dimension_numbers = #tpu.dot_dimension_numbers<[1], [0], [0], [1], [0, 0, 1, 1], [], []>} : vector<8x8xbf16>, vector<8x8xbf16>, vector<8x8xf32> -> vector<8x8xf32>
    %51 = vector.broadcast %48 : vector<8x1xf32> to vector<8x8xf32>
    %52 = arith.mulf %50, %51 : vector<8x8xf32>
    %53 = arith.truncf %52 : vector<8x8xf32> to vector<8x8xbf16>
    %c0_22 = arith.constant 0 : index
    %c0_23 = arith.constant 0 : index
    %c8 = arith.constant 8 : index
    %54 = vector.load %arg4[%c0_22, %c0_23, %c8] : memref<1x8x32xbf16, #tpu.memory_space<vmem>>, vector<1x8x8xbf16>
    %55 = vector.shape_cast %54 : vector<1x8x8xbf16> to vector<8x8xbf16>
    %56 = vector.shape_cast %53 : vector<8x8xbf16> to vector<1x8x8xbf16>
    tpu.vector_store %arg4[%c0_22, %c0_23, %c8], %56 {strides = array<i32>} : memref<1x8x32xbf16, #tpu.memory_space<vmem>>, vector<1x8x8xbf16>,
    %57 = vector.extract_strided_slice %1 {offsets = [0, 16], sizes = [8, 8], strides = [1, 1]} : vector<8x32xbf16> to vector<8x8xbf16>
    %cst_24 = arith.constant 3.535160e-01 : bf16
    %58 = vector.broadcast %cst_24 : bf16 to vector<8x8xbf16>
    %59 = arith.mulf %57, %58 : vector<8x8xbf16>
    %60 = vector.extract_strided_slice %3 {offsets = [0, 16], sizes = [8, 8], strides = [1, 1]} : vector<8x32xbf16> to vector<8x8xbf16>
    %61 = vector.extract_strided_slice %5 {offsets = [0, 16], sizes = [8, 8], strides = [1, 1]} : vector<8x32xbf16> to vector<8x8xbf16>
    %cst_25 = arith.constant dense<0.000000e+00> : vector<8x8xf32>
    %62 = tpu.matmul %59, %60, %cst_25 {dimension_numbers = #tpu.dot_dimension_numbers<[1], [1], [0], [0], [0, 0, 1, 0], [], []>} : vector<8x8xbf16>, vector<8x8xbf16>, vector<8x8xf32> -> vector<8x8xf32>
    %63 = vector.broadcast %8 : vector<1x8xf32> to vector<8x8xf32>
    %64 = arith.addf %62, %63 : vector<8x8xf32>
    %cst_26 = arith.constant dense<0xFF800000> : vector<8xf32>
    %65 = vector.multi_reduction <maximumf>, %64, %cst_26 [1] : vector<8x8xf32> to vector<8xf32>
    %66 = vector.shape_cast %65 : vector<8xf32> to vector<8x1xf32>
    %67 = vector.broadcast %66 : vector<8x1xf32> to vector<8x8xf32>
    %68 = arith.subf %64, %67 : vector<8x8xf32>
    %69 = math.exp %68 : vector<8x8xf32>
    %cst_27 = arith.constant dense<0.000000e+00> : vector<8xf32>
    %70 = vector.multi_reduction <add>, %69, %cst_27 [1] : vector<8x8xf32> to vector<8xf32>
    %71 = vector.shape_cast %70 : vector<8xf32> to vector<8x1xf32>
    %72 = tpu.reciprocal %71 {approx = true} : vector<8x1xf32> -> vector<8x1xf32>
    %73 = arith.truncf %69 : vector<8x8xf32> to vector<8x8xbf16>
    %cst_28 = arith.constant dense<0.000000e+00> : vector<8x8xf32>
    %74 = tpu.matmul %73, %61, %cst_28 {dimension_numbers = #tpu.dot_dimension_numbers<[1], [0], [0], [1], [0, 0, 1, 1], [], []>} : vector<8x8xbf16>, vector<8x8xbf16>, vector<8x8xf32> -> vector<8x8xf32>
    %75 = vector.broadcast %72 : vector<8x1xf32> to vector<8x8xf32>
    %76 = arith.mulf %74, %75 : vector<8x8xf32>
    %77 = arith.truncf %76 : vector<8x8xf32> to vector<8x8xbf16>
    %c0_29 = arith.constant 0 : index
    %c0_30 = arith.constant 0 : index
    %c16 = arith.constant 16 : index
    %78 = vector.load %arg4[%c0_29, %c0_30, %c16] : memref<1x8x32xbf16, #tpu.memory_space<vmem>>, vector<1x8x8xbf16>
    %79 = vector.shape_cast %78 : vector<1x8x8xbf16> to vector<8x8xbf16>
    %80 = vector.shape_cast %77 : vector<8x8xbf16> to vector<1x8x8xbf16>
    tpu.vector_store %arg4[%c0_29, %c0_30, %c16], %80 {strides = array<i32>} : memref<1x8x32xbf16, #tpu.memory_space<vmem>>, vector<1x8x8xbf16>,
    %81 = vector.extract_strided_slice %1 {offsets = [0, 24], sizes = [8, 8], strides = [1, 1]} : vector<8x32xbf16> to vector<8x8xbf16>
    %cst_31 = arith.constant 3.535160e-01 : bf16
    %82 = vector.broadcast %cst_31 : bf16 to vector<8x8xbf16>
    %83 = arith.mulf %81, %82 : vector<8x8xbf16>
    %84 = vector.extract_strided_slice %3 {offsets = [0, 24], sizes = [8, 8], strides = [1, 1]} : vector<8x32xbf16> to vector<8x8xbf16>
    %85 = vector.extract_strided_slice %5 {offsets = [0, 24], sizes = [8, 8], strides = [1, 1]} : vector<8x32xbf16> to vector<8x8xbf16>
    %cst_32 = arith.constant dense<0.000000e+00> : vector<8x8xf32>
    %86 = tpu.matmul %83, %84, %cst_32 {dimension_numbers = #tpu.dot_dimension_numbers<[1], [1], [0], [0], [0, 0, 1, 0], [], []>} : vector<8x8xbf16>, vector<8x8xbf16>, vector<8x8xf32> -> vector<8x8xf32>
    %87 = vector.broadcast %8 : vector<1x8xf32> to vector<8x8xf32>
    %88 = arith.addf %86, %87 : vector<8x8xf32>
    %cst_33 = arith.constant dense<0xFF800000> : vector<8xf32>
    %89 = vector.multi_reduction <maximumf>, %88, %cst_33 [1] : vector<8x8xf32> to vector<8xf32>
    %90 = vector.shape_cast %89 : vector<8xf32> to vector<8x1xf32>
    %91 = vector.broadcast %90 : vector<8x1xf32> to vector<8x8xf32>
    %92 = arith.subf %88, %91 : vector<8x8xf32>
    %93 = math.exp %92 : vector<8x8xf32>
    %cst_34 = arith.constant dense<0.000000e+00> : vector<8xf32>
    %94 = vector.multi_reduction <add>, %93, %cst_34 [1] : vector<8x8xf32> to vector<8xf32>
    %95 = vector.shape_cast %94 : vector<8xf32> to vector<8x1xf32>
    %96 = tpu.reciprocal %95 {approx = true} : vector<8x1xf32> -> vector<8x1xf32>
    %97 = arith.truncf %93 : vector<8x8xf32> to vector<8x8xbf16>
    %cst_35 = arith.constant dense<0.000000e+00> : vector<8x8xf32>
    %98 = tpu.matmul %97, %85, %cst_35 {dimension_numbers = #tpu.dot_dimension_numbers<[1], [0], [0], [1], [0, 0, 1, 1], [], []>} : vector<8x8xbf16>, vector<8x8xbf16>, vector<8x8xf32> -> vector<8x8xf32>
    %99 = vector.broadcast %96 : vector<8x1xf32> to vector<8x8xf32>
    %100 = arith.mulf %98, %99 : vector<8x8xf32>
    %101 = arith.truncf %100 : vector<8x8xf32> to vector<8x8xbf16>
    %c0_36 = arith.constant 0 : index
    %c0_37 = arith.constant 0 : index
    %c24 = arith.constant 24 : index
    %102 = vector.load %arg4[%c0_36, %c0_37, %c24] : memref<1x8x32xbf16, #tpu.memory_space<vmem>>, vector<1x8x8xbf16>
    %103 = vector.shape_cast %102 : vector<1x8x8xbf16> to vector<8x8xbf16>
    %104 = vector.shape_cast %101 : vector<8x8xbf16> to vector<1x8x8xbf16>
    tpu.vector_store %arg4[%c0_36, %c0_37, %c24], %104 {strides = array<i32>} : memref<1x8x32xbf16, #tpu.memory_space<vmem>>, vector<1x8x8xbf16>,
    return
  }
  func.func @transform_0(%arg0: i32) -> (i32, i32, i32) {
    %c0_i32 = arith.constant 0 : i32
    %c0_i32_0 = arith.constant 0 : i32
    %c0_i32_1 = arith.constant 0 : i32
    return %arg0, %c0_i32, %c0_i32_0 : i32, i32, i32
  }
  func.func @transform_1(%arg0: i32) -> (i32, i32, i32) {
    %c0_i32 = arith.constant 0 : i32
    %c0_i32_0 = arith.constant 0 : i32
    %c0_i32_1 = arith.constant 0 : i32
    return %arg0, %c0_i32, %c0_i32_0 : i32, i32, i32
  }
  func.func @transform_2(%arg0: i32) -> (i32, i32, i32) {
    %c0_i32 = arith.constant 0 : i32
    %c0_i32_0 = arith.constant 0 : i32
    %c0_i32_1 = arith.constant 0 : i32
    return %arg0, %c0_i32, %c0_i32_0 : i32, i32, i32
  }
  func.func @transform_3(%arg0: i32) -> (i32, i32, i32) {
    %c0_i32 = arith.constant 0 : i32
    %c0_i32_0 = arith.constant 0 : i32
    %c0_i32_1 = arith.constant 0 : i32
    return %arg0, %c0_i32, %c0_i32_0 : i32, i32, i32
  }
}

module attributes {stable_mosaic.version = 11 : i64} {
  func.func @_linear_kernel(%arg0: i32, %arg1: i32, %arg2: i32, %arg3: memref<16x32xbf16, #tpu.memory_space<vmem>>, %arg4: memref<32x128xbf16, #tpu.memory_space<vmem>>, %arg5: memref<1x128xf32, #tpu.memory_space<vmem>>, %arg6: memref<16x128xf32, #tpu.memory_space<vmem>>, %arg7: memref<16x128xf32, #tpu.memory_space<vmem>>) attributes {dimension_semantics = [#tpu.dimension_semantics<parallel>, #tpu.dimension_semantics<parallel>, #tpu.dimension_semantics<arbitrary>], iteration_bounds = array<i64: 1, 1, 1>, scalar_prefetch = 0 : i64, scratch_operands = 1 : i64, tpu.core_type = #tpu.core_type<tc>, window_params = [{transform_indices = @transform_0, window_bounds = array<i64: 16, 32>}, {transform_indices = @transform_1, window_bounds = array<i64: 32, 128>}, {transform_indices = @transform_2, window_bounds = array<i64: 1, 128>}, {transform_indices = @transform_3, window_bounds = array<i64: 16, 128>}]} {
    %c0_i32 = arith.constant 0 : i32
    %0 = arith.cmpi eq, %arg2, %c0_i32 : i32
    %1 = arith.extui %0 : i1 to i32
    %c0_i32_0 = arith.constant 0 : i32
    %2 = arith.cmpi ne, %1, %c0_i32_0 : i32
    scf.if %2 {
      %cst_10 = arith.constant 0.000000e+00 : f32
      %12 = vector.broadcast %cst_10 : f32 to vector<16x128xf32>
      %c0_11 = arith.constant 0 : index
      %c0_12 = arith.constant 0 : index
      %13 = vector.load %arg7[%c0_11, %c0_12] : memref<16x128xf32, #tpu.memory_space<vmem>>, vector<16x128xf32>
      tpu.vector_store %arg7[%c0_11, %c0_12], %12 {strides = array<i32>} : memref<16x128xf32, #tpu.memory_space<vmem>>, vector<16x128xf32>,
    } else {
    }
    %c0 = arith.constant 0 : index
    %c0_1 = arith.constant 0 : index
    %3 = vector.load %arg7[%c0, %c0_1] : memref<16x128xf32, #tpu.memory_space<vmem>>, vector<16x128xf32>
    %c0_2 = arith.constant 0 : index
    %c0_3 = arith.constant 0 : index
    %4 = vector.load %arg3[%c0_2, %c0_3] : memref<16x32xbf16, #tpu.memory_space<vmem>>, vector<16x32xbf16>
    %c0_4 = arith.constant 0 : index
    %c0_5 = arith.constant 0 : index
    %5 = vector.load %arg4[%c0_4, %c0_5] : memref<32x128xbf16, #tpu.memory_space<vmem>>, vector<32x128xbf16>
    %cst = arith.constant dense<0.000000e+00> : vector<16x128xf32>
    %6 = tpu.matmul %4, %5, %cst {dimension_numbers = #tpu.dot_dimension_numbers<[1], [0], [0], [1], [0, 0, 1, 1], [], []>} : vector<16x32xbf16>, vector<32x128xbf16>, vector<16x128xf32> -> vector<16x128xf32>
    %7 = arith.addf %3, %6 : vector<16x128xf32>
    %c0_6 = arith.constant 0 : index
    %c0_7 = arith.constant 0 : index
    %8 = vector.load %arg7[%c0_6, %c0_7] : memref<16x128xf32, #tpu.memory_space<vmem>>, vector<16x128xf32>
    tpu.vector_store %arg7[%c0_6, %c0_7], %7 {strides = array<i32>} : memref<16x128xf32, #tpu.memory_space<vmem>>, vector<16x128xf32>,
    %c0_i32_8 = arith.constant 0 : i32
    %9 = arith.cmpi eq, %arg2, %c0_i32_8 : i32
    %10 = arith.extui %9 : i1 to i32
    %c0_i32_9 = arith.constant 0 : i32
    %11 = arith.cmpi ne, %10, %c0_i32_9 : i32
    scf.if %11 {
      %c0_10 = arith.constant 0 : index
      %c0_11 = arith.constant 0 : index
      %12 = vector.load %arg7[%c0_10, %c0_11] : memref<16x128xf32, #tpu.memory_space<vmem>>, vector<16x128xf32>
      %c0_12 = arith.constant 0 : index
      %c0_13 = arith.constant 0 : index
      %13 = vector.load %arg5[%c0_12, %c0_13] : memref<1x128xf32, #tpu.memory_space<vmem>>, vector<1x128xf32>
      %14 = vector.broadcast %13 : vector<1x128xf32> to vector<16x128xf32>
      %15 = arith.addf %12, %14 : vector<16x128xf32>
      %c0_14 = arith.constant 0 : index
      %c0_15 = arith.constant 0 : index
      %16 = vector.load %arg6[%c0_14, %c0_15] : memref<16x128xf32, #tpu.memory_space<vmem>>, vector<16x128xf32>
      tpu.vector_store %arg6[%c0_14, %c0_15], %15 {strides = array<i32>} : memref<16x128xf32, #tpu.memory_space<vmem>>, vector<16x128xf32>,
    } else {
    }
    return
  }
  func.func @transform_0(%arg0: i32, %arg1: i32, %arg2: i32) -> (i32, i32) {
    %c0_i32 = arith.constant 0 : i32
    return %arg0, %arg2 : i32, i32
  }
  func.func @transform_1(%arg0: i32, %arg1: i32, %arg2: i32) -> (i32, i32) {
    %c0_i32 = arith.constant 0 : i32
    return %arg2, %arg1 : i32, i32
  }
  func.func @transform_2(%arg0: i32, %arg1: i32, %arg2: i32) -> (i32, i32) {
    %c0_i32 = arith.constant 0 : i32
    %c0_i32_0 = arith.constant 0 : i32
    return %c0_i32, %arg1 : i32, i32
  }
  func.func @transform_3(%arg0: i32, %arg1: i32, %arg2: i32) -> (i32, i32) {
    %c0_i32 = arith.constant 0 : i32
    return %arg0, %arg1 : i32, i32
  }
}

</mosaic_0001>

<bundles_post_ra>
// kernel: ll_model_forward.27
= control target key start
LH: loop header
LB: loop body
LE: loop exit
PB: predicated region body
PF: predicated region fallthrough
CT: control target
= control target key end

     0   :  { %v200_v0 = vmov 0.0   ;;  %vm201_vm0 = vmmov 0   ;;  %vm54_vm1 = vcmask 261120   ;;  %vm158_vm2 = vcmask 257024   ;;  %s269_s1 = inlined_call_operand.vmem [shape: bf16[32,32], index: 1, kind: input, shape index: {}]   ;;  %s270_s0 = inlined_call_operand.vmem [shape: bf16[16,32], index: 0, kind: input, shape index: {}]   ;;  %s271_s3 = inlined_call_operand.vmem [shape: bf16[16,32], index: 3, kind: input, shape index: {}]   ;;  %s272_s2 = inlined_call_operand.vmem [shape: f32[1,32], index: 2, kind: input, shape index: {}]   ;;  %s273_s4 = inlined_call_operand.vmem [shape: f32[1,32], index: 4, kind: input, shape index: {}]   ;;  %s274_s5 = inlined_call_operand.vmem [shape: f32[1,32], index: 5, kind: input, shape index: {}]   ;;  %s275_s6 = inlined_call_operand.vmem [shape: bf16[16,32], index: 6, kind: output, shape index: {}]  }
   0x1   :  { %183 = vmatprep.subr.bf16.mxu0 %v200_v0  ;;  %v193_v1 = vld [vmem:[%s269_s1] sm:$0xff]   ;;  %187 = vmatprep.mubr.msk.bf16.mxu0 %vm201_vm0, %v200_v0  ;;  %v194_v2 = vld [vmem:[%s269_s1 + $0x8] sm:$0xff]  }
   0x2   :  { %184 = vmatpush3.bf16.msra.mxu0 %v193_v1  ;;  %v195_v3 = vld [vmem:[%s270_s0] sm:$0xff]  }
   0x3   :  { %185 = vmatprep.subr.bf16.mxu0 %v200_v0  ;;  %v177_v4 = vld [vmem:[%s271_s3] sm:$0xff]  }
   0x4   :  { %v165_v5 = vld [vmem:[%s272_s2] ss:$0 sm:$0xff]  ;;  %v178_v6 = vunpack.c.l.bf16 %v177_v4  ;;  %v179_v10 = vunpack.c.h.bf16 %v177_v4 }
   0x5   :  { %v170_v35 = vld [vmem:[%s273_s4] ss:$0 sm:$0xff] }
   0x6   :  { %186 = vmatpush3.bf16.msra.mxu0 %v194_v2  ;;  %v171_v37 = vld [vmem:[%s274_s5] ss:$0 sm:$0xff] }
   0x9   :  { %188 = vmatmul.mubr.msk.bf16.vlgmr.msra.gmra.mrb[0].mxu0 %vm54_vm1, %v195_v3 }
  0xdc   :  { %v92_v7 = vpop.f32.mrb[0].mxu0 }
  0xdd   :  { %v93_v8 = vadd.f32 %v165_v5, %v92_v7  ;;  %v189_v9 = vpop.f32.mrb[1].mxu0 }
  0xde   :  { %v95_v11 = vpop.f32.mrb[2].mxu0 }
  0xdf   :  { %v96_v12 = vadd.f32 %v165_v5, %v95_v11  ;;  %v190_v13 = vpop.f32.mrb[3].mxu0  ;;  %v103_v14 = vadd.f32 %v178_v6, %v93_v8 }
  0xe1   :  { %v107_v15 = vsel %vm54_vm1, %v103_v14, 0.0  ;;  %v104_v16 = vadd.f32 %v179_v10, %v96_v12 }
  0xe2   :  { %108 = vadd.xlane.f32.xlu0 %v107_v15 }
  0xe3   :  { %v110_v17 = vsel %vm54_vm1, %v104_v16, 0.0 }
  0xe6   :  { %111 = vadd.xlane.f32.xlu0 %v110_v17 }
 0x16f   :  { %v109_v18 = vpop.xlane.xlu0 %108 }
 0x170   :  { %v114_v19 = vmul.f32 0.03125, %v109_v18 }
 0x172   :  { %v116_v20 = vsub.f32 %v103_v14, %v114_v19 }
 0x173   :  { %v112_v21 = vpop.xlane.xlu0 %111 }
 0x174   :  { %v115_v22 = vmul.f32 0.03125, %v112_v21  ;;  %v118_v23 = vmul.f32 %v116_v20, %v116_v20 }
 0x176   :  { %v117_v24 = vsub.f32 %v104_v16, %v115_v22  ;;  %v120_v25 = vsel %vm54_vm1, %v118_v23, 0.0 }
 0x177   :  { %121 = vadd.xlane.f32.xlu1 %v120_v25 }
 0x178   :  { %v119_v26 = vmul.f32 %v117_v24, %v117_v24 }
 0x17a   :  { %v123_v27 = vsel %vm54_vm1, %v119_v26, 0.0 }
 0x17b   :  { %124 = vadd.xlane.f32.xlu1 %v123_v27 }
 0x204   :  { %v122_v28 = vpop.xlane.xlu1 %121 }
 0x205   :  { %v126_v29 = vmul.f32 0.03125, %v122_v28 }
 0x207   :  { %v128_v30 = vadd.f32 1e-05, %v126_v29 }
 0x208   :  { %v125_v31 = vpop.xlane.xlu1 %124 }
 0x209   :  { %196 = vrsqrt.f32 %v128_v30  ;;  %v127_v32 = vmul.f32 0.03125, %v125_v31 }
 0x20b   :  { %v129_v33 = vadd.f32 1e-05, %v127_v32 }
 0x20d   :  { %198 = vrsqrt.f32 %v129_v33 }
 0x213   :  { %v197_v34 = vpop.eup %196 }
 0x214   :  { %v132_v36 = vmul.f32 %v197_v34, %v116_v20 }
 0x216   :  { %v140_v38 = vmul.f32 %v170_v35, %v132_v36 }
 0x217   :  { %v199_v39 = vpop.eup %198 }
 0x218   :  { %v148_v40 = vadd.f32 %v171_v37, %v140_v38  ;;  %v133_v41 = vmul.f32 %v199_v39, %v117_v24 }
 0x21a   :  { %v174_v42 = vpack.c.bf16 %v148_v40, %v148_v40  ;;  %v141_v43 = vmul.f32 %v170_v35, %v133_v41 }
 0x21c   :  { %159 = vst.msk [vmem:[%s275_s6] sm:$0xf] %vm158_vm2, %v174_v42  ;;  %v149_v44 = vadd.f32 %v171_v37, %v141_v43 }
 0x21e   :  { %v175_v45 = vpack.c.bf16 %v149_v44, %v149_v44 }
 0x220   :  { %160 = vst.msk [vmem:[%s275_s6 + $0x4] sm:$0xf] %vm158_vm2, %v175_v45 }

// kernel: ll_model_forward.25
= control target key start
LH: loop header
LB: loop body
LE: loop exit
PB: predicated region body
PF: predicated region fallthrough
CT: control target
= control target key end

     0   :  { %vm19_vm0 = vcmask 785408   ;;  %v151_v0 = vmov 0.0   ;;  %vm152_vm1 = vmmov 0   ;;  %vm47_vm2 = vcmask 261120   ;;  %s195_s1 = inlined_call_operand.vmem [shape: bf16[32,96], index: 1, kind: input, shape index: {}]   ;;  %s196_s0 = inlined_call_operand.vmem [shape: bf16[16,32], index: 0, kind: input, shape index: {}]   ;;  %s197_s2 = inlined_call_operand.vmem [shape: f32[1,96], index: 2, kind: input, shape index: {}]   ;;  %s198_s3 = inlined_call_operand.vmem [shape: bf16[16,96], index: 3, kind: output, shape index: {}]  }
   0x1   :  { %138 = vmatprep.subr.bf16.mxu0 %v151_v0  ;;  %v148_v1 = vld [vmem:[%s195_s1] sm:$0xff]   ;;  %142 = vmatprep.mubr.msk.bf16.mxu0 %vm152_vm1, %v151_v0  ;;  %20 = vst.msk [vmem:[#allocation2] sm:$0xff] %vm19_vm0, %v151_v0  ;;  %21 = vst.msk [vmem:[#allocation2 + $0x8] sm:$0xff] %vm19_vm0, %v151_v0  ;;  %v149_v2 = vld [vmem:[%s195_s1 + $0x8] sm:$0xff]   ;;  %vm119_vm3 = vcmask 781312  }
   0x2   :  { %139 = vmatpush3.bf16.msra.mxu0 %v148_v1  ;;  %v150_v3 = vld [vmem:[%s196_s0] sm:$0xff]  }
   0x3   :  { %140 = vmatprep.subr.bf16.mxu0 %v151_v0  ;;  %v130_v12 = vld [vmem:[%s197_s2] ss:$0 sm:$0xff] }
   0x6   :  { %141 = vmatpush3.bf16.msra.mxu0 %v149_v2 }
   0x8   :  { %v22_v4 = vld [vmem:[#allocation2] sm:$0xff]  ;;  %v23_v6 = vld [vmem:[#allocation2 + $0x8] sm:$0xff] }
   0x9   :  { %143 = vmatmul.mubr.msk.bf16.vlgmr.msra.gmra.mrb[0].mxu0 %vm47_vm2, %v150_v3 }
  0xdc   :  { %v85_v5 = vpop.f32.mrb[0].mxu0 }
  0xdd   :  { %v92_v7 = vadd.f32 %v85_v5, %v22_v4  ;;  %v144_v8 = vpop.f32.mrb[1].mxu0 }
  0xde   :  { %v88_v9 = vpop.f32.mrb[2].mxu0 }
  0xdf   :  { %95 = vst.msk [vmem:[#allocation2] sm:$0xff] %vm19_vm0, %v92_v7  ;;  %v93_v10 = vadd.f32 %v88_v9, %v23_v6  ;;  %v145_v11 = vpop.f32.mrb[3].mxu0 }
  0xe1   :  { %96 = vst.msk [vmem:[#allocation2 + $0x8] sm:$0xff] %vm19_vm0, %v93_v10 }
  0xe6   :  { %v100_v13 = vld [vmem:[#allocation2] sm:$0xff] }
  0xe7   :  { %v109_v14 = vadd.f32 %v130_v12, %v100_v13 }
  0xe8   :  { %v101_v15 = vld [vmem:[#allocation2 + $0x8] sm:$0xff] }
  0xe9   :  { %v133_v16 = vpack.c.bf16 %v109_v14, %v109_v14  ;;  %v110_v17 = vadd.f32 %v130_v12, %v101_v15 }
  0xeb   :  { %120 = vst.msk [vmem:[%s198_s3] sm:$0xf] %vm119_vm3, %v133_v16  ;;  %v134_v18 = vpack.c.bf16 %v110_v17, %v110_v17 }
  0xed   :  { %121 = vst.msk [vmem:[%s198_s3 + $0x4] sm:$0xf] %vm119_vm3, %v134_v18 }

// kernel: ll_model_forward.28
= control target key start
LH: loop header
LB: loop body
LE: loop exit
PB: predicated region body
PF: predicated region fallthrough
CT: control target
= control target key end

     0   :  { %v312_v0 = vmov 0.0   ;;  %vm313_vm0 = vmmov 0   ;;  %vm57_vm1 = vcmask 261120   ;;  %vm144_vm2 = vcmask 523264   ;;  %s398_s1 = inlined_call_operand.vmem [shape: bf16[32,64], index: 1, kind: input, shape index: {}]   ;;  %s399_s0 = inlined_call_operand.vmem [shape: bf16[16,32], index: 0, kind: input, shape index: {}]   ;;  %s400_s3 = inlined_call_operand.vmem [shape: bf16[64,32], index: 3, kind: input, shape index: {}]   ;;  %s401_s2 = inlined_call_operand.vmem [shape: f32[1,64], index: 2, kind: input, shape index: {}]   ;;  %s402_s4 = inlined_call_operand.vmem [shape: f32[1,32], index: 4, kind: input, shape index: {}]   ;;  %s403_s5 = inlined_call_operand.vmem [shape: f32[1,32], index: 5, kind: input, shape index: {}]   ;;  %s404_s6 = inlined_call_operand.vmem [shape: f32[1,32], index: 6, kind: input, shape index: {}]   ;;  %s405_s7 = inlined_call_operand.vmem [shape: bf16[16,32], index: 7, kind: output, shape index: {}]  }
   0x1   :  { %278 = vmatprep.subr.bf16.mxu0 %v312_v0  ;;  %v300_v1 = vld [vmem:[%s398_s1] sm:$0xff]   ;;  %282 = vmatprep.mubr.msk.bf16.mxu0 %vm313_vm0, %v312_v0  ;;  %v301_v2 = vld [vmem:[%s398_s1 + $0x8] sm:$0xff]   ;;  %v305_v6 = vld [vmem:[%s400_s3 + $0x10] sm:$0xff]   ;;  %vm246_vm3 = vcmask 257024  }
   0x2   :  { %286 = vmatprep.subr.bf16.mxu1 %v312_v0  ;;  %294 = vmatprep.mubr.msk.bf16.mxu1 %vm313_vm0, %v312_v0  ;;  %v27_v3 = vld [vmem:[%s399_s0] sm:$0xff]   ;;  %v304_v5 = vld [vmem:[%s400_s3 + $0x8] sm:$0xff]   ;;  %v306_v7 = vld [vmem:[%s400_s3 + $0x18] sm:$0xff]  }
   0x3   :  { %279 = vmatpush3.bf16.msra.mxu0 %v300_v1  ;;  %v303_v4 = vld [vmem:[%s400_s3] sm:$0xff]   ;;  %v189_v19 = vunpack.c.l.bf16 %v27_v3  ;;  %v190_v23 = vunpack.c.h.bf16 %v27_v3 }
   0x4   :  { %280 = vmatprep.subr.bf16.mxu0 %v312_v0  ;;  %287 = vmatpush3.bf16.msra.mxu1 %v303_v4  ;;  %v253_v8 = vld [vmem:[%s401_s2] ss:$0 sm:$0xff] }
   0x5   :  { %288 = vmatprep.subr.bf16.mxu1 %v312_v0  ;;  %v258_v18 = vld [vmem:[%s402_s4] ss:$0 sm:$0xff] }
   0x6   :  { %v264_v48 = vld [vmem:[%s403_s5] ss:$0 sm:$0xff] }
   0x7   :  { %281 = vmatpush3.bf16.msra.mxu0 %v301_v2  ;;  %v265_v50 = vld [vmem:[%s404_s6] ss:$0 sm:$0xff] }
   0x8   :  { %289 = vmatpush3.bf16.msra.mxu1 %v304_v5 }
   0x9   :  { %290 = vmatprep.subr.bf16.mxu1 %v312_v0 }
   0xa   :  { %283 = vmatmul.mubr.msk.bf16.vlgmr.msra.gmra.mrb[0].mxu0 %vm57_vm1, %v27_v3 }
   0xc   :  { %291 = vmatpush3.bf16.msra.mxu1 %v305_v6 }
   0xd   :  { %292 = vmatprep.subr.bf16.mxu1 %v312_v0 }
  0x10   :  { %293 = vmatpush3.bf16.msra.mxu1 %v306_v7 }
  0xdd   :  { %v95_v9 = vpop.f32.mrb[0].mxu0 }
  0xde   :  { %v96_v10 = vadd.f32 %v253_v8, %v95_v9  ;;  %v284_v11 = vpop.f32.mrb[1].mxu0 }
  0xdf   :  { %v98_v12 = vpop.f32.mrb[2].mxu0 }
  0xe0   :  { %v99_v13 = vadd.f32 %v253_v8, %v98_v12  ;;  %v285_v14 = vpop.f32.mrb[3].mxu0  ;;  %v102_v15 = vmax.f32 %v96_v10, 0.0 }
  0xe2   :  { %v103_v16 = vmax.f32 %v99_v13, 0.0 }
  0xe4   :  { %v104_v17 = vpack.c.bf16 %v103_v16, %v102_v15 }
  0xe6   :  { %295 = vmatmul.mubr.msk.bf16.vlgmr.msra.gmra.mrb[0].mxu1 %vm144_vm2, %v104_v17 }
 0x1b9   :  { %v182_v20 = vpop.f32.mrb[0].mxu1 }
 0x1ba   :  { %v183_v21 = vadd.f32 %v258_v18, %v182_v20  ;;  %v296_v22 = vpop.f32.mrb[1].mxu1 }
 0x1bb   :  { %v185_v24 = vpop.f32.mrb[2].mxu1 }
 0x1bc   :  { %v186_v25 = vadd.f32 %v258_v18, %v185_v24  ;;  %v297_v26 = vpop.f32.mrb[3].mxu1  ;;  %v191_v27 = vadd.f32 %v189_v19, %v183_v21 }
 0x1be   :  { %v195_v28 = vsel %vm57_vm1, %v191_v27, 0.0  ;;  %v192_v29 = vadd.f32 %v190_v23, %v186_v25 }
 0x1bf   :  { %196 = vadd.xlane.f32.xlu0 %v195_v28 }
 0x1c0   :  { %v198_v30 = vsel %vm57_vm1, %v192_v29, 0.0 }
 0x1c3   :  { %199 = vadd.xlane.f32.xlu0 %v198_v30 }
 0x24c   :  { %v197_v31 = vpop.xlane.xlu0 %196 }
 0x24d   :  { %v202_v32 = vmul.f32 0.03125, %v197_v31 }
 0x24f   :  { %v204_v33 = vsub.f32 %v191_v27, %v202_v32 }
 0x250   :  { %v200_v34 = vpop.xlane.xlu0 %199 }
 0x251   :  { %v203_v35 = vmul.f32 0.03125, %v200_v34  ;;  %v206_v36 = vmul.f32 %v204_v33, %v204_v33 }
 0x253   :  { %v205_v37 = vsub.f32 %v192_v29, %v203_v35  ;;  %v208_v38 = vsel %vm57_vm1, %v206_v36, 0.0 }
 0x254   :  { %209 = vadd.xlane.f32.xlu1 %v208_v38 }
 0x255   :  { %v207_v39 = vmul.f32 %v205_v37, %v205_v37 }
 0x257   :  { %v211_v40 = vsel %vm57_vm1, %v207_v39, 0.0 }
 0x258   :  { %212 = vadd.xlane.f32.xlu1 %v211_v40 }
 0x2e1   :  { %v210_v41 = vpop.xlane.xlu1 %209 }
 0x2e2   :  { %v214_v42 = vmul.f32 0.03125, %v210_v41 }
 0x2e4   :  { %v216_v43 = vadd.f32 1e-05, %v214_v42 }
 0x2e5   :  { %v213_v44 = vpop.xlane.xlu1 %212 }
 0x2e6   :  { %308 = vrsqrt.f32 %v216_v43  ;;  %v215_v45 = vmul.f32 0.03125, %v213_v44 }
 0x2e8   :  { %v217_v46 = vadd.f32 1e-05, %v215_v45 }
 0x2ea   :  { %310 = vrsqrt.f32 %v217_v46 }
 0x2f0   :  { %v309_v47 = vpop.eup %308 }
 0x2f1   :  { %v220_v49 = vmul.f32 %v309_v47, %v204_v33 }
 0x2f3   :  { %v228_v51 = vmul.f32 %v264_v48, %v220_v49 }
 0x2f4   :  { %v311_v52 = vpop.eup %310 }
 0x2f5   :  { %v236_v53 = vadd.f32 %v265_v50, %v228_v51  ;;  %v221_v54 = vmul.f32 %v311_v52, %v205_v37 }
 0x2f7   :  { %v268_v55 = vpack.c.bf16 %v236_v53, %v236_v53  ;;  %v229_v56 = vmul.f32 %v264_v48, %v221_v54 }
 0x2f9   :  { %247 = vst.msk [vmem:[%s405_s7] sm:$0xf] %vm246_vm3, %v268_v55  ;;  %v237_v57 = vadd.f32 %v265_v50, %v229_v56 }
 0x2fb   :  { %v269_v58 = vpack.c.bf16 %v237_v57, %v237_v57 }
 0x2fd   :  { %248 = vst.msk [vmem:[%s405_s7 + $0x4] sm:$0xf] %vm246_vm3, %v269_v58 }

// kernel: ll_model_forward.26
= control target key start
LH: loop header
LB: loop body
LE: loop exit
PB: predicated region body
PF: predicated region fallthrough
CT: control target
= control target key end

     0   :  { %s870_s9 = smov 0   ;;  %s976_s0 = inlined_call_operand.vmem [shape: bf16[2,8,96], index: 0, kind: input, shape index: {}]   ;;  %s977_s1 = inlined_call_operand.vmem [shape: bf16[2,1,8], index: 1, kind: input, shape index: {}]   ;;  %s978_s2 = inlined_call_operand.vmem [shape: bf16[2,8,32], index: 2, kind: output, shape index: {}]  }
   0x1 LB: > { %s701_s10 = sadd.s32 4294967295, %s837_s9   ;;  %p705_p0 = scmp.ge.s32.totalorder %s837_s9, 1  ;;  %s837_s9 = sphi %s870_s9, %s12_s9  }
   0x2   : > { %p119_p1 = scmp.lt.s32.totalorder %s837_s9, 3 }
   0x4   : > { %p120_p2 = pnand %p705_p0, %p119_p1 }
   0x5   : > { %p142_p3 = scmp.lt.s32.totalorder (!%p120_p2), %s701_s10, 1  ;;  %v839_v0 = vmov (!%p120_p2), 0.0   ;;  %vm840_vm0 = vmmov (!%p120_p2), 0   ;;  %s841_s15 = smov (!%p120_p2), 96   ;;  %vm168_vm1 = vcmask (!%p120_p2), 64512   ;;  %v159_v7 = vlaneseq (!%p120_p2) }
   0x6   : > { %123 = sbr.rel (%p120_p2) target bundleno = 1246 (0x4de), region = 28  ;;  %742 = vmatprep.subr.bf16.mxu0 (!%p120_p2), %v839_v0  ;;  %744 = vmatprep.mubr.msk.bf16.mxu0 (!%p120_p2), %vm840_vm0, %v839_v0  ;;  %s842_s16 = smov (!%p120_p2), 64   ;;  %vm231_vm2 = vcmask (!%p120_p2), 1043456   ;;  %vm277_vm3 = vcmask (!%p120_p2), 60416   ;;  %vm399_vm4 = vcmask (!%p120_p2), 126016   ;;  %vm518_vm5 = vcmask (!%p120_p2), 191616  }
   0x7   : > { %748 = vmatprep.subr.bf16.mxu1 (!%p120_p2), %v839_v0  ;;  %750 = vmatprep.mubr.msk.bf16.mxu1 (!%p120_p2), %vm840_vm0, %v839_v0  ;;  %s843_s17 = smov (!%p120_p2), 88   ;;  %s844_s18 = smov (!%p120_p2), 120   ;;  %v160_v8 = vshrl.u32 (!%p120_p2), %v159_v7, 7  ;;  %vm637_vm6 = vcmask (!%p120_p2), 257216  }
   0x8   : > { %s845_s19 = smov (!%p120_p2), 80   ;;  %s846_s20 = smov (!%p120_p2), 112  }
   0x9   : > { %s847_s21 = smov (!%p120_p2), 72   ;;  %s848_s22 = smov (!%p120_p2), 104   ;;  %v161_v11 = vsub.s32 (!%p120_p2), 0, %v160_v8 }
   0xa   : > { %s849_s26 = smov (!%p120_p2), 56   ;;  %s850_s27 = smov (!%p120_p2), 48  }
   0xb   : > { %s851_s28 = smov (!%p120_p2), 40   ;;  %s852_s4 = smov (!%p120_p2), 8  }
   0xc   : > { %s853_s5 = smov (!%p120_p2), 16   ;;  %s854_s6 = smov (!%p120_p2), 24  }
   0xd   : > { %s980_s10 = smov (!%p142_p3, %s701_s10), 1 }
   0xe   : > { %s706_s11 = sshll.u32 %s980_s10, 2  ;;  %s148_s25 = scalar_lea.vmem %s977_s1, %s980_s10 }
   0xf   : > { %s145_s14 = scalar_lea.vmem %s976_s0, %s706_s11  ;;  %v156_v9 = vld [vmem:[%s148_s25] sm:$0x1]  ;;  %s967_s3 = scalar_lea.vmem %s978_s2, %s706_s11 }
  0x10   : > { %v155_v1 = vld [vmem:[%s145_s14] sm:$0xf]  ;;  %v157_v10 = vunpack.c.l.bf16 %v156_v9 }
  0x11   : > { %v892_v2 = vcombine.low %v155_v1, %v155_v1  ;;  %v158_v5 = vmul.bf16 1052065461, %v155_v1 }
  0x12   : > { %v908_v12 = vrot.slane %v157_v10, %v161_v11 }
  0x13   : > { %166 = vrot.lane.b32.xlu0 %v892_v2, %s841_s15  ;;  %226 = vrot.lane.b32.xlu1 %v892_v2, %s842_s16  ;;  %v711_v6 = vcombine.low %v158_v5, %v158_v5 }
  0x17   : > { %284 = vrot.lane.b32.xlu1 %v892_v2, %s843_s17 }
  0x1b   : > { %282 = vrot.lane.b32.xlu1 %v711_v6, %s844_s18 }
  0x1f   : > { %403 = vrot.lane.b32.xlu1 %v892_v2, %s845_s19 }
  0x23   : > { %401 = vrot.lane.b32.xlu1 %v711_v6, %s846_s20 }
  0x27   : > { %522 = vrot.lane.b32.xlu1 %v892_v2, %s847_s21 }
  0x2b   : > { %520 = vrot.lane.b32.xlu1 %v711_v6, %s848_s22 }
  0x85   : > { %v167_v3 = vpop.permute.xlu0 %166  ;;  %v227_v19 = vpop.permute.xlu1 %226 }
  0x86   : > { %v173_v4 = vsel %vm168_vm1, %v167_v3, 0  ;;  %v233_v20 = vsel %vm231_vm2, %v227_v19, 0 }
  0x87   : > { %743 = vmatpush3.bf16.xpose.msra.mxu0 %v173_v4  ;;  %749 = vmatpush3.bf16.msra.mxu1 %v233_v20 }
  0x88   : > { %760 = vmatprep.subr.bf16.mxu0 %v839_v0  ;;  %754 = vmatprep.subr.bf16.mxu1 %v839_v0 }
  0x89   : > { %v285_v24 = vpop.permute.xlu1 %284 }
  0x8a   : > { %v290_v27 = vsel %vm168_vm1, %v285_v24, 0 }
  0x8d   : > { %v283_v25 = vpop.permute.xlu1 %282 }
  0x8e   : > { %745 = vmatmul.mubr.msk.bf16.vlgmr.msra.gmra.mrb[0].mxu0 %vm168_vm1, %v158_v5 }
  0x8f   : > { %762 = vmatprep.mubr.msk.bf16.mxu0 %vm840_vm0, %v839_v0 }
  0x91   : > { %v404_v29 = vpop.permute.xlu1 %403 }
  0x92   : > { %v409_v31 = vsel %vm168_vm1, %v404_v29, 0 }
  0x95   : > { %v402_v30 = vpop.permute.xlu1 %401 }
  0x99   : > { %v523_v32 = vpop.permute.xlu1 %522 }
  0x9a   : > { %v528_v33 = vsel %vm168_vm1, %v523_v32, 0 }
  0x9d   : > { %v521_v34 = vpop.permute.xlu1 %520 }
 0x161   : > { %v209_v13 = vpop.f32.mrb[0].mxu0 }
 0x162   : > { %v210_v14 = vadd.f32 %v209_v13, %v908_v12  ;;  %v746_v15 = vpop.f32.mrb[1].mxu0 }
 0x163   : > { %v212_v16 = vpop.f32.mrb[2].mxu0 }
 0x164   : > { %v747_v17 = vpop.f32.mrb[3].mxu0  ;;  %v215_v18 = vsel %vm168_vm1, %v210_v14, -inf }
 0x165   : > { %216 = vmax.xlane.f32.xlu0 %v215_v18 }
 0x17b   : > { %343 = vrot.lane.b32.xlu0 %v892_v2, %s849_s26 }
 0x1f2   : > { %v217_v21 = vpop.xlane.xlu0 %216 }
 0x1f3   : > { %v218_v22 = vsub.f32 %v210_v14, %v217_v21 }
 0x1f5   : > { %v219_v23 = vmul.f32 1.442695, %v218_v22 }
 0x1f6   : > { %v344_v35 = vpop.permute.xlu0 %343 }
 0x1f7   : > { %815 = vpow2.f32 %v219_v23  ;;  %v349_v36 = vsel %vm231_vm2, %v344_v35, 0 }
 0x1f8   : > { %761 = vmatpush3.bf16.msra.mxu0 %v349_v36 }
 0x1f9   : > { %772 = vmatprep.subr.bf16.mxu0 %v839_v0 }
 0x201   : > { %v915_v26 = vpop.eup %815 }
 0x202   : > { %v225_v28 = vpack.c.bf16 %v915_v26, %v915_v26  ;;  %v221_v18 = vsel %vm168_vm1, %v915_v26, 0.0 }
 0x204   : > { %751 = vmatmul.mubr.msk.bf16.vlgmr.msra.gmra.mrb[0].mxu1 %vm168_vm1, %v225_v28 }
 0x205   : > { %755 = vmatpush3.bf16.xpose.msra.mxu1 %v290_v27  ;;  %756 = vmatprep.mubr.msk.bf16.mxu1 %vm840_vm0, %v839_v0 }
 0x206   : > { %766 = vmatprep.subr.bf16.mxu1 %v839_v0 }
 0x20c   : > { %757 = vmatmul.mubr.msk.bf16.vlgmr.msra.gmra.mrb[4].mxu1 %vm168_vm1, %v283_v25 }
 0x20d   : > { %767 = vmatpush3.bf16.xpose.msra.mxu1 %v409_v31  ;;  %768 = vmatprep.mubr.msk.bf16.mxu1 %vm840_vm0, %v839_v0 }
 0x20e   : > { %778 = vmatprep.subr.bf16.mxu1 %v839_v0 }
 0x214   : > { %769 = vmatmul.mubr.msk.bf16.vlgmr.msra.gmra.mrb[8].mxu1 %vm168_vm1, %v402_v30 }
 0x215   : > { %779 = vmatpush3.bf16.xpose.msra.mxu1 %v528_v33  ;;  %780 = vmatprep.mubr.msk.bf16.mxu1 %vm840_vm0, %v839_v0 }
 0x21c   : > { %781 = vmatmul.mubr.msk.bf16.vlgmr.msra.gmra.mrb[12].mxu1 %vm168_vm1, %v521_v34 }
 0x2d7   : > { %v936_v37 = vpop.f32.mrb[0].mxu1 }
 0x2d8   : > { %v752_v38 = vpop.f32.mrb[1].mxu1 }
 0x2d9   : > { %v272_v39 = vpop.f32.mrb[2].mxu1 }
 0x2da   : > { %v753_v40 = vpop.f32.mrb[3].mxu1 }
 0x2df   : > { %v326_v41 = vpop.f32.mrb[4].mxu1 }
 0x2e0   : > { %v327_v42 = vadd.f32 %v326_v41, %v908_v12  ;;  %v758_v43 = vpop.f32.mrb[5].mxu1 }
 0x2e1   : > { %v329_v44 = vpop.f32.mrb[6].mxu1 }
 0x2e2   : > { %v759_v45 = vpop.f32.mrb[7].mxu1  ;;  %v332_v46 = vsel %vm168_vm1, %v327_v42, -inf }
 0x2e3   : > { %333 = vmax.xlane.f32.xlu1 %v332_v46 }
 0x2e7   : > { %v445_v47 = vpop.f32.mrb[8].mxu1 }
 0x2e8   : > { %v446_v48 = vadd.f32 %v445_v47, %v908_v12  ;;  %v770_v49 = vpop.f32.mrb[9].mxu1 }
 0x2e9   : > { %v448_v50 = vpop.f32.mrb[10].mxu1 }
 0x2ea   : > { %v771_v51 = vpop.f32.mrb[11].mxu1  ;;  %v451_v52 = vsel %vm168_vm1, %v446_v48, -inf }
 0x2eb   : > { %452 = vmax.xlane.f32.xlu0 %v451_v52 }
 0x2ef   : > { %v564_v53 = vpop.f32.mrb[12].mxu1 }
 0x2f0   : > { %v565_v54 = vadd.f32 %v564_v53, %v908_v12  ;;  %v782_v55 = vpop.f32.mrb[13].mxu1 }
 0x2f1   : > { %v567_v56 = vpop.f32.mrb[14].mxu1 }
 0x2f2   : > { %v783_v57 = vpop.f32.mrb[15].mxu1  ;;  %v570_v58 = vsel %vm168_vm1, %v565_v54, -inf }
 0x2f3   : > { %571 = vmax.xlane.f32.xlu0 %v570_v58 }
 0x2f4   : > { %462 = vrot.lane.b32.xlu1 %v892_v2, %s850_s27 }
 0x309   : > { %581 = vrot.lane.b32.xlu0 %v892_v2, %s851_s28 }
 0x370   : > { %v334_v59 = vpop.xlane.xlu1 %333 }
 0x371   : > { %v335_v60 = vsub.f32 %v327_v42, %v334_v59 }
 0x373   : > { %v336_v61 = vmul.f32 1.442695, %v335_v60 }
 0x374   : > { %v463_v3 = vpop.permute.xlu1 %462 }
 0x375   : > { %817 = vpow2.f32 %v336_v61  ;;  %v468_v5 = vsel %vm231_vm2, %v463_v3, 0 }
 0x378   : > { %v453_v62 = vpop.xlane.xlu0 %452 }
 0x379   : > { %v454_v63 = vsub.f32 %v446_v48, %v453_v62 }
 0x37b   : > { %v455_v1 = vmul.f32 1.442695, %v454_v63 }
 0x37d   : > { %819 = vpow2.f32 %v455_v1 }
 0x37f   : > { %v818_v4 = vpop.eup %817 }
 0x380   : > { %v572_v6 = vpop.xlane.xlu0 %571  ;;  %v338_v7 = vsel %vm168_vm1, %v818_v4, 0.0  ;;  %v342_v8 = vpack.c.bf16 %v818_v4, %v818_v4 }
 0x381   : > { %v573_v9 = vsub.f32 %v565_v54, %v572_v6  ;;  %339 = vadd.xlane.f32.xlu0 %v338_v7 }
 0x382   : > { %763 = vmatmul.mubr.msk.bf16.vlgmr.msra.gmra.mrb[4].mxu0 %vm168_vm1, %v342_v8 }
 0x383   : > { %v574_v2 = vmul.f32 1.442695, %v573_v9  ;;  %773 = vmatpush3.bf16.msra.mxu0 %v468_v5  ;;  %774 = vmatprep.mubr.msk.bf16.mxu0 %vm840_vm0, %v839_v0 }
 0x384   : > { %784 = vmatprep.subr.bf16.mxu0 %v839_v0  ;;  %v582_v10 = vpop.permute.xlu0 %581 }
 0x385   : > { %821 = vpow2.f32 %v574_v2  ;;  %v587_v12 = vsel %vm231_vm2, %v582_v10, 0 }
 0x387   : > { %v820_v11 = vpop.eup %819 }
 0x388   : > { %v457_v13 = vsel %vm168_vm1, %v820_v11, 0.0  ;;  %v461_v14 = vpack.c.bf16 %v820_v11, %v820_v11 }
 0x389   : > { %458 = vadd.xlane.f32.xlu1 %v457_v13 }
 0x38a   : > { %775 = vmatmul.mubr.msk.bf16.vlgmr.msra.gmra.mrb[8].mxu0 %vm168_vm1, %v461_v14 }
 0x38b   : > { %785 = vmatpush3.bf16.msra.mxu0 %v587_v12  ;;  %786 = vmatprep.mubr.msk.bf16.mxu0 %vm840_vm0, %v839_v0 }
 0x38f   : > { %v822_v15 = vpop.eup %821 }
 0x390   : > { %v576_v16 = vsel %vm168_vm1, %v822_v15, 0.0  ;;  %v580_v17 = vpack.c.bf16 %v822_v15, %v822_v15 }
 0x391   : > { %577 = vadd.xlane.f32.xlu0 %v576_v16 }
 0x392   : > { %787 = vmatmul.mubr.msk.bf16.vlgmr.msra.gmra.mrb[12].mxu0 %vm168_vm1, %v580_v17 }
 0x395   : > { %222 = vadd.xlane.f32.xlu0 %v221_v18 }
 0x40e   : > { %v340_v19 = vpop.xlane.xlu0 %339 }
 0x416   : > { %v459_v24 = vpop.xlane.xlu1 %458 }
 0x41e   : > { %v578_v20 = vpop.xlane.xlu0 %577 }
 0x422   : > { %v223_v21 = vpop.xlane.xlu0 %222 }
 0x423   : > { %823 = vrcp.f32 %v223_v21 }
 0x424   : > { %825 = vrcp.f32 %v340_v19 }
 0x425   : > { %827 = vrcp.f32 %v459_v24 }
 0x426   : > { %829 = vrcp.f32 %v578_v20 }
 0x42d   : > { %v824_v22 = vpop.eup %823 }
 0x42e   : > { %v275_v23 = vmul.f32 %v824_v22, %v936_v37  ;;  %v826_v25 = vpop.eup %825 }
 0x42f   : > { %v828_v32 = vpop.eup %827 }
 0x430   : > { %v276_v0 = vpack.c.bf16 %v275_v23, %v275_v23  ;;  %v830_v39 = vpop.eup %829 }
 0x432   : > { %278 = vst.msk [vmem:[%s967_s3] sm:$0xf] %vm277_vm3, %v276_v0 }
 0x455   : > { %v385_v26 = vpop.f32.mrb[4].mxu0 }
 0x456   : > { %v391_v27 = vmul.f32 %v826_v25, %v385_v26  ;;  %v764_v28 = vpop.f32.mrb[5].mxu0 }
 0x457   : > { %v388_v29 = vpop.f32.mrb[6].mxu0 }
 0x458   : > { %v723_v30 = vpack.c.bf16 %v391_v27, %v391_v27  ;;  %v765_v31 = vpop.f32.mrb[7].mxu0 }
 0x45a   : > { %396 = vrot.lane.b32.xlu0 %v723_v30, %s852_s4 }
 0x45d   : > { %v504_v33 = vpop.f32.mrb[8].mxu0 }
 0x45e   : > { %v510_v34 = vmul.f32 %v828_v32, %v504_v33  ;;  %v776_v35 = vpop.f32.mrb[9].mxu0 }
 0x45f   : > { %v507_v36 = vpop.f32.mrb[10].mxu0 }
 0x460   : > { %v724_v37 = vpack.c.bf16 %v510_v34, %v510_v34  ;;  %v777_v38 = vpop.f32.mrb[11].mxu0 }
 0x462   : > { %515 = vrot.lane.b32.xlu1 %v724_v37, %s853_s5 }
 0x465   : > { %v623_v40 = vpop.f32.mrb[12].mxu0 }
 0x466   : > { %v629_v41 = vmul.f32 %v830_v39, %v623_v40  ;;  %v788_v42 = vpop.f32.mrb[13].mxu0 }
 0x467   : > { %v626_v43 = vpop.f32.mrb[14].mxu0 }
 0x468   : > { %v725_v44 = vpack.c.bf16 %v629_v41, %v629_v41  ;;  %v789_v45 = vpop.f32.mrb[15].mxu0 }
 0x46a   : > { %634 = vrot.lane.b32.xlu0 %v725_v44, %s854_s6 }
 0x4cc   : > { %v397_v46 = vpop.permute.xlu0 %396 }
 0x4cd   : > { %400 = vst.msk [vmem:[%s967_s3] sm:$0xf] %vm399_vm4, %v397_v46 }
 0x4d4   : > { %v516_v47 = vpop.permute.xlu1 %515 }
 0x4d5   : > { %519 = vst.msk [vmem:[%s967_s3] sm:$0xf] %vm518_vm5, %v516_v47 }
 0x4dc   : > { %v635_v48 = vpop.permute.xlu0 %634 }
 0x4dd   : > { %638 = vst.msk [vmem:[%s967_s3] sm:$0xf] %vm637_vm6, %v635_v48 }
 0x4de PF: > { %s12_s9 = sadd.s32 1, %s837_s9  }
 0x4df   : > { %p9_p4 = scmp.ge.s32.totalorder %s12_s9, 4  }
 0x4e1   :  { %11 = sbr.rel (!%p9_p4) target bundleno = 1 (0x1), region = 61 }

// kernel: ll_model_forward.37
= control target key start
LH: loop header
LB: loop body
LE: loop exit
PB: predicated region body
PF: predicated region fallthrough
CT: control target
= control target key end

     0   :  { %vm19_vm0 = vcmask 523264   ;;  %v151_v0 = vmov 0.0   ;;  %vm152_vm1 = vmmov 0   ;;  %vm47_vm2 = vcmask 261120   ;;  %s195_s1 = inlined_call_operand.vmem [shape: bf16[32,64], index: 1, kind: input, shape index: {}]   ;;  %s196_s0 = inlined_call_operand.vmem [shape: bf16[16,32], index: 0, kind: input, shape index: {}]   ;;  %s197_s2 = inlined_call_operand.vmem [shape: f32[1,64], index: 2, kind: input, shape index: {}]   ;;  %s198_s3 = inlined_call_operand.vmem [shape: bf16[16,64], index: 3, kind: output, shape index: {}]  }
   0x1   :  { %138 = vmatprep.subr.bf16.mxu0 %v151_v0  ;;  %v148_v1 = vld [vmem:[%s195_s1] sm:$0xff]   ;;  %142 = vmatprep.mubr.msk.bf16.mxu0 %vm152_vm1, %v151_v0  ;;  %20 = vst.msk [vmem:[#allocation2] sm:$0xff] %vm19_vm0, %v151_v0  ;;  %21 = vst.msk [vmem:[#allocation2 + $0x8] sm:$0xff] %vm19_vm0, %v151_v0  ;;  %v149_v2 = vld [vmem:[%s195_s1 + $0x8] sm:$0xff]   ;;  %vm119_vm3 = vcmask 519168  }
   0x2   :  { %139 = vmatpush3.bf16.msra.mxu0 %v148_v1  ;;  %v150_v3 = vld [vmem:[%s196_s0] sm:$0xff]  }
   0x3   :  { %140 = vmatprep.subr.bf16.mxu0 %v151_v0  ;;  %v130_v12 = vld [vmem:[%s197_s2] ss:$0 sm:$0xff] }
   0x6   :  { %141 = vmatpush3.bf16.msra.mxu0 %v149_v2 }
   0x8   :  { %v22_v4 = vld [vmem:[#allocation2] sm:$0xff]  ;;  %v23_v6 = vld [vmem:[#allocation2 + $0x8] sm:$0xff] }
   0x9   :  { %143 = vmatmul.mubr.msk.bf16.vlgmr.msra.gmra.mrb[0].mxu0 %vm47_vm2, %v150_v3 }
  0xdc   :  { %v85_v5 = vpop.f32.mrb[0].mxu0 }
  0xdd   :  { %v92_v7 = vadd.f32 %v85_v5, %v22_v4  ;;  %v144_v8 = vpop.f32.mrb[1].mxu0 }
  0xde   :  { %v88_v9 = vpop.f32.mrb[2].mxu0 }
  0xdf   :  { %95 = vst.msk [vmem:[#allocation2] sm:$0xff] %vm19_vm0, %v92_v7  ;;  %v93_v10 = vadd.f32 %v88_v9, %v23_v6  ;;  %v145_v11 = vpop.f32.mrb[3].mxu0 }
  0xe1   :  { %96 = vst.msk [vmem:[#allocation2 + $0x8] sm:$0xff] %vm19_vm0, %v93_v10 }
  0xe6   :  { %v100_v13 = vld [vmem:[#allocation2] sm:$0xff] }
  0xe7   :  { %v109_v14 = vadd.f32 %v130_v12, %v100_v13 }
  0xe8   :  { %v101_v15 = vld [vmem:[#allocation2 + $0x8] sm:$0xff] }
  0xe9   :  { %v133_v16 = vpack.c.bf16 %v109_v14, %v109_v14  ;;  %v110_v17 = vadd.f32 %v130_v12, %v101_v15 }
  0xeb   :  { %120 = vst.msk [vmem:[%s198_s3] sm:$0xf] %vm119_vm3, %v133_v16  ;;  %v134_v18 = vpack.c.bf16 %v110_v17, %v110_v17 }
  0xed   :  { %121 = vst.msk [vmem:[%s198_s3 + $0x4] sm:$0xf] %vm119_vm3, %v134_v18 }

// kernel: ll_model_forward.36
= control target key start
LH: loop header
LB: loop body
LE: loop exit
PB: predicated region body
PF: predicated region fallthrough
CT: control target
= control target key end

     0   :  { %vm19_vm0 = vcmask 261120   ;;  %v150_v0 = vmov 0.0   ;;  %vm151_vm1 = vmmov 0   ;;  %vm118_vm2 = vcmask 257024   ;;  %s195_s1 = inlined_call_operand.vmem [shape: bf16[32,32], index: 1, kind: input, shape index: {}]   ;;  %s196_s0 = inlined_call_operand.vmem [shape: bf16[16,32], index: 0, kind: input, shape index: {}]   ;;  %s197_s2 = inlined_call_operand.vmem [shape: f32[1,32], index: 2, kind: input, shape index: {}]   ;;  %s198_s3 = inlined_call_operand.vmem [shape: bf16[16,32], index: 3, kind: output, shape index: {}]  }
   0x1   :  { %137 = vmatprep.subr.bf16.mxu0 %v150_v0  ;;  %v147_v1 = vld [vmem:[%s195_s1] sm:$0xff]   ;;  %141 = vmatprep.mubr.msk.bf16.mxu0 %vm151_vm1, %v150_v0  ;;  %20 = vst.msk [vmem:[#allocation2] sm:$0xff] %vm19_vm0, %v150_v0  ;;  %21 = vst.msk [vmem:[#allocation2 + $0x8] sm:$0xff] %vm19_vm0, %v150_v0  ;;  %v148_v2 = vld [vmem:[%s195_s1 + $0x8] sm:$0xff]  }
   0x2   :  { %138 = vmatpush3.bf16.msra.mxu0 %v147_v1  ;;  %v149_v3 = vld [vmem:[%s196_s0] sm:$0xff]  }
   0x3   :  { %139 = vmatprep.subr.bf16.mxu0 %v150_v0  ;;  %v129_v12 = vld [vmem:[%s197_s2] ss:$0 sm:$0xff] }
   0x6   :  { %140 = vmatpush3.bf16.msra.mxu0 %v148_v2 }
   0x8   :  { %v22_v4 = vld [vmem:[#allocation2] sm:$0xff]  ;;  %v23_v6 = vld [vmem:[#allocation2 + $0x8] sm:$0xff] }
   0x9   :  { %142 = vmatmul.mubr.msk.bf16.vlgmr.msra.gmra.mrb[0].mxu0 %vm19_vm0, %v149_v3 }
  0xdc   :  { %v85_v5 = vpop.f32.mrb[0].mxu0 }
  0xdd   :  { %v92_v7 = vadd.f32 %v85_v5, %v22_v4  ;;  %v143_v8 = vpop.f32.mrb[1].mxu0 }
  0xde   :  { %v88_v9 = vpop.f32.mrb[2].mxu0 }
  0xdf   :  { %94 = vst.msk [vmem:[#allocation2] sm:$0xff] %vm19_vm0, %v92_v7  ;;  %v93_v10 = vadd.f32 %v88_v9, %v23_v6  ;;  %v144_v11 = vpop.f32.mrb[3].mxu0 }
  0xe1   :  { %95 = vst.msk [vmem:[#allocation2 + $0x8] sm:$0xff] %vm19_vm0, %v93_v10 }
  0xe6   :  { %v99_v13 = vld [vmem:[#allocation2] sm:$0xff] }
  0xe7   :  { %v108_v14 = vadd.f32 %v129_v12, %v99_v13 }
  0xe8   :  { %v100_v15 = vld [vmem:[#allocation2 + $0x8] sm:$0xff] }
  0xe9   :  { %v132_v16 = vpack.c.bf16 %v108_v14, %v108_v14  ;;  %v109_v17 = vadd.f32 %v129_v12, %v100_v15 }
  0xeb   :  { %119 = vst.msk [vmem:[%s198_s3] sm:$0xf] %vm118_vm2, %v132_v16  ;;  %v133_v18 = vpack.c.bf16 %v109_v17, %v109_v17 }
  0xed   :  { %120 = vst.msk [vmem:[%s198_s3 + $0x4] sm:$0xf] %vm118_vm2, %v133_v18 }

// kernel: ll_model_forward.34
= control target key start
LH: loop header
LB: loop body
LE: loop exit
PB: predicated region body
PF: predicated region fallthrough
CT: control target
= control target key end

     0   :  { %s873_s9 = smov 0   ;;  %s976_s0 = inlined_call_operand.vmem [shape: bf16[2,8,96], index: 0, kind: input, shape index: {}]   ;;  %s977_s1 = inlined_call_operand.vmem [shape: bf16[2,8,8], index: 1, kind: input, shape index: {}]   ;;  %s978_s2 = inlined_call_operand.vmem [shape: bf16[2,8,32], index: 2, kind: output, shape index: {}]  }
   0x1 LB: > { %s703_s10 = sadd.s32 4294967295, %s840_s9   ;;  %p707_p0 = scmp.ge.s32.totalorder %s840_s9, 1  ;;  %s840_s9 = sphi %s873_s9, %s12_s9  }
   0x2   : > { %p120_p1 = scmp.lt.s32.totalorder %s840_s9, 3 }
   0x4   : > { %p121_p2 = pnand %p707_p0, %p120_p1 }
   0x5   : > { %p144_p3 = scmp.lt.s32.totalorder (!%p121_p2), %s703_s10, 1  ;;  %v842_v0 = vmov (!%p121_p2), 0.0   ;;  %vm843_vm0 = vmmov (!%p121_p2), 0   ;;  %s844_s15 = smov (!%p121_p2), 96   ;;  %vm167_vm1 = vcmask (!%p121_p2), 64512   ;;  %vm230_vm2 = vcmask (!%p121_p2), 1043456  }
   0x6   : > { %124 = sbr.rel (%p121_p2) target bundleno = 1246 (0x4de), region = 28  ;;  %745 = vmatprep.subr.bf16.mxu0 (!%p121_p2), %v842_v0  ;;  %747 = vmatprep.mubr.msk.bf16.mxu0 (!%p121_p2), %vm843_vm0, %v842_v0  ;;  %s845_s16 = smov (!%p121_p2), 64   ;;  %vm276_vm3 = vcmask (!%p121_p2), 60416   ;;  %vm398_vm4 = vcmask (!%p121_p2), 126016   ;;  %vm517_vm5 = vcmask (!%p121_p2), 191616   ;;  %vm636_vm6 = vcmask (!%p121_p2), 257216  }
   0x7   : > { %751 = vmatprep.subr.bf16.mxu1 (!%p121_p2), %v842_v0  ;;  %753 = vmatprep.mubr.msk.bf16.mxu1 (!%p121_p2), %vm843_vm0, %v842_v0  ;;  %s846_s17 = smov (!%p121_p2), 88   ;;  %s847_s18 = smov (!%p121_p2), 120  }
   0x8   : > { %s848_s19 = smov (!%p121_p2), 80   ;;  %s849_s20 = smov (!%p121_p2), 112  }
   0x9   : > { %s850_s21 = smov (!%p121_p2), 72   ;;  %s851_s22 = smov (!%p121_p2), 104  }
   0xa   : > { %s852_s26 = smov (!%p121_p2), 56   ;;  %s853_s27 = smov (!%p121_p2), 48  }
   0xb   : > { %s854_s28 = smov (!%p121_p2), 40   ;;  %s855_s4 = smov (!%p121_p2), 8  }
   0xc   : > { %s856_s5 = smov (!%p121_p2), 16   ;;  %s857_s6 = smov (!%p121_p2), 24  }
   0xd   : > { %s980_s10 = smov (!%p144_p3, %s703_s10), 1 }
   0xe   : > { %s887_s11 = sshll.u32 %s980_s10, 2 }
   0xf   : > { %s147_s14 = scalar_lea.vmem %s976_s0, %s887_s11  ;;  %s151_s25 = scalar_lea.vmem %s977_s1, %s887_s11 }
  0x10   : > { %v158_v1 = vld [vmem:[%s147_s14] sm:$0xf]  ;;  %s967_s3 = scalar_lea.vmem %s978_s2, %s887_s11 }
  0x11   : > { %v893_v2 = vcombine.low %v158_v1, %v158_v1  ;;  %v161_v5 = vmul.bf16 1052065461, %v158_v1  ;;  %v159_v7 = vld [vmem:[%s151_s25] sm:$0xf] }
  0x12   : > { %v909_v8 = vunpack.c.l.bf16 %v159_v7 }
  0x13   : > { %165 = vrot.lane.b32.xlu0 %v893_v2, %s844_s15  ;;  %225 = vrot.lane.b32.xlu1 %v893_v2, %s845_s16  ;;  %v714_v6 = vcombine.low %v161_v5, %v161_v5 }
  0x17   : > { %283 = vrot.lane.b32.xlu1 %v893_v2, %s846_s17 }
  0x1b   : > { %281 = vrot.lane.b32.xlu1 %v714_v6, %s847_s18 }
  0x1f   : > { %402 = vrot.lane.b32.xlu1 %v893_v2, %s848_s19 }
  0x23   : > { %400 = vrot.lane.b32.xlu1 %v714_v6, %s849_s20 }
  0x27   : > { %521 = vrot.lane.b32.xlu1 %v893_v2, %s850_s21 }
  0x2b   : > { %519 = vrot.lane.b32.xlu1 %v714_v6, %s851_s22 }
  0x85   : > { %v166_v3 = vpop.permute.xlu0 %165  ;;  %v226_v15 = vpop.permute.xlu1 %225 }
  0x86   : > { %v172_v4 = vsel %vm167_vm1, %v166_v3, 0  ;;  %v232_v16 = vsel %vm230_vm2, %v226_v15, 0 }
  0x87   : > { %746 = vmatpush3.bf16.xpose.msra.mxu0 %v172_v4  ;;  %752 = vmatpush3.bf16.msra.mxu1 %v232_v16 }
  0x88   : > { %763 = vmatprep.subr.bf16.mxu0 %v842_v0  ;;  %757 = vmatprep.subr.bf16.mxu1 %v842_v0 }
  0x89   : > { %v284_v20 = vpop.permute.xlu1 %283 }
  0x8a   : > { %v289_v23 = vsel %vm167_vm1, %v284_v20, 0 }
  0x8d   : > { %v282_v21 = vpop.permute.xlu1 %281 }
  0x8e   : > { %748 = vmatmul.mubr.msk.bf16.vlgmr.msra.gmra.mrb[0].mxu0 %vm167_vm1, %v161_v5 }
  0x8f   : > { %765 = vmatprep.mubr.msk.bf16.mxu0 %vm843_vm0, %v842_v0 }
  0x91   : > { %v403_v25 = vpop.permute.xlu1 %402 }
  0x92   : > { %v408_v27 = vsel %vm167_vm1, %v403_v25, 0 }
  0x95   : > { %v401_v26 = vpop.permute.xlu1 %400 }
  0x99   : > { %v522_v28 = vpop.permute.xlu1 %521 }
  0x9a   : > { %v527_v29 = vsel %vm167_vm1, %v522_v28, 0 }
  0x9d   : > { %v520_v30 = vpop.permute.xlu1 %519 }
 0x161   : > { %v208_v9 = vpop.f32.mrb[0].mxu0 }
 0x162   : > { %v209_v10 = vadd.f32 %v208_v9, %v909_v8  ;;  %v749_v11 = vpop.f32.mrb[1].mxu0 }
 0x163   : > { %v211_v12 = vpop.f32.mrb[2].mxu0 }
 0x164   : > { %v750_v13 = vpop.f32.mrb[3].mxu0  ;;  %v214_v14 = vsel %vm167_vm1, %v209_v10, -inf }
 0x165   : > { %215 = vmax.xlane.f32.xlu0 %v214_v14 }
 0x17b   : > { %342 = vrot.lane.b32.xlu0 %v893_v2, %s852_s26 }
 0x1f2   : > { %v216_v17 = vpop.xlane.xlu0 %215 }
 0x1f3   : > { %v217_v18 = vsub.f32 %v209_v10, %v216_v17 }
 0x1f5   : > { %v218_v19 = vmul.f32 1.442695, %v217_v18 }
 0x1f6   : > { %v343_v31 = vpop.permute.xlu0 %342 }
 0x1f7   : > { %818 = vpow2.f32 %v218_v19  ;;  %v348_v32 = vsel %vm230_vm2, %v343_v31, 0 }
 0x1f8   : > { %764 = vmatpush3.bf16.msra.mxu0 %v348_v32 }
 0x1f9   : > { %775 = vmatprep.subr.bf16.mxu0 %v842_v0 }
 0x201   : > { %v916_v22 = vpop.eup %818 }
 0x202   : > { %v224_v24 = vpack.c.bf16 %v916_v22, %v916_v22  ;;  %v220_v14 = vsel %vm167_vm1, %v916_v22, 0.0 }
 0x204   : > { %754 = vmatmul.mubr.msk.bf16.vlgmr.msra.gmra.mrb[0].mxu1 %vm167_vm1, %v224_v24 }
 0x205   : > { %758 = vmatpush3.bf16.xpose.msra.mxu1 %v289_v23  ;;  %759 = vmatprep.mubr.msk.bf16.mxu1 %vm843_vm0, %v842_v0 }
 0x206   : > { %769 = vmatprep.subr.bf16.mxu1 %v842_v0 }
 0x20c   : > { %760 = vmatmul.mubr.msk.bf16.vlgmr.msra.gmra.mrb[4].mxu1 %vm167_vm1, %v282_v21 }
 0x20d   : > { %770 = vmatpush3.bf16.xpose.msra.mxu1 %v408_v27  ;;  %771 = vmatprep.mubr.msk.bf16.mxu1 %vm843_vm0, %v842_v0 }
 0x20e   : > { %781 = vmatprep.subr.bf16.mxu1 %v842_v0 }
 0x214   : > { %772 = vmatmul.mubr.msk.bf16.vlgmr.msra.gmra.mrb[8].mxu1 %vm167_vm1, %v401_v26 }
 0x215   : > { %782 = vmatpush3.bf16.xpose.msra.mxu1 %v527_v29  ;;  %783 = vmatprep.mubr.msk.bf16.mxu1 %vm843_vm0, %v842_v0 }
 0x21c   : > { %784 = vmatmul.mubr.msk.bf16.vlgmr.msra.gmra.mrb[12].mxu1 %vm167_vm1, %v520_v30 }
 0x2d7   : > { %v937_v33 = vpop.f32.mrb[0].mxu1 }
 0x2d8   : > { %v755_v34 = vpop.f32.mrb[1].mxu1 }
 0x2d9   : > { %v271_v35 = vpop.f32.mrb[2].mxu1 }
 0x2da   : > { %v756_v36 = vpop.f32.mrb[3].mxu1 }
 0x2df   : > { %v325_v37 = vpop.f32.mrb[4].mxu1 }
 0x2e0   : > { %v326_v38 = vadd.f32 %v325_v37, %v909_v8  ;;  %v761_v39 = vpop.f32.mrb[5].mxu1 }
 0x2e1   : > { %v328_v40 = vpop.f32.mrb[6].mxu1 }
 0x2e2   : > { %v762_v41 = vpop.f32.mrb[7].mxu1  ;;  %v331_v42 = vsel %vm167_vm1, %v326_v38, -inf }
 0x2e3   : > { %332 = vmax.xlane.f32.xlu1 %v331_v42 }
 0x2e7   : > { %v444_v43 = vpop.f32.mrb[8].mxu1 }
 0x2e8   : > { %v445_v44 = vadd.f32 %v444_v43, %v909_v8  ;;  %v773_v45 = vpop.f32.mrb[9].mxu1 }
 0x2e9   : > { %v447_v46 = vpop.f32.mrb[10].mxu1 }
 0x2ea   : > { %v774_v47 = vpop.f32.mrb[11].mxu1  ;;  %v450_v48 = vsel %vm167_vm1, %v445_v44, -inf }
 0x2eb   : > { %451 = vmax.xlane.f32.xlu0 %v450_v48 }
 0x2ef   : > { %v563_v49 = vpop.f32.mrb[12].mxu1 }
 0x2f0   : > { %v564_v50 = vadd.f32 %v563_v49, %v909_v8  ;;  %v785_v51 = vpop.f32.mrb[13].mxu1 }
 0x2f1   : > { %v566_v52 = vpop.f32.mrb[14].mxu1 }
 0x2f2   : > { %v786_v53 = vpop.f32.mrb[15].mxu1  ;;  %v569_v54 = vsel %vm167_vm1, %v564_v50, -inf }
 0x2f3   : > { %570 = vmax.xlane.f32.xlu0 %v569_v54 }
 0x2f4   : > { %461 = vrot.lane.b32.xlu1 %v893_v2, %s853_s27 }
 0x309   : > { %580 = vrot.lane.b32.xlu0 %v893_v2, %s854_s28 }
 0x370   : > { %v333_v55 = vpop.xlane.xlu1 %332 }
 0x371   : > { %v334_v56 = vsub.f32 %v326_v38, %v333_v55 }
 0x373   : > { %v335_v57 = vmul.f32 1.442695, %v334_v56 }
 0x374   : > { %v462_v61 = vpop.permute.xlu1 %461 }
 0x375   : > { %820 = vpow2.f32 %v335_v57  ;;  %v467_v63 = vsel %vm230_vm2, %v462_v61, 0 }
 0x378   : > { %v452_v58 = vpop.xlane.xlu0 %451 }
 0x379   : > { %v453_v59 = vsub.f32 %v445_v44, %v452_v58 }
 0x37b   : > { %v454_v60 = vmul.f32 1.442695, %v453_v59 }
 0x37d   : > { %822 = vpow2.f32 %v454_v60 }
 0x37f   : > { %v821_v62 = vpop.eup %820 }
 0x380   : > { %v571_v1 = vpop.xlane.xlu0 %570  ;;  %v337_v3 = vsel %vm167_vm1, %v821_v62, 0.0  ;;  %v341_v4 = vpack.c.bf16 %v821_v62, %v821_v62 }
 0x381   : > { %v572_v5 = vsub.f32 %v564_v50, %v571_v1  ;;  %338 = vadd.xlane.f32.xlu0 %v337_v3 }
 0x382   : > { %766 = vmatmul.mubr.msk.bf16.vlgmr.msra.gmra.mrb[4].mxu0 %vm167_vm1, %v341_v4 }
 0x383   : > { %v573_v2 = vmul.f32 1.442695, %v572_v5  ;;  %776 = vmatpush3.bf16.msra.mxu0 %v467_v63  ;;  %777 = vmatprep.mubr.msk.bf16.mxu0 %vm843_vm0, %v842_v0 }
 0x384   : > { %787 = vmatprep.subr.bf16.mxu0 %v842_v0  ;;  %v581_v6 = vpop.permute.xlu0 %580 }
 0x385   : > { %824 = vpow2.f32 %v573_v2  ;;  %v586_v8 = vsel %vm230_vm2, %v581_v6, 0 }
 0x387   : > { %v823_v7 = vpop.eup %822 }
 0x388   : > { %v456_v9 = vsel %vm167_vm1, %v823_v7, 0.0  ;;  %v460_v10 = vpack.c.bf16 %v823_v7, %v823_v7 }
 0x389   : > { %457 = vadd.xlane.f32.xlu1 %v456_v9 }
 0x38a   : > { %778 = vmatmul.mubr.msk.bf16.vlgmr.msra.gmra.mrb[8].mxu0 %vm167_vm1, %v460_v10 }
 0x38b   : > { %788 = vmatpush3.bf16.msra.mxu0 %v586_v8  ;;  %789 = vmatprep.mubr.msk.bf16.mxu0 %vm843_vm0, %v842_v0 }
 0x38f   : > { %v825_v11 = vpop.eup %824 }
 0x390   : > { %v575_v12 = vsel %vm167_vm1, %v825_v11, 0.0  ;;  %v579_v13 = vpack.c.bf16 %v825_v11, %v825_v11 }
 0x391   : > { %576 = vadd.xlane.f32.xlu0 %v575_v12 }
 0x392   : > { %790 = vmatmul.mubr.msk.bf16.vlgmr.msra.gmra.mrb[12].mxu0 %vm167_vm1, %v579_v13 }
 0x395   : > { %221 = vadd.xlane.f32.xlu0 %v220_v14 }
 0x40e   : > { %v339_v15 = vpop.xlane.xlu0 %338 }
 0x416   : > { %v458_v20 = vpop.xlane.xlu1 %457 }
 0x41e   : > { %v577_v16 = vpop.xlane.xlu0 %576 }
 0x422   : > { %v222_v17 = vpop.xlane.xlu0 %221 }
 0x423   : > { %826 = vrcp.f32 %v222_v17 }
 0x424   : > { %828 = vrcp.f32 %v339_v15 }
 0x425   : > { %830 = vrcp.f32 %v458_v20 }
 0x426   : > { %832 = vrcp.f32 %v577_v16 }
 0x42d   : > { %v827_v18 = vpop.eup %826 }
 0x42e   : > { %v274_v19 = vmul.f32 %v827_v18, %v937_v33  ;;  %v829_v21 = vpop.eup %828 }
 0x42f   : > { %v831_v28 = vpop.eup %830 }
 0x430   : > { %v275_v0 = vpack.c.bf16 %v274_v19, %v274_v19  ;;  %v833_v35 = vpop.eup %832 }
 0x432   : > { %277 = vst.msk [vmem:[%s967_s3] sm:$0xf] %vm276_vm3, %v275_v0 }
 0x455   : > { %v384_v22 = vpop.f32.mrb[4].mxu0 }
 0x456   : > { %v390_v23 = vmul.f32 %v829_v21, %v384_v22  ;;  %v767_v24 = vpop.f32.mrb[5].mxu0 }
 0x457   : > { %v387_v25 = vpop.f32.mrb[6].mxu0 }
 0x458   : > { %v726_v26 = vpack.c.bf16 %v390_v23, %v390_v23  ;;  %v768_v27 = vpop.f32.mrb[7].mxu0 }
 0x45a   : > { %395 = vrot.lane.b32.xlu0 %v726_v26, %s855_s4 }
 0x45d   : > { %v503_v29 = vpop.f32.mrb[8].mxu0 }
 0x45e   : > { %v509_v30 = vmul.f32 %v831_v28, %v503_v29  ;;  %v779_v31 = vpop.f32.mrb[9].mxu0 }
 0x45f   : > { %v506_v32 = vpop.f32.mrb[10].mxu0 }
 0x460   : > { %v727_v33 = vpack.c.bf16 %v509_v30, %v509_v30  ;;  %v780_v34 = vpop.f32.mrb[11].mxu0 }
 0x462   : > { %514 = vrot.lane.b32.xlu1 %v727_v33, %s856_s5 }
 0x465   : > { %v622_v36 = vpop.f32.mrb[12].mxu0 }
 0x466   : > { %v628_v37 = vmul.f32 %v833_v35, %v622_v36  ;;  %v791_v38 = vpop.f32.mrb[13].mxu0 }
 0x467   : > { %v625_v39 = vpop.f32.mrb[14].mxu0 }
 0x468   : > { %v728_v40 = vpack.c.bf16 %v628_v37, %v628_v37  ;;  %v792_v41 = vpop.f32.mrb[15].mxu0 }
 0x46a   : > { %633 = vrot.lane.b32.xlu0 %v728_v40, %s857_s6 }
 0x4cc   : > { %v396_v42 = vpop.permute.xlu0 %395 }
 0x4cd   : > { %399 = vst.msk [vmem:[%s967_s3] sm:$0xf] %vm398_vm4, %v396_v42 }
 0x4d4   : > { %v515_v43 = vpop.permute.xlu1 %514 }
 0x4d5   : > { %518 = vst.msk [vmem:[%s967_s3] sm:$0xf] %vm517_vm5, %v515_v43 }
 0x4dc   : > { %v634_v44 = vpop.permute.xlu0 %633 }
 0x4dd   : > { %637 = vst.msk [vmem:[%s967_s3] sm:$0xf] %vm636_vm6, %v634_v44 }
 0x4de PF: > { %s12_s9 = sadd.s32 1, %s840_s9  }
 0x4df   : > { %p9_p4 = scmp.ge.s32.totalorder %s12_s9, 4  }
 0x4e1   :  { %11 = sbr.rel (!%p9_p4) target bundleno = 1 (0x1), region = 61 }

// kernel: ll_model_forward.38
= control target key start
LH: loop header
LB: loop body
LE: loop exit
PB: predicated region body
PF: predicated region fallthrough
CT: control target
= control target key end

     0   :  { %s923_s12 = smov 0   ;;  %s1026_s0 = inlined_call_operand.vmem [shape: bf16[2,8,32], index: 0, kind: input, shape index: {}]   ;;  %s1027_s1 = inlined_call_operand.vmem [shape: bf16[2,8,64], index: 1, kind: input, shape index: {}]   ;;  %s1028_s2 = inlined_call_operand.vmem [shape: bf16[2,1,8], index: 2, kind: input, shape index: {}]   ;;  %s1029_s3 = inlined_call_operand.vmem [shape: bf16[2,8,32], index: 3, kind: output, shape index: {}]  }
   0x1 LB: > { %s756_s13 = sadd.s32 4294967295, %s889_s12   ;;  %p760_p0 = scmp.ge.s32.totalorder %s889_s12, 1  ;;  %s889_s12 = sphi %s923_s12, %s13_s12  }
   0x2   : > { %p153_p1 = scmp.lt.s32.totalorder %s889_s12, 3 }
   0x4   : > { %p154_p2 = pnand %p760_p0, %p153_p1 }
   0x5   : > { %p182_p3 = scmp.lt.s32.totalorder (!%p154_p2), %s756_s13, 1  ;;  %v891_v0 = vmov (!%p154_p2), 0.0   ;;  %vm892_vm0 = vmmov (!%p154_p2), 0   ;;  %vm208_vm1 = vcmask (!%p154_p2), 64512   ;;  %s893_s21 = smov (!%p154_p2), 120   ;;  %v204_v7 = vlaneseq (!%p154_p2) }
   0x6   : > { %157 = sbr.rel (%p154_p2) target bundleno = 1129 (0x469), region = 32  ;;  %798 = vmatprep.subr.bf16.mxu0 (!%p154_p2), %v891_v0  ;;  %800 = vmatprep.mubr.msk.bf16.mxu0 (!%p154_p2), %vm892_vm0, %v891_v0  ;;  %s894_s22 = smov (!%p154_p2), 112   ;;  %vm274_vm2 = vcmask (!%p154_p2), 1043456   ;;  %vm320_vm3 = vcmask (!%p154_p2), 60416   ;;  %vm442_vm4 = vcmask (!%p154_p2), 126016   ;;  %vm561_vm5 = vcmask (!%p154_p2), 191616  }
   0x7   : > { %804 = vmatprep.subr.bf16.mxu1 (!%p154_p2), %v891_v0  ;;  %806 = vmatprep.mubr.msk.bf16.mxu1 (!%p154_p2), %vm892_vm0, %v891_v0  ;;  %s895_s23 = smov (!%p154_p2), 104   ;;  %v205_v8 = vshrl.u32 (!%p154_p2), %v204_v7, 7  ;;  %s896_s27 = smov (!%p154_p2), 96   ;;  %vm680_vm6 = vcmask (!%p154_p2), 257216  }
   0x8   : > { %s897_s28 = smov (!%p154_p2), 88   ;;  %s898_s29 = smov (!%p154_p2), 72  }
   0x9   : > { %v206_v11 = vsub.s32 (!%p154_p2), 0, %v205_v8  ;;  %s899_s30 = smov (!%p154_p2), 80   ;;  %s900_s7 = smov (!%p154_p2), 8  }
   0xa   : > { %s901_s8 = smov (!%p154_p2), 16   ;;  %s902_s9 = smov (!%p154_p2), 24  }
   0xd   : > { %s1031_s13 = smov (!%p182_p3, %s756_s13), 1 }
   0xe   : > { %s940_s14 = sshll.u32 %s1031_s13, 2  ;;  %s192_s26 = scalar_lea.vmem %s1028_s2, %s1031_s13 }
   0xf   : > { %s185_s17 = scalar_lea.vmem %s1026_s0, %s940_s14  ;;  %s189_s20 = scalar_lea.vmem %s1027_s1, %s940_s14  ;;  %v201_v9 = vld [vmem:[%s192_s26] sm:$0x1] }
  0x10   : > { %v200_v1 = vld [vmem:[%s189_s20] sm:$0xf]  ;;  %v202_v10 = vunpack.c.l.bf16 %v201_v9  ;;  %s1017_s6 = scalar_lea.vmem %s1029_s3, %s940_s14 }
  0x11   : > { %v213_v2 = vsel %vm208_vm1, %v200_v1, 0  ;;  %v199_v3 = vld [vmem:[%s185_s17] sm:$0xf]  ;;  %v955_v5 = vcombine.low %v200_v1, %v200_v1 }
  0x12   : > { %799 = vmatpush3.bf16.xpose.msra.mxu0 %v213_v2  ;;  %v203_v4 = vmul.bf16 1052065461, %v199_v3  ;;  %v207_v12 = vrot.slane %v202_v10, %v206_v11 }
  0x13   : > { %816 = vmatprep.subr.bf16.mxu0 %v891_v0  ;;  %327 = vrot.lane.b32.xlu1 %v955_v5, %s893_s21 }
  0x14   : > { %v767_v6 = vcombine.low %v203_v4, %v203_v4 }
  0x17   : > { %325 = vrot.lane.b32.xlu1 %v767_v6, %s893_s21 }
  0x19   : > { %801 = vmatmul.mubr.msk.bf16.vlgmr.msra.gmra.mrb[0].mxu0 %vm208_vm1, %v203_v4 }
  0x1a   : > { %818 = vmatprep.mubr.msk.bf16.mxu0 %vm892_vm0, %v891_v0 }
  0x1b   : > { %446 = vrot.lane.b32.xlu1 %v955_v5, %s894_s22 }
  0x1f   : > { %444 = vrot.lane.b32.xlu1 %v767_v6, %s894_s22 }
  0x23   : > { %565 = vrot.lane.b32.xlu1 %v955_v5, %s895_s23 }
  0x27   : > { %563 = vrot.lane.b32.xlu1 %v767_v6, %s895_s23 }
  0x85   : > { %v328_v24 = vpop.permute.xlu1 %327 }
  0x86   : > { %v333_v27 = vsel %vm208_vm1, %v328_v24, 0 }
  0x89   : > { %v326_v25 = vpop.permute.xlu1 %325 }
  0x8d   : > { %v447_v29 = vpop.permute.xlu1 %446 }
  0x8e   : > { %v452_v31 = vsel %vm208_vm1, %v447_v29, 0 }
  0x91   : > { %v445_v30 = vpop.permute.xlu1 %444 }
  0x95   : > { %v566_v32 = vpop.permute.xlu1 %565 }
  0x96   : > { %v571_v33 = vsel %vm208_vm1, %v566_v32, 0 }
  0x99   : > { %v564_v34 = vpop.permute.xlu1 %563 }
  0xec   : > { %v249_v13 = vpop.f32.mrb[0].mxu0 }
  0xed   : > { %v250_v14 = vadd.f32 %v249_v13, %v207_v12  ;;  %v802_v15 = vpop.f32.mrb[1].mxu0 }
  0xee   : > { %v252_v16 = vpop.f32.mrb[2].mxu0 }
  0xef   : > { %v803_v17 = vpop.f32.mrb[3].mxu0  ;;  %v255_v18 = vsel %vm208_vm1, %v250_v14, -inf }
  0xf0   : > { %256 = vmax.xlane.f32.xlu0 %v255_v18 }
 0x106   : > { %269 = vrot.lane.b32.xlu0 %v955_v5, %s896_s27 }
 0x17d   : > { %v257_v19 = vpop.xlane.xlu0 %256 }
 0x17e   : > { %v258_v20 = vsub.f32 %v250_v14, %v257_v19 }
 0x180   : > { %v259_v21 = vmul.f32 1.442695, %v258_v20 }
 0x181   : > { %v270_v22 = vpop.permute.xlu0 %269 }
 0x182   : > { %867 = vpow2.f32 %v259_v21  ;;  %v276_v23 = vsel %vm274_vm2, %v270_v22, 0 }
 0x183   : > { %805 = vmatpush3.bf16.msra.mxu1 %v276_v23 }
 0x184   : > { %810 = vmatprep.subr.bf16.mxu1 %v891_v0 }
 0x18c   : > { %v968_v26 = vpop.eup %867 }
 0x18d   : > { %v265_v28 = vpack.c.bf16 %v968_v26, %v968_v26  ;;  %v261_v9 = vsel %vm208_vm1, %v968_v26, 0.0 }
 0x18f   : > { %807 = vmatmul.mubr.msk.bf16.vlgmr.msra.gmra.mrb[0].mxu1 %vm208_vm1, %v265_v28 }
 0x190   : > { %811 = vmatpush3.bf16.xpose.msra.mxu1 %v333_v27  ;;  %812 = vmatprep.mubr.msk.bf16.mxu1 %vm892_vm0, %v891_v0 }
 0x191   : > { %822 = vmatprep.subr.bf16.mxu1 %v891_v0 }
 0x197   : > { %813 = vmatmul.mubr.msk.bf16.vlgmr.msra.gmra.mrb[4].mxu1 %vm208_vm1, %v326_v25 }
 0x198   : > { %823 = vmatpush3.bf16.xpose.msra.mxu1 %v452_v31  ;;  %824 = vmatprep.mubr.msk.bf16.mxu1 %vm892_vm0, %v891_v0 }
 0x199   : > { %834 = vmatprep.subr.bf16.mxu1 %v891_v0 }
 0x19f   : > { %825 = vmatmul.mubr.msk.bf16.vlgmr.msra.gmra.mrb[8].mxu1 %vm208_vm1, %v445_v30 }
 0x1a0   : > { %835 = vmatpush3.bf16.xpose.msra.mxu1 %v571_v33  ;;  %836 = vmatprep.mubr.msk.bf16.mxu1 %vm892_vm0, %v891_v0 }
 0x1a7   : > { %837 = vmatmul.mubr.msk.bf16.vlgmr.msra.gmra.mrb[12].mxu1 %vm208_vm1, %v564_v34 }
 0x262   : > { %v987_v35 = vpop.f32.mrb[0].mxu1 }
 0x263   : > { %v808_v36 = vpop.f32.mrb[1].mxu1 }
 0x264   : > { %v315_v37 = vpop.f32.mrb[2].mxu1 }
 0x265   : > { %v809_v38 = vpop.f32.mrb[3].mxu1 }
 0x26a   : > { %v369_v39 = vpop.f32.mrb[4].mxu1 }
 0x26b   : > { %v370_v40 = vadd.f32 %v369_v39, %v207_v12  ;;  %v814_v41 = vpop.f32.mrb[5].mxu1 }
 0x26c   : > { %v372_v42 = vpop.f32.mrb[6].mxu1 }
 0x26d   : > { %v815_v43 = vpop.f32.mrb[7].mxu1  ;;  %v375_v44 = vsel %vm208_vm1, %v370_v40, -inf }
 0x26e   : > { %376 = vmax.xlane.f32.xlu1 %v375_v44 }
 0x272   : > { %v488_v45 = vpop.f32.mrb[8].mxu1 }
 0x273   : > { %v489_v46 = vadd.f32 %v488_v45, %v207_v12  ;;  %v826_v47 = vpop.f32.mrb[9].mxu1 }
 0x274   : > { %v491_v48 = vpop.f32.mrb[10].mxu1 }
 0x275   : > { %v827_v49 = vpop.f32.mrb[11].mxu1  ;;  %v494_v50 = vsel %vm208_vm1, %v489_v46, -inf }
 0x276   : > { %495 = vmax.xlane.f32.xlu0 %v494_v50 }
 0x27a   : > { %v607_v51 = vpop.f32.mrb[12].mxu1 }
 0x27b   : > { %v608_v52 = vadd.f32 %v607_v51, %v207_v12  ;;  %v838_v53 = vpop.f32.mrb[13].mxu1 }
 0x27c   : > { %v610_v54 = vpop.f32.mrb[14].mxu1 }
 0x27d   : > { %v839_v55 = vpop.f32.mrb[15].mxu1  ;;  %v613_v56 = vsel %vm208_vm1, %v608_v52, -inf }
 0x27e   : > { %614 = vmax.xlane.f32.xlu0 %v613_v56 }
 0x27f   : > { %386 = vrot.lane.b32.xlu1 %v955_v5, %s897_s28 }
 0x283   : > { %624 = vrot.lane.b32.xlu1 %v955_v5, %s898_s29 }
 0x294   : > { %505 = vrot.lane.b32.xlu0 %v955_v5, %s899_s30 }
 0x2fb   : > { %v377_v57 = vpop.xlane.xlu1 %376 }
 0x2fc   : > { %v378_v58 = vsub.f32 %v370_v40, %v377_v57 }
 0x2fe   : > { %v379_v59 = vmul.f32 1.442695, %v378_v58 }
 0x2ff   : > { %v387_v60 = vpop.permute.xlu1 %386 }
 0x300   : > { %869 = vpow2.f32 %v379_v59  ;;  %v392_v61 = vsel %vm274_vm2, %v387_v60, 0 }
 0x301   : > { %817 = vmatpush3.bf16.msra.mxu0 %v392_v61 }
 0x302   : > { %828 = vmatprep.subr.bf16.mxu0 %v891_v0 }
 0x303   : > { %v496_v62 = vpop.xlane.xlu0 %495  ;;  %v625_v11 = vpop.permute.xlu1 %624 }
 0x304   : > { %v497_v63 = vsub.f32 %v489_v46, %v496_v62  ;;  %v630_v15 = vsel %vm274_vm2, %v625_v11, 0 }
 0x306   : > { %v498_v1 = vmul.f32 1.442695, %v497_v63 }
 0x308   : > { %871 = vpow2.f32 %v498_v1 }
 0x30a   : > { %v870_v2 = vpop.eup %869 }
 0x30b   : > { %v615_v3 = vpop.xlane.xlu0 %614  ;;  %v381_v4 = vsel %vm208_vm1, %v870_v2, 0.0  ;;  %v385_v6 = vpack.c.bf16 %v870_v2, %v870_v2 }
 0x30c   : > { %v616_v5 = vsub.f32 %v608_v52, %v615_v3  ;;  %382 = vadd.xlane.f32.xlu1 %v381_v4 }
 0x30d   : > { %819 = vmatmul.mubr.msk.bf16.vlgmr.msra.gmra.mrb[4].mxu0 %vm208_vm1, %v385_v6 }
 0x30e   : > { %v617_v7 = vmul.f32 1.442695, %v616_v5  ;;  %830 = vmatprep.mubr.msk.bf16.mxu0 %vm892_vm0, %v891_v0 }
 0x30f   : > { %v506_v8 = vpop.permute.xlu0 %505 }
 0x310   : > { %873 = vpow2.f32 %v617_v7  ;;  %v511_v10 = vsel %vm274_vm2, %v506_v8, 0  ;;  %262 = vadd.xlane.f32.xlu1 %v261_v9 }
 0x311   : > { %829 = vmatpush3.bf16.msra.mxu0 %v511_v10 }
 0x312   : > { %v872_v12 = vpop.eup %871  ;;  %840 = vmatprep.subr.bf16.mxu0 %v891_v0 }
 0x313   : > { %v500_v13 = vsel %vm208_vm1, %v872_v12, 0.0  ;;  %v504_v14 = vpack.c.bf16 %v872_v12, %v872_v12 }
 0x314   : > { %501 = vadd.xlane.f32.xlu0 %v500_v13 }
 0x315   : > { %831 = vmatmul.mubr.msk.bf16.vlgmr.msra.gmra.mrb[8].mxu0 %vm208_vm1, %v504_v14 }
 0x316   : > { %841 = vmatpush3.bf16.msra.mxu0 %v630_v15  ;;  %842 = vmatprep.mubr.msk.bf16.mxu0 %vm892_vm0, %v891_v0 }
 0x31a   : > { %v874_v16 = vpop.eup %873 }
 0x31b   : > { %v619_v17 = vsel %vm208_vm1, %v874_v16, 0.0  ;;  %v623_v18 = vpack.c.bf16 %v874_v16, %v874_v16 }
 0x31c   : > { %620 = vadd.xlane.f32.xlu0 %v619_v17 }
 0x31d   : > { %843 = vmatmul.mubr.msk.bf16.vlgmr.msra.gmra.mrb[12].mxu0 %vm208_vm1, %v623_v18 }
 0x399   : > { %v383_v19 = vpop.xlane.xlu1 %382 }
 0x39d   : > { %v263_v20 = vpop.xlane.xlu1 %262 }
 0x39e   : > { %875 = vrcp.f32 %v263_v20 }
 0x39f   : > { %877 = vrcp.f32 %v383_v19 }
 0x3a1   : > { %v502_v23 = vpop.xlane.xlu0 %501 }
 0x3a2   : > { %879 = vrcp.f32 %v502_v23 }
 0x3a8   : > { %v876_v21 = vpop.eup %875 }
 0x3a9   : > { %v318_v22 = vmul.f32 %v876_v21, %v987_v35  ;;  %v878_v24 = vpop.eup %877  ;;  %v621_v29 = vpop.xlane.xlu0 %620 }
 0x3aa   : > { %881 = vrcp.f32 %v621_v29 }
 0x3ab   : > { %v319_v0 = vpack.c.bf16 %v318_v22, %v318_v22 }
 0x3ac   : > { %v880_v32 = vpop.eup %879 }
 0x3ad   : > { %321 = vst.msk [vmem:[%s1017_s6] sm:$0xf] %vm320_vm3, %v319_v0 }
 0x3b4   : > { %v882_v39 = vpop.eup %881 }
 0x3e0   : > { %v428_v25 = vpop.f32.mrb[4].mxu0 }
 0x3e1   : > { %v434_v26 = vmul.f32 %v878_v24, %v428_v25  ;;  %v820_v27 = vpop.f32.mrb[5].mxu0 }
 0x3e2   : > { %v431_v28 = vpop.f32.mrb[6].mxu0 }
 0x3e3   : > { %v779_v30 = vpack.c.bf16 %v434_v26, %v434_v26  ;;  %v821_v31 = vpop.f32.mrb[7].mxu0 }
 0x3e5   : > { %439 = vrot.lane.b32.xlu0 %v779_v30, %s900_s7 }
 0x3e8   : > { %v547_v33 = vpop.f32.mrb[8].mxu0 }
 0x3e9   : > { %v553_v34 = vmul.f32 %v880_v32, %v547_v33  ;;  %v832_v35 = vpop.f32.mrb[9].mxu0 }
 0x3ea   : > { %v550_v36 = vpop.f32.mrb[10].mxu0 }
 0x3eb   : > { %v780_v37 = vpack.c.bf16 %v553_v34, %v553_v34  ;;  %v833_v38 = vpop.f32.mrb[11].mxu0 }
 0x3ed   : > { %558 = vrot.lane.b32.xlu1 %v780_v37, %s901_s8 }
 0x3f0   : > { %v666_v40 = vpop.f32.mrb[12].mxu0 }
 0x3f1   : > { %v672_v41 = vmul.f32 %v882_v39, %v666_v40  ;;  %v844_v42 = vpop.f32.mrb[13].mxu0 }
 0x3f2   : > { %v669_v43 = vpop.f32.mrb[14].mxu0 }
 0x3f3   : > { %v781_v44 = vpack.c.bf16 %v672_v41, %v672_v41  ;;  %v845_v45 = vpop.f32.mrb[15].mxu0 }
 0x3f5   : > { %677 = vrot.lane.b32.xlu1 %v781_v44, %s902_s9 }
 0x457   : > { %v440_v46 = vpop.permute.xlu0 %439 }
 0x458   : > { %443 = vst.msk [vmem:[%s1017_s6] sm:$0xf] %vm442_vm4, %v440_v46 }
 0x45f   : > { %v559_v47 = vpop.permute.xlu1 %558 }
 0x460   : > { %562 = vst.msk [vmem:[%s1017_s6] sm:$0xf] %vm561_vm5, %v559_v47 }
 0x467   : > { %v678_v48 = vpop.permute.xlu1 %677 }
 0x468   : > { %681 = vst.msk [vmem:[%s1017_s6] sm:$0xf] %vm680_vm6, %v678_v48 }
 0x469 PF: > { %s13_s12 = sadd.s32 1, %s889_s12  }
 0x46a   : > { %p10_p4 = scmp.ge.s32.totalorder %s13_s12, 4  }
 0x46c   :  { %12 = sbr.rel (!%p10_p4) target bundleno = 1 (0x1), region = 68 }

// kernel: ll_model_forward.49
= control target key start
LH: loop header
LB: loop body
LE: loop exit
PB: predicated region body
PF: predicated region fallthrough
CT: control target
= control target key end

     0   :  { %v176_v1 = vmov 0.0   ;;  %vm177_vm0 = vmmov 0   ;;  %s225_s0 = inlined_call_operand.vmem [shape: bf16[16,32], index: 0, kind: input, shape index: {}]   ;;  %s226_s1 = inlined_call_operand.vmem [shape: bf16[32,128], index: 1, kind: input, shape index: {}]   ;;  %s227_s2 = inlined_call_operand.vmem [shape: f32[1,128], index: 2, kind: input, shape index: {}]   ;;  %s228_s3 = inlined_call_operand.hbm [shape: f32[16,128], index: 3, kind: output, shape index: {}]  }
   0x1   :  { %v149_v0 = vld [vmem:[%s226_s1] sm:$0xff]   ;;  %136 = vmatprep.subr.bf16.mxu0 %v176_v1  ;;  %v150_v2 = vld [vmem:[%s226_s1 + $0x8] sm:$0xff]   ;;  %140 = vmatprep.mubr.msk.bf16.mxu0 %vm177_vm0, %v176_v1 }
   0x2   :  { %137 = vmatpush3.bf16.msra.mxu0 %v149_v0 }
   0x3   :  { %138 = vmatprep.subr.bf16.mxu0 %v176_v1 }
   0x4   :  { %8 = vsyncpa [#allocation4], 0  ;;  %v151_v3 = vld [vmem:[%s225_s0] sm:$0xff]   ;;  %vm47_vm1 = vcmask 261120   ;;  %s178_s20 = smov [#allocation3]  }
   0x5   :  { %v132_v4 = vld [vmem:[%s227_s2] ss:$0 sm:$0xff]  ;;  %s117_s21 = sshll.u32 %s178_s20, 4  ;;  %s118_s21 = int_to_ptr.vmem [resolvable:$true] %s117_s21 }
   0x6   :  { %139 = vmatpush3.bf16.msra.mxu0 %v150_v2  ;;  %s152_s1 = scalar_lea.vmem %s118_s21, 256  ;;  %p157_p1 = scmp.lt.s32.totalorder %s118_s21, %s118_s21 }
   0x7   :  { %p153_p0 = scmp.ne.s32.totalorder %s118_s21, %s152_s1  ;;  %p158_p2 = scmp.lt.s32.totalorder %s152_s1, %s152_s1 }
   0x9   :  { %141 = vmatmul.mubr.msk.bf16.vlgmr.msra.gmra.mrb[0].mxu0 %vm47_vm1, %v151_v3  ;;  %p159_p3 = por %p158_p2, %p157_p1 }
   0xb   :  { %p160_p4 = pnand %p159_p3, %p153_p0 }
  0xdc   :  { %v85_v5 = vpop.f32.mrb[0].mxu0 }
  0xdd   :  { %v108_v6 = vadd.f32 %v132_v4, %v85_v5  ;;  %v142_v7 = vpop.f32.mrb[1].mxu0 }
  0xde   :  { %v88_v8 = vpop.f32.mrb[2].mxu0 }
  0xdf   :  { %110 = vst [vmem:[#allocation3] sm:$0xff] %v108_v6  ;;  %v109_v9 = vadd.f32 %v132_v4, %v88_v8  ;;  %v143_v10 = vpop.f32.mrb[3].mxu0 }
  0xe1   :  { %111 = vst [vmem:[#allocation3 + $0x8] sm:$0xff] %v109_v9 }
  0xe2   :  { %163 = shalt.err (!%p160_p4)
}
  0xe3   :  { %s164_s22 = scalar_lea.hbm %s228_s3, 256 }
  0xe4   :  { %p165_p5 = scmp.ne.s32.totalorder %s228_s3, %s164_s22  ;;  %p168_p6 = scmp.lt.u32.totalorder %s164_s22, %s228_s3 }
  0xe6   :  { %p170_p7 = pnand %p168_p6, %p165_p5 }
  0xe8   :  { %173 = shalt.err (!%p170_p7)
}
  0xe9   :  { %s179_s27 = smov 128   ;;  %s180_s28 = smov 8  }
  0xea   :  { %123 = dma.vmem_to_hbm [thread:$0]  %s118_s21, 256, %s228_s3, [#allocation4], %s179_s27, %s179_s27, %s180_s28  }
  0xeb   :  { %174 = dma.done.wait [#allocation4], 256  }
  0xec   :  { %175 = vsyncadd [#allocation4], 4294967040 }
  0xed   :  { %127 = vsyncpa [#allocation4], 1 }

</bundles_post_ra>
